<compile_context>
chip_gen: v5e
topology: v5e:2x2
jax: 0.10.0
libtpu: 0.0.40
codegen_flags: <defaults>
</compile_context>

<pallas_src>
import functools
import math

import numpy as np
import jax
import jax.numpy as jnp
from jax.experimental import pallas as pl
from jax.experimental.pallas import tpu as pltpu

LOG2 = math.log(2.0)
PI = math.pi
BF16 = jnp.bfloat16


def _ssp(x):
    # ShiftedSoftplus: softplus(x) - log(2), numerically stable, f32.
    return jnp.maximum(x, 0.0) + jnp.log1p(jnp.exp(-jnp.abs(x))) - LOG2


def _round_up(x, m):
    return ((x + m - 1) // m) * m


# ----------------------------------------------------------------------------
# Fused SchNet kernel: grid = (num_layers, num_edge_chunks)
# ----------------------------------------------------------------------------
def _schnet_kernel(h0_ref, ea_ref, c_ref, src_ref, tgt_ref, batch_ref,
                   w1_ref, b1_ref, w2_ref, b2_ref,
                   wl1_ref, wl2_ref, bl2_ref, wl_ref, bl_ref,
                   rw1_ref, rb1_ref, rw2_ref, rb2_ref,
                   out_ref,
                   h_sc, x1_sc, agg_sc,
                   *, n_nodes, n_graphs):
    l = pl.program_id(0)          # interaction layer (sequential)
    k = pl.program_id(1)          # edge chunk (reduction, sequential)
    n_l = pl.num_programs(0)
    n_k = pl.num_programs(1)

    # Load the embedding output into the resident node-feature scratch once.
    @pl.when(jnp.logical_and(l == 0, k == 0))
    def _():
        h_sc[...] = h0_ref[...]

    # Per-layer init: CFConv.lin1(h) once (stored bf16, it only feeds the
    # gather matmul), zero the scatter accumulator.
    @pl.when(k == 0)
    def _():
        x1_sc[...] = jnp.dot(h_sc[...].astype(BF16), wl1_ref[...],
                             preferred_element_type=jnp.float32).astype(BF16)
        agg_sc[...] = jnp.zeros_like(agg_sc)

    # ---- per-edge-chunk work -------------------------------------------------
    # filter network: W = mlp(edge_attr) * cosine_cutoff(edge_weight).
    # edge_attr (gaussian smearing) is precomputed in the wrapper (layer
    # invariant) and streamed here as bf16.
    ea = ea_ref[...]                                                 # [TE, G_pad] bf16
    t = jnp.dot(ea, w1_ref[...], preferred_element_type=jnp.float32) + b1_ref[...]
    t = _ssp(t)                                                      # f32 elementwise
    W = jnp.dot(t.astype(BF16), w2_ref[...],
                preferred_element_type=jnp.float32) + b2_ref[...]
    W = W * c_ref[...]                                               # [TE, F]; padded edges C = 0

    # one-hot gather/scatter operators generated in-kernel (no HBM traffic);
    # padded edges carry index -1 -> all-zero rows/cols -> no contribution.
    te = ea.shape[0]
    lane_iota = jax.lax.broadcasted_iota(jnp.int32, (te, n_nodes), 1)
    src_oh = (src_ref[...] == lane_iota).astype(BF16)                # [TE, N] (exact in bf16)
    x_j = jnp.dot(src_oh, x1_sc[...], preferred_element_type=jnp.float32)  # gather [TE, F]
    msg = (x_j * W).astype(BF16)                                     # message [TE, F]

    # scatter-add: build the transposed one-hot [N, TE] directly (dim-0 iota vs
    # a [1, TE] row of target indices) so no XLU transpose is needed.
    sub_iota = jax.lax.broadcasted_iota(jnp.int32, (n_nodes, te), 0)
    tgt_oh_t = (tgt_ref[...] == sub_iota).astype(BF16)               # [N, TE]
    agg_sc[...] += jnp.dot(tgt_oh_t, msg, preferred_element_type=jnp.float32)

    # ---- per-layer tail: lin2 + act + lin + residual --------------------------
    @pl.when(k == n_k - 1)
    def _():
        y = jnp.dot(agg_sc[...].astype(BF16), wl2_ref[...],
                    preferred_element_type=jnp.float32) + bl2_ref[...]
        y = _ssp(y)
        y = jnp.dot(y.astype(BF16), wl_ref[...],
                    preferred_element_type=jnp.float32) + bl_ref[...]
        h_sc[...] = h_sc[...] + y

    # ---- readout MLP + 'add' graph pooling at the very last grid step ---------
    @pl.when(jnp.logical_and(l == n_l - 1, k == n_k - 1))
    def _():
        y = jnp.dot(h_sc[...].astype(BF16), rw1_ref[...],
                    preferred_element_type=jnp.float32) + rb1_ref[...]
        y = _ssp(y)
        y = jnp.dot(y.astype(BF16), rw2_ref[...],
                    preferred_element_type=jnp.float32) + rb2_ref[...]       # [N, 1]
        graph_iota = jax.lax.broadcasted_iota(jnp.int32, (n_graphs, n_nodes), 0)
        batch_oh = (batch_ref[...] == graph_iota).astype(jnp.float32)        # [B, N]
        out_ref[...] = jnp.dot(batch_oh, y, preferred_element_type=jnp.float32)


# ----------------------------------------------------------------------------
# Forward pass wrapper (padding + BlockSpecs + single pallas_call)
# ----------------------------------------------------------------------------
def schnet_forward(z, pos, batch, edge_index, params, cutoff, num_graphs,
                   edge_tile=256):
    H = params["embedding"].shape[1]
    L, G, F = params["w1"].shape
    B = num_graphs

    # --- node padding to a multiple of 128 (lane axis of the one-hots and MXU K
    #     dim of the gather). Padded nodes: z=0 (zero embedding), batch=-1
    #     (excluded from pooling), never referenced by any edge.
    N = z.shape[0]
    N_pad = max(128, _round_up(N, 128))
    z_p = jnp.pad(z, (0, N_pad - N))
    batch_p = jnp.pad(batch.astype(jnp.int32), (0, N_pad - N), constant_values=-1)
    h0 = jnp.take(params["embedding"], z_p, axis=0).astype(jnp.float32)      # [N_pad, H]
    batch_idx = batch_p.reshape(1, N_pad)

    # --- edge scalars (glue): distance, cosine cutoff, gaussian smearing.
    # TODO(synk): these tiny [E]-wise ops stay in JAX glue rather than Mosaic.
    row, col = edge_index[0], edge_index[1]
    dvec = pos[row] - pos[col]
    edge_weight = jnp.sqrt(jnp.sum(dvec * dvec, axis=-1))
    C = 0.5 * (jnp.cos(edge_weight * PI / cutoff) + 1.0)
    ea = jnp.exp(params["coeff"] * (edge_weight[:, None] - params["offset"]) ** 2)  # [E, G]

    # --- edge padding to a multiple of the (128-aligned) edge tile; padded edges
    #     use C = 0 and src/tgt index -1 so they contribute nothing.
    E = int(row.shape[0])
    TE = max(128, _round_up(int(edge_tile), 128))
    E_pad = max(TE, _round_up(E, TE))
    pe = E_pad - E
    G_pad = _round_up(G, 128)
    ea = jnp.pad(ea, ((0, pe), (0, G_pad - G))).astype(BF16)                 # zero pad rows/cols
    C = jnp.pad(C, (0, pe)).reshape(E_pad, 1).astype(jnp.float32)
    src_idx = jnp.pad(row.astype(jnp.int32), (0, pe), constant_values=-1).reshape(E_pad, 1)
    tgt_idx = jnp.pad(col.astype(jnp.int32), (0, pe), constant_values=-1).reshape(1, E_pad)
    KE = E_pad // TE

    # --- weights: gaussian axis padded to 128 (padded rows of w1 are zero, and
    #     ea's padded columns are zero too -> inert); matmul weights pre-cast to
    #     bf16 (halves weight DMA + feeds the MXU bf16 path). Biases stay f32.
    W1 = jnp.pad(params["w1"], ((0, 0), (0, G_pad - G), (0, 0))).astype(BF16)
    W2 = params["w2"].astype(BF16)
    WL1 = params["wlin1"].astype(BF16)
    WL2 = params["wlin2"].astype(BF16)
    WL = params["wlin"].astype(BF16)

    # readout hidden (H//2) lane-padded to 128 (ssp(0) == 0 and padded rows of
    # ro_w2 are zero, so the padding is inert).
    F2 = params["ro_w1"].shape[1]
    F2_pad = _round_up(F2, 128)
    RW1 = jnp.pad(params["ro_w1"], ((0, 0), (0, F2_pad - F2))).astype(BF16)
    RB1 = jnp.pad(params["ro_b1"], ((0, 0), (0, F2_pad - F2)))
    RW2 = jnp.pad(params["ro_w2"], ((0, F2_pad - F2), (0, 0))).astype(BF16)
    RB2 = params["ro_b2"]

    # --- BlockSpecs
    def resident(arr):           # whole array resident, loaded once
        return pl.BlockSpec(arr.shape, lambda l, k: (0,) * arr.ndim)

    def per_layer(arr):          # stacked [L, ...] weights, layer dim squeezed
        return pl.BlockSpec((None,) + arr.shape[1:], lambda l, k: (l, 0, 0))

    in_specs = [
        resident(h0),
        pl.BlockSpec((TE, G_pad), lambda l, k: (k, 0)),   # ea (bf16, per edge chunk)
        pl.BlockSpec((TE, 1), lambda l, k: (k, 0)),       # cosine cutoff C
        pl.BlockSpec((TE, 1), lambda l, k: (k, 0)),       # src indices (column)
        pl.BlockSpec((1, TE), lambda l, k: (0, k)),       # tgt indices (lane-dense row)
        resident(batch_idx),
        per_layer(W1), per_layer(params["b1"]),
        per_layer(W2), per_layer(params["b2"]),
        per_layer(WL1), per_layer(WL2), per_layer(params["blin2"]),
        per_layer(WL), per_layer(params["blin"]),
        resident(RW1), resident(RB1), resident(RW2), resident(RB2),
    ]
    out_spec = pl.BlockSpec((B, 1), lambda l, k: (0, 0))

    kernel = functools.partial(_schnet_kernel, n_nodes=N_pad, n_graphs=B)

    out = pl.pallas_call(
        kernel,
        grid=(L, KE),
        in_specs=in_specs,
        out_specs=out_spec,
        out_shape=jax.ShapeDtypeStruct((B, 1), jnp.float32),
        scratch_shapes=[
            pltpu.VMEM((N_pad, H), jnp.float32),   # resident node features h
            pltpu.VMEM((N_pad, F), BF16),          # CFConv.lin1(h) (bf16, gather operand)
            pltpu.VMEM((N_pad, F), jnp.float32),   # scatter accumulator (f32)
        ],
        compiler_params=pltpu.CompilerParams(
            dimension_semantics=("arbitrary", "arbitrary"),
            vmem_limit_bytes=48 * 1024 * 1024),    # fits v7x's 64 MiB physical VMEM
    )(h0, ea, C, src_idx, tgt_idx, batch_idx,
      W1, params["b1"], W2, params["b2"],
      WL1, WL2, params["blin2"], WL, params["blin"],
      RW1, RB1, RW2, RB2)
    # dipole=False, mean/std=None, atomref=None, scale=None -> no extra terms
    return out


# ----------------------------------------------------------------------------
# Parameter initialization (stacked per-layer weights, mirrors reset_parameters)
# ----------------------------------------------------------------------------
def _xavier(key, fan_in, fan_out):
    bound = math.sqrt(6.0 / (fan_in + fan_out))
    return jax.random.uniform(key, (fan_in, fan_out), jnp.float32, -bound, bound)


def _xavier_stack(key, layers, fan_in, fan_out):
    return jnp.stack([_xavier(k, fan_in, fan_out) for k in jax.random.split(key, layers)])


def init_params(key, hidden, filters, gaussians, num_interactions, cutoff):
    ks = jax.random.split(key, 8)
    emb = jax.random.normal(ks[0], (100, hidden), jnp.float32)
    emb = emb.at[0].set(0.0)                       # padding_idx=0

    offset = jnp.linspace(0.0, cutoff, gaussians).astype(jnp.float32)
    coeff = -0.5 / float(offset[1] - offset[0]) ** 2
    L = num_interactions

    return {
        "embedding": emb,
        "offset": offset.reshape(1, gaussians),
        "coeff": coeff,
        # stacked [L, ...] interaction-block weights (stored as [in, out])
        "w1": _xavier_stack(ks[1], L, gaussians, filters),
        "b1": jnp.zeros((L, 1, filters), jnp.float32),
        "w2": _xavier_stack(ks[2], L, filters, filters),
        "b2": jnp.zeros((L, 1, filters), jnp.float32),
        "wlin1": _xavier_stack(ks[3], L, hidden, filters),   # CFConv.lin1 (no bias)
        "wlin2": _xavier_stack(ks[4], L, filters, hidden),   # CFConv.lin2
        "blin2": jnp.zeros((L, 1, hidden), jnp.float32),
        "wlin": _xavier_stack(ks[5], L, hidden, hidden),     # InteractionBlock.lin
        "blin": jnp.zeros((L, 1, hidden), jnp.float32),
        # readout
        "ro_w1": _xavier(ks[6], hidden, hidden // 2),
        "ro_b1": jnp.zeros((1, hidden // 2), jnp.float32),
        "ro_w2": _xavier(ks[7], hidden // 2, 1),
        "ro_b2": jnp.zeros((1, 1), jnp.float32),
    }


# ----------------------------------------------------------------------------
# Pure-JAX reference. matmul_dtype=f32 is the PyTorch-equivalent math;
# matmul_dtype=bf16 emulates the kernel's cast-at-the-dot-boundary scheme
# (f32 accumulation, f32 elementwise) so we can check the kernel tightly.
# ----------------------------------------------------------------------------
def reference_forward(z, pos, batch, edge_index, params, cutoff, num_graphs,
                      matmul_dtype=jnp.float32):
    md = matmul_dtype

    def mm(a, b):
        return jnp.dot(a.astype(md), b.astype(md), preferred_element_type=jnp.float32)

    def q(x):  # emulate the kernel's bf16 storage casts
        return x.astype(md).astype(jnp.float32)

    N = z.shape[0]
    h = params["embedding"][z].astype(jnp.float32)
    row, col = edge_index[0], edge_index[1]
    d = pos[row] - pos[col]
    ew = jnp.sqrt(jnp.sum(d * d, axis=-1))
    ea = jnp.exp(params["coeff"] * (ew[:, None] - params["offset"][0][None, :]) ** 2)
    C = 0.5 * (jnp.cos(ew * PI / cutoff) + 1.0)
    for i in range(params["w1"].shape[0]):
        t = _ssp(mm(ea, params["w1"][i]) + params["b1"][i][0])
        W = (mm(t, params["w2"][i]) + params["b2"][i][0]) * C[:, None]
        x1 = q(mm(h, params["wlin1"][i]))
        msg = q(x1[row] * W)
        agg = jax.ops.segment_sum(msg, col, num_segments=N)
        y = mm(agg, params["wlin2"][i]) + params["blin2"][i][0]
        y = _ssp(y)
        y = mm(y, params["wlin"][i]) + params["blin"][i][0]
        h = h + y
    y = _ssp(mm(h, params["ro_w1"]) + params["ro_b1"][0])
    y = mm(y, params["ro_w2"]) + params["ro_b2"][0]
    return jax.ops.segment_sum(y, batch, num_segments=num_graphs)


# ----------------------------------------------------------------------------
def build_edge_index(batch_np):
    # TODO(synk): radius_graph neighbor search has no clean Pallas equivalent;
    # with cutoff=10 and positions in the unit box, all same-molecule pairs are
    # within range, so the dense all-pairs (i != j, same batch) graph is exact.
    same = batch_np[:, None] == batch_np[None, :]
    neq = ~np.eye(batch_np.shape[0], dtype=bool)
    tgt, src = np.nonzero(same & neq)     # (i, j) pairs: src = j, tgt = i
    return jnp.array([src, tgt], dtype=jnp.int32)


if __name__ == "__main__":
    # SchNet default channel widths (lane-dense), small graphs + few layers.
    hidden_channels = 128
    num_filters = 128
    num_gaussians = 50          # padded to 128 inside the wrapper
    num_interactions = 3
    cutoff = 10.0

    atoms_per_graph = 20
    num_graphs = 2
    num_atoms = atoms_per_graph * num_graphs     # 40 atoms -> 760 edges

    key = jax.random.PRNGKey(0)
    k_params, k_z, k_pos = jax.random.split(key, 3)

    params = init_params(k_params, hidden_channels, num_filters,
                         num_gaussians, num_interactions, cutoff)

    z = jax.random.randint(k_z, (num_atoms,), 1, 10, dtype=jnp.int32)
    pos = jax.random.uniform(k_pos, (num_atoms, 3), jnp.float32)
    batch_np = np.repeat(np.arange(num_graphs, dtype=np.int32), atoms_per_graph)
    batch = jnp.asarray(batch_np)
    edge_index = build_edge_index(batch_np)

    # edge_tile=256 -> 760 edges pad to 768 and run as 3 MXU-filling edge chunks.
    out = schnet_forward(z, pos, batch, edge_index, params, cutoff, num_graphs,
                         edge_tile=256)
    out = jax.block_until_ready(out)

    # Tight check against a reference with the same bf16-at-the-dot casts.
    ref_bf16 = reference_forward(z, pos, batch, edge_index, params, cutoff,
                                 num_graphs, matmul_dtype=jnp.bfloat16)
    np.testing.assert_allclose(np.asarray(out), np.asarray(ref_bf16),
                               rtol=5e-3, atol=5e-3)

    # Coarse sanity check against the full-f32 (PyTorch-equivalent) math.
    ref_f32 = reference_forward(z, pos, batch, edge_index, params, cutoff,
                                num_graphs, matmul_dtype=jnp.float32)
    np.testing.assert_allclose(np.asarray(out), np.asarray(ref_f32),
                               rtol=1e-1, atol=1e-1)

    assert out.shape == (num_graphs, 1)
    print("KERNEL_OK")
</pallas_src>

<mosaic_0001>
module attributes {stable_mosaic.version = 11 : i64} {
  func.func @_schnet_kernel(%arg0: i32, %arg1: i32, %arg2: memref<128x128xf32, #tpu.memory_space<vmem>>, %arg3: memref<256x128xbf16, #tpu.memory_space<vmem>>, %arg4: memref<256x1xf32, #tpu.memory_space<vmem>>, %arg5: memref<256x1xi32, #tpu.memory_space<vmem>>, %arg6: memref<1x256xi32, #tpu.memory_space<vmem>>, %arg7: memref<1x128xi32, #tpu.memory_space<vmem>>, %arg8: memref<1x128x128xbf16, #tpu.memory_space<vmem>>, %arg9: memref<1x1x128xf32, #tpu.memory_space<vmem>>, %arg10: memref<1x128x128xbf16, #tpu.memory_space<vmem>>, %arg11: memref<1x1x128xf32, #tpu.memory_space<vmem>>, %arg12: memref<1x128x128xbf16, #tpu.memory_space<vmem>>, %arg13: memref<1x128x128xbf16, #tpu.memory_space<vmem>>, %arg14: memref<1x1x128xf32, #tpu.memory_space<vmem>>, %arg15: memref<1x128x128xbf16, #tpu.memory_space<vmem>>, %arg16: memref<1x1x128xf32, #tpu.memory_space<vmem>>, %arg17: memref<128x128xbf16, #tpu.memory_space<vmem>>, %arg18: memref<1x128xf32, #tpu.memory_space<vmem>>, %arg19: memref<128x1xbf16, #tpu.memory_space<vmem>>, %arg20: memref<1x1xf32, #tpu.memory_space<vmem>>, %arg21: memref<2x1xf32, #tpu.memory_space<vmem>>, %arg22: memref<128x128xf32, #tpu.memory_space<vmem>>, %arg23: memref<128x128xbf16, #tpu.memory_space<vmem>>, %arg24: memref<128x128xf32, #tpu.memory_space<vmem>>) attributes {dimension_semantics = [#tpu.dimension_semantics<arbitrary>, #tpu.dimension_semantics<arbitrary>], iteration_bounds = array<i64: 3, 3>, scalar_prefetch = 0 : i64, scratch_operands = 3 : i64, tpu.core_type = #tpu.core_type<tc>, window_params = [{pipeline_mode = #tpu.pipeline_mode<synchronous>, transform_indices = @transform_0, window_bounds = array<i64: 128, 128>}, {transform_indices = @transform_1, window_bounds = array<i64: 256, 128>}, {transform_indices = @transform_2, window_bounds = array<i64: 256, 1>}, {transform_indices = @transform_3, window_bounds = array<i64: 256, 1>}, {transform_indices = @transform_4, window_bounds = array<i64: 1, 256>}, {pipeline_mode = #tpu.pipeline_mode<synchronous>, transform_indices = @transform_5, window_bounds = array<i64: 1, 128>}, {transform_indices = @transform_6, window_bounds = array<i64: 1, 128, 128>}, {transform_indices = @transform_7, window_bounds = array<i64: 1, 1, 128>}, {transform_indices = @transform_8, window_bounds = array<i64: 1, 128, 128>}, {transform_indices = @transform_9, window_bounds = array<i64: 1, 1, 128>}, {transform_indices = @transform_10, window_bounds = array<i64: 1, 128, 128>}, {transform_indices = @transform_11, window_bounds = array<i64: 1, 128, 128>}, {transform_indices = @transform_12, window_bounds = array<i64: 1, 1, 128>}, {transform_indices = @transform_13, window_bounds = array<i64: 1, 128, 128>}, {transform_indices = @transform_14, window_bounds = array<i64: 1, 1, 128>}, {pipeline_mode = #tpu.pipeline_mode<synchronous>, transform_indices = @transform_15, window_bounds = array<i64: 128, 128>}, {pipeline_mode = #tpu.pipeline_mode<synchronous>, transform_indices = @transform_16, window_bounds = array<i64: 1, 128>}, {pipeline_mode = #tpu.pipeline_mode<synchronous>, transform_indices = @transform_17, window_bounds = array<i64: 128, 1>}, {pipeline_mode = #tpu.pipeline_mode<synchronous>, transform_indices = @transform_18, window_bounds = array<i64: 1, 1>}, {pipeline_mode = #tpu.pipeline_mode<synchronous>, transform_indices = @transform_19, window_bounds = array<i64: 2, 1>}]} {
    %c0_i32 = arith.constant 0 : i32
    %0 = arith.cmpi eq, %arg0, %c0_i32 : i32
    %c0_i32_0 = arith.constant 0 : i32
    %1 = arith.cmpi eq, %arg1, %c0_i32_0 : i32
    %2 = arith.andi %0, %1 : i1
    %3 = arith.extui %2 : i1 to i32
    %c0_i32_1 = arith.constant 0 : i32
    %4 = arith.cmpi ne, %3, %c0_i32_1 : i32
    scf.if %4 {
      %c0_39 = arith.constant 0 : index
      %c0_40 = arith.constant 0 : index
      %67 = vector.load %arg2[%c0_39, %c0_40] : memref<128x128xf32, #tpu.memory_space<vmem>>, vector<128x128xf32>
      %c0_41 = arith.constant 0 : index
      %c0_42 = arith.constant 0 : index
      %68 = vector.load %arg22[%c0_41, %c0_42] : memref<128x128xf32, #tpu.memory_space<vmem>>, vector<128x128xf32>
      tpu.vector_store %arg22[%c0_41, %c0_42], %67 {strides = array<i32>} : memref<128x128xf32, #tpu.memory_space<vmem>>, vector<128x128xf32>,
    } else {
    }
    %c0_i32_2 = arith.constant 0 : i32
    %5 = arith.cmpi eq, %arg1, %c0_i32_2 : i32
    %6 = arith.extui %5 : i1 to i32
    %c0_i32_3 = arith.constant 0 : i32
    %7 = arith.cmpi ne, %6, %c0_i32_3 : i32
    scf.if %7 {
      %c0_39 = arith.constant 0 : index
      %c0_40 = arith.constant 0 : index
      %67 = vector.load %arg22[%c0_39, %c0_40] : memref<128x128xf32, #tpu.memory_space<vmem>>, vector<128x128xf32>
      %68 = arith.truncf %67 : vector<128x128xf32> to vector<128x128xbf16>
      %c0_41 = arith.constant 0 : index
      %c0_42 = arith.constant 0 : index
      %c0_43 = arith.constant 0 : index
      %69 = vector.load %arg12[%c0_41, %c0_42, %c0_43] : memref<1x128x128xbf16, #tpu.memory_space<vmem>>, vector<1x128x128xbf16>
      %70 = vector.shape_cast %69 : vector<1x128x128xbf16> to vector<128x128xbf16>
      %cst_44 = arith.constant dense<0.000000e+00> : vector<128x128xf32>
      %71 = tpu.matmul %68, %70, %cst_44 {dimension_numbers = #tpu.dot_dimension_numbers<[1], [0], [0], [1], [0, 0, 1, 1], [], []>} : vector<128x128xbf16>, vector<128x128xbf16>, vector<128x128xf32> -> vector<128x128xf32>
      %72 = arith.truncf %71 : vector<128x128xf32> to vector<128x128xbf16>
      %c0_45 = arith.constant 0 : index
      %c0_46 = arith.constant 0 : index
      %73 = vector.load %arg23[%c0_45, %c0_46] : memref<128x128xbf16, #tpu.memory_space<vmem>>, vector<128x128xbf16>
      tpu.vector_store %arg23[%c0_45, %c0_46], %72 {strides = array<i32>} : memref<128x128xbf16, #tpu.memory_space<vmem>>, vector<128x128xbf16>,
      %cst_47 = arith.constant 0.000000e+00 : f32
      %74 = vector.broadcast %cst_47 : f32 to vector<128x128xf32>
      %c0_48 = arith.constant 0 : index
      %c0_49 = arith.constant 0 : index
      %75 = vector.load %arg24[%c0_48, %c0_49] : memref<128x128xf32, #tpu.memory_space<vmem>>, vector<128x128xf32>
      tpu.vector_store %arg24[%c0_48, %c0_49], %74 {strides = array<i32>} : memref<128x128xf32, #tpu.memory_space<vmem>>, vector<128x128xf32>,
    } else {
    }
    %c0 = arith.constant 0 : index
    %c0_4 = arith.constant 0 : index
    %8 = vector.load %arg3[%c0, %c0_4] : memref<256x128xbf16, #tpu.memory_space<vmem>>, vector<256x128xbf16>
    %c0_5 = arith.constant 0 : index
    %c0_6 = arith.constant 0 : index
    %c0_7 = arith.constant 0 : index
    %9 = vector.load %arg8[%c0_5, %c0_6, %c0_7] : memref<1x128x128xbf16, #tpu.memory_space<vmem>>, vector<1x128x128xbf16>
    %10 = vector.shape_cast %9 : vector<1x128x128xbf16> to vector<128x128xbf16>
    %cst = arith.constant dense<0.000000e+00> : vector<256x128xf32>
    %11 = tpu.matmul %8, %10, %cst {dimension_numbers = #tpu.dot_dimension_numbers<[1], [0], [0], [1], [0, 0, 1, 1], [], []>} : vector<256x128xbf16>, vector<128x128xbf16>, vector<256x128xf32> -> vector<256x128xf32>
    %c0_8 = arith.constant 0 : index
    %c0_9 = arith.constant 0 : index
    %c0_10 = arith.constant 0 : index
    %12 = vector.load %arg9[%c0_8, %c0_9, %c0_10] : memref<1x1x128xf32, #tpu.memory_space<vmem>>, vector<1x1x128xf32>
    %13 = vector.shape_cast %12 : vector<1x1x128xf32> to vector<1x128xf32>
    %14 = vector.broadcast %13 : vector<1x128xf32> to vector<256x128xf32>
    %15 = arith.addf %11, %14 : vector<256x128xf32>
    %cst_11 = arith.constant 0.000000e+00 : f32
    %16 = vector.broadcast %cst_11 : f32 to vector<256x128xf32>
    %17 = arith.maximumf %15, %16 : vector<256x128xf32>
    %18 = math.absf %15 : vector<256x128xf32>
    %cst_12 = arith.constant 0.000000e+00 : f32
    %19 = vector.broadcast %cst_12 : f32 to vector<256x128xf32>
    %20 = arith.subf %19, %18 : vector<256x128xf32>
    %21 = math.exp %20 : vector<256x128xf32>
    %22 = math.log1p %21 : vector<256x128xf32>
    %23 = arith.addf %17, %22 : vector<256x128xf32>
    %cst_13 = arith.constant 0.693147182 : f32
    %24 = vector.broadcast %cst_13 : f32 to vector<256x128xf32>
    %25 = arith.subf %23, %24 : vector<256x128xf32>
    %26 = arith.truncf %25 : vector<256x128xf32> to vector<256x128xbf16>
    %c0_14 = arith.constant 0 : index
    %c0_15 = arith.constant 0 : index
    %c0_16 = arith.constant 0 : index
    %27 = vector.load %arg10[%c0_14, %c0_15, %c0_16] : memref<1x128x128xbf16, #tpu.memory_space<vmem>>, vector<1x128x128xbf16>
    %28 = vector.shape_cast %27 : vector<1x128x128xbf16> to vector<128x128xbf16>
    %cst_17 = arith.constant dense<0.000000e+00> : vector<256x128xf32>
    %29 = tpu.matmul %26, %28, %cst_17 {dimension_numbers = #tpu.dot_dimension_numbers<[1], [0], [0], [1], [0, 0, 1, 1], [], []>} : vector<256x128xbf16>, vector<128x128xbf16>, vector<256x128xf32> -> vector<256x128xf32>
    %c0_18 = arith.constant 0 : index
    %c0_19 = arith.constant 0 : index
    %c0_20 = arith.constant 0 : index
    %30 = vector.load %arg11[%c0_18, %c0_19, %c0_20] : memref<1x1x128xf32, #tpu.memory_space<vmem>>, vector<1x1x128xf32>
    %31 = vector.shape_cast %30 : vector<1x1x128xf32> to vector<1x128xf32>
    %32 = vector.broadcast %31 : vector<1x128xf32> to vector<256x128xf32>
    %33 = arith.addf %29, %32 : vector<256x128xf32>
    %c0_21 = arith.constant 0 : index
    %c0_22 = arith.constant 0 : index
    %34 = vector.load %arg4[%c0_21, %c0_22] : memref<256x1xf32, #tpu.memory_space<vmem>>, vector<256x1xf32>
    %35 = vector.broadcast %34 : vector<256x1xf32> to vector<256x128xf32>
    %36 = arith.mulf %33, %35 : vector<256x128xf32>
    %37 = tpu.iota {dimensions = array<i32: 1>} : vector<256x128xi32>
    %c0_23 = arith.constant 0 : index
    %c0_24 = arith.constant 0 : index
    %38 = vector.load %arg5[%c0_23, %c0_24] : memref<256x1xi32, #tpu.memory_space<vmem>>, vector<256x1xi32>
    %39 = vector.broadcast %38 : vector<256x1xi32> to vector<256x128xi32>
    %40 = arith.cmpi eq, %39, %37 : vector<256x128xi32>
    %41 = arith.extui %40 : vector<256x128xi1> to vector<256x128xi32>
    %42 = arith.sitofp %41 : vector<256x128xi32> to vector<256x128xf32>
    %43 = arith.truncf %42 : vector<256x128xf32> to vector<256x128xbf16>
    %c0_25 = arith.constant 0 : index
    %c0_26 = arith.constant 0 : index
    %44 = vector.load %arg23[%c0_25, %c0_26] : memref<128x128xbf16, #tpu.memory_space<vmem>>, vector<128x128xbf16>
    %cst_27 = arith.constant dense<0.000000e+00> : vector<256x128xf32>
    %45 = tpu.matmul %43, %44, %cst_27 {dimension_numbers = #tpu.dot_dimension_numbers<[1], [0], [0], [1], [0, 0, 1, 1], [], []>} : vector<256x128xbf16>, vector<128x128xbf16>, vector<256x128xf32> -> vector<256x128xf32>
    %46 = arith.mulf %45, %36 : vector<256x128xf32>
    %47 = arith.truncf %46 : vector<256x128xf32> to vector<256x128xbf16>
    %48 = tpu.iota {dimensions = array<i32: 0>} : vector<128x256xi32>
    %c0_28 = arith.constant 0 : index
    %c0_29 = arith.constant 0 : index
    %49 = vector.load %arg6[%c0_28, %c0_29] : memref<1x256xi32, #tpu.memory_space<vmem>>, vector<1x256xi32>
    %50 = vector.broadcast %49 : vector<1x256xi32> to vector<128x256xi32>
    %51 = arith.cmpi eq, %50, %48 : vector<128x256xi32>
    %52 = arith.extui %51 : vector<128x256xi1> to vector<128x256xi32>
    %53 = arith.sitofp %52 : vector<128x256xi32> to vector<128x256xf32>
    %54 = arith.truncf %53 : vector<128x256xf32> to vector<128x256xbf16>
    %c0_30 = arith.constant 0 : index
    %c0_31 = arith.constant 0 : index
    %55 = vector.load %arg24[%c0_30, %c0_31] : memref<128x128xf32, #tpu.memory_space<vmem>>, vector<128x128xf32>
    %cst_32 = arith.constant dense<0.000000e+00> : vector<128x128xf32>
    %56 = tpu.matmul %54, %47, %cst_32 {dimension_numbers = #tpu.dot_dimension_numbers<[1], [0], [0], [1], [0, 0, 1, 1], [], []>} : vector<128x256xbf16>, vector<256x128xbf16>, vector<128x128xf32> -> vector<128x128xf32>
    %57 = arith.addf %55, %56 : vector<128x128xf32>
    %c0_33 = arith.constant 0 : index
    %c0_34 = arith.constant 0 : index
    %58 = vector.load %arg24[%c0_33, %c0_34] : memref<128x128xf32, #tpu.memory_space<vmem>>, vector<128x128xf32>
    tpu.vector_store %arg24[%c0_33, %c0_34], %57 {strides = array<i32>} : memref<128x128xf32, #tpu.memory_space<vmem>>, vector<128x128xf32>,
    %c2_i32 = arith.constant 2 : i32
    %59 = arith.cmpi eq, %arg1, %c2_i32 : i32
    %60 = arith.extui %59 : i1 to i32
    %c0_i32_35 = arith.constant 0 : i32
    %61 = arith.cmpi ne, %60, %c0_i32_35 : i32
    scf.if %61 {
      %c0_39 = arith.constant 0 : index
      %c0_40 = arith.constant 0 : index
      %67 = vector.load %arg24[%c0_39, %c0_40] : memref<128x128xf32, #tpu.memory_space<vmem>>, vector<128x128xf32>
      %68 = arith.truncf %67 : vector<128x128xf32> to vector<128x128xbf16>
      %c0_41 = arith.constant 0 : index
      %c0_42 = arith.constant 0 : index
      %c0_43 = arith.constant 0 : index
      %69 = vector.load %arg13[%c0_41, %c0_42, %c0_43] : memref<1x128x128xbf16, #tpu.memory_space<vmem>>, vector<1x128x128xbf16>
      %70 = vector.shape_cast %69 : vector<1x128x128xbf16> to vector<128x128xbf16>
      %cst_44 = arith.constant dense<0.000000e+00> : vector<128x128xf32>
      %71 = tpu.matmul %68, %70, %cst_44 {dimension_numbers = #tpu.dot_dimension_numbers<[1], [0], [0], [1], [0, 0, 1, 1], [], []>} : vector<128x128xbf16>, vector<128x128xbf16>, vector<128x128xf32> -> vector<128x128xf32>
      %c0_45 = arith.constant 0 : index
      %c0_46 = arith.constant 0 : index
      %c0_47 = arith.constant 0 : index
      %72 = vector.load %arg14[%c0_45, %c0_46, %c0_47] : memref<1x1x128xf32, #tpu.memory_space<vmem>>, vector<1x1x128xf32>
      %73 = vector.shape_cast %72 : vector<1x1x128xf32> to vector<1x128xf32>
      %74 = vector.broadcast %73 : vector<1x128xf32> to vector<128x128xf32>
      %75 = arith.addf %71, %74 : vector<128x128xf32>
      %cst_48 = arith.constant 0.000000e+00 : f32
      %76 = vector.broadcast %cst_48 : f32 to vector<128x128xf32>
      %77 = arith.maximumf %75, %76 : vector<128x128xf32>
      %78 = math.absf %75 : vector<128x128xf32>
      %cst_49 = arith.constant 0.000000e+00 : f32
      %79 = vector.broadcast %cst_49 : f32 to vector<128x128xf32>
      %80 = arith.subf %79, %78 : vector<128x128xf32>
      %81 = math.exp %80 : vector<128x128xf32>
      %82 = math.log1p %81 : vector<128x128xf32>
      %83 = arith.addf %77, %82 : vector<128x128xf32>
      %cst_50 = arith.constant 0.693147182 : f32
      %84 = vector.broadcast %cst_50 : f32 to vector<128x128xf32>
      %85 = arith.subf %83, %84 : vector<128x128xf32>
      %86 = arith.truncf %85 : vector<128x128xf32> to vector<128x128xbf16>
      %c0_51 = arith.constant 0 : index
      %c0_52 = arith.constant 0 : index
      %c0_53 = arith.constant 0 : index
      %87 = vector.load %arg15[%c0_51, %c0_52, %c0_53] : memref<1x128x128xbf16, #tpu.memory_space<vmem>>, vector<1x128x128xbf16>
      %88 = vector.shape_cast %87 : vector<1x128x128xbf16> to vector<128x128xbf16>
      %cst_54 = arith.constant dense<0.000000e+00> : vector<128x128xf32>
      %89 = tpu.matmul %86, %88, %cst_54 {dimension_numbers = #tpu.dot_dimension_numbers<[1], [0], [0], [1], [0, 0, 1, 1], [], []>} : vector<128x128xbf16>, vector<128x128xbf16>, vector<128x128xf32> -> vector<128x128xf32>
      %c0_55 = arith.constant 0 : index
      %c0_56 = arith.constant 0 : index
      %c0_57 = arith.constant 0 : index
      %90 = vector.load %arg16[%c0_55, %c0_56, %c0_57] : memref<1x1x128xf32, #tpu.memory_space<vmem>>, vector<1x1x128xf32>
      %91 = vector.shape_cast %90 : vector<1x1x128xf32> to vector<1x128xf32>
      %92 = vector.broadcast %91 : vector<1x128xf32> to vector<128x128xf32>
      %93 = arith.addf %89, %92 : vector<128x128xf32>
      %c0_58 = arith.constant 0 : index
      %c0_59 = arith.constant 0 : index
      %94 = vector.load %arg22[%c0_58, %c0_59] : memref<128x128xf32, #tpu.memory_space<vmem>>, vector<128x128xf32>
      %95 = arith.addf %94, %93 : vector<128x128xf32>
      %c0_60 = arith.constant 0 : index
      %c0_61 = arith.constant 0 : index
      %96 = vector.load %arg22[%c0_60, %c0_61] : memref<128x128xf32, #tpu.memory_space<vmem>>, vector<128x128xf32>
      tpu.vector_store %arg22[%c0_60, %c0_61], %95 {strides = array<i32>} : memref<128x128xf32, #tpu.memory_space<vmem>>, vector<128x128xf32>,
    } else {
    }
    %c2_i32_36 = arith.constant 2 : i32
    %62 = arith.cmpi eq, %arg0, %c2_i32_36 : i32
    %c2_i32_37 = arith.constant 2 : i32
    %63 = arith.cmpi eq, %arg1, %c2_i32_37 : i32
    %64 = arith.andi %62, %63 : i1
    %65 = arith.extui %64 : i1 to i32
    %c0_i32_38 = arith.constant 0 : i32
    %66 = arith.cmpi ne, %65, %c0_i32_38 : i32
    scf.if %66 {
      %c0_39 = arith.constant 0 : index
      %c0_40 = arith.constant 0 : index
      %67 = vector.load %arg22[%c0_39, %c0_40] : memref<128x128xf32, #tpu.memory_space<vmem>>, vector<128x128xf32>
      %68 = arith.truncf %67 : vector<128x128xf32> to vector<128x128xbf16>
      %c0_41 = arith.constant 0 : index
      %c0_42 = arith.constant 0 : index
      %69 = vector.load %arg17[%c0_41, %c0_42] : memref<128x128xbf16, #tpu.memory_space<vmem>>, vector<128x128xbf16>
      %cst_43 = arith.constant dense<0.000000e+00> : vector<128x128xf32>
      %70 = tpu.matmul %68, %69, %cst_43 {dimension_numbers = #tpu.dot_dimension_numbers<[1], [0], [0], [1], [0, 0, 1, 1], [], []>} : vector<128x128xbf16>, vector<128x128xbf16>, vector<128x128xf32> -> vector<128x128xf32>
      %c0_44 = arith.constant 0 : index
      %c0_45 = arith.constant 0 : index
      %71 = vector.load %arg18[%c0_44, %c0_45] : memref<1x128xf32, #tpu.memory_space<vmem>>, vector<1x128xf32>
      %72 = vector.broadcast %71 : vector<1x128xf32> to vector<128x128xf32>
      %73 = arith.addf %70, %72 : vector<128x128xf32>
      %cst_46 = arith.constant 0.000000e+00 : f32
      %74 = vector.broadcast %cst_46 : f32 to vector<128x128xf32>
      %75 = arith.maximumf %73, %74 : vector<128x128xf32>
      %76 = math.absf %73 : vector<128x128xf32>
      %cst_47 = arith.constant 0.000000e+00 : f32
      %77 = vector.broadcast %cst_47 : f32 to vector<128x128xf32>
      %78 = arith.subf %77, %76 : vector<128x128xf32>
      %79 = math.exp %78 : vector<128x128xf32>
      %80 = math.log1p %79 : vector<128x128xf32>
      %81 = arith.addf %75, %80 : vector<128x128xf32>
      %cst_48 = arith.constant 0.693147182 : f32
      %82 = vector.broadcast %cst_48 : f32 to vector<128x128xf32>
      %83 = arith.subf %81, %82 : vector<128x128xf32>
      %84 = arith.truncf %83 : vector<128x128xf32> to vector<128x128xbf16>
      %c0_49 = arith.constant 0 : index
      %c0_50 = arith.constant 0 : index
      %85 = vector.load %arg19[%c0_49, %c0_50] : memref<128x1xbf16, #tpu.memory_space<vmem>>, vector<128x1xbf16>
      %cst_51 = arith.constant dense<0.000000e+00> : vector<128x1xf32>
      %86 = tpu.matmul %84, %85, %cst_51 {dimension_numbers = #tpu.dot_dimension_numbers<[1], [0], [0], [1], [0, 0, 1, 1], [], []>} : vector<128x128xbf16>, vector<128x1xbf16>, vector<128x1xf32> -> vector<128x1xf32>
      %c0_52 = arith.constant 0 : index
      %c0_53 = arith.constant 0 : index
      %87 = vector.load %arg20[%c0_52, %c0_53] : memref<1x1xf32, #tpu.memory_space<vmem>>, vector<1x1xf32>
      %88 = vector.broadcast %87 : vector<1x1xf32> to vector<128x1xf32>
      %89 = arith.addf %86, %88 : vector<128x1xf32>
      %90 = tpu.iota {dimensions = array<i32: 0>} : vector<2x128xi32>
      %c0_54 = arith.constant 0 : index
      %c0_55 = arith.constant 0 : index
      %91 = vector.load %arg7[%c0_54, %c0_55] : memref<1x128xi32, #tpu.memory_space<vmem>>, vector<1x128xi32>
      %92 = vector.broadcast %91 : vector<1x128xi32> to vector<2x128xi32>
      %93 = arith.cmpi eq, %92, %90 : vector<2x128xi32>
      %94 = arith.extui %93 : vector<2x128xi1> to vector<2x128xi32>
      %95 = arith.sitofp %94 : vector<2x128xi32> to vector<2x128xf32>
      %cst_56 = arith.constant dense<0.000000e+00> : vector<2x1xf32>
      %96 = tpu.matmul %95, %89, %cst_56 {dimension_numbers = #tpu.dot_dimension_numbers<[1], [0], [0], [1], [0, 0, 1, 1], [], []>} : vector<2x128xf32>, vector<128x1xf32>, vector<2x1xf32> -> vector<2x1xf32>
      %c0_57 = arith.constant 0 : index
      %c0_58 = arith.constant 0 : index
      %97 = vector.load %arg21[%c0_57, %c0_58] : memref<2x1xf32, #tpu.memory_space<vmem>>, vector<2x1xf32>
      tpu.vector_store %arg21[%c0_57, %c0_58], %96 {strides = array<i32>} : memref<2x1xf32, #tpu.memory_space<vmem>>, vector<2x1xf32>,
    } else {
    }
    return
  }
  func.func @transform_0(%arg0: i32, %arg1: i32) -> (i32, i32) {
    %c0_i32 = arith.constant 0 : i32
    %c0_i32_0 = arith.constant 0 : i32
    %c0_i32_1 = arith.constant 0 : i32
    return %c0_i32, %c0_i32_0 : i32, i32
  }
  func.func @transform_1(%arg0: i32, %arg1: i32) -> (i32, i32) {
    %c0_i32 = arith.constant 0 : i32
    %c0_i32_0 = arith.constant 0 : i32
    return %arg1, %c0_i32 : i32, i32
  }
  func.func @transform_2(%arg0: i32, %arg1: i32) -> (i32, i32) {
    %c0_i32 = arith.constant 0 : i32
    %c0_i32_0 = arith.constant 0 : i32
    return %arg1, %c0_i32 : i32, i32
  }
  func.func @transform_3(%arg0: i32, %arg1: i32) -> (i32, i32) {
    %c0_i32 = arith.constant 0 : i32
    %c0_i32_0 = arith.constant 0 : i32
    return %arg1, %c0_i32 : i32, i32
  }
  func.func @transform_4(%arg0: i32, %arg1: i32) -> (i32, i32) {
    %c0_i32 = arith.constant 0 : i32
    %c0_i32_0 = arith.constant 0 : i32
    return %c0_i32, %arg1 : i32, i32
  }
  func.func @transform_5(%arg0: i32, %arg1: i32) -> (i32, i32) {
    %c0_i32 = arith.constant 0 : i32
    %c0_i32_0 = arith.constant 0 : i32
    %c0_i32_1 = arith.constant 0 : i32
    return %c0_i32, %c0_i32_0 : i32, i32
  }
  func.func @transform_6(%arg0: i32, %arg1: i32) -> (i32, i32, i32) {
    %c0_i32 = arith.constant 0 : i32
    %c0_i32_0 = arith.constant 0 : i32
    %c0_i32_1 = arith.constant 0 : i32
    return %arg0, %c0_i32, %c0_i32_0 : i32, i32, i32
  }
  func.func @transform_7(%arg0: i32, %arg1: i32) -> (i32, i32, i32) {
    %c0_i32 = arith.constant 0 : i32
    %c0_i32_0 = arith.constant 0 : i32
    %c0_i32_1 = arith.constant 0 : i32
    return %arg0, %c0_i32, %c0_i32_0 : i32, i32, i32
  }
  func.func @transform_8(%arg0: i32, %arg1: i32) -> (i32, i32, i32) {
    %c0_i32 = arith.constant 0 : i32
    %c0_i32_0 = arith.constant 0 : i32
    %c0_i32_1 = arith.constant 0 : i32
    return %arg0, %c0_i32, %c0_i32_0 : i32, i32, i32
  }
  func.func @transform_9(%arg0: i32, %arg1: i32) -> (i32, i32, i32) {
    %c0_i32 = arith.constant 0 : i32
    %c0_i32_0 = arith.constant 0 : i32
    %c0_i32_1 = arith.constant 0 : i32
    return %arg0, %c0_i32, %c0_i32_0 : i32, i32, i32
  }
  func.func @transform_10(%arg0: i32, %arg1: i32) -> (i32, i32, i32) {
    %c0_i32 = arith.constant 0 : i32
    %c0_i32_0 = arith.constant 0 : i32
    %c0_i32_1 = arith.constant 0 : i32
    return %arg0, %c0_i32, %c0_i32_0 : i32, i32, i32
  }
  func.func @transform_11(%arg0: i32, %arg1: i32) -> (i32, i32, i32) {
    %c0_i32 = arith.constant 0 : i32
    %c0_i32_0 = arith.constant 0 : i32
    %c0_i32_1 = arith.constant 0 : i32
    return %arg0, %c0_i32, %c0_i32_0 : i32, i32, i32
  }
  func.func @transform_12(%arg0: i32, %arg1: i32) -> (i32, i32, i32) {
    %c0_i32 = arith.constant 0 : i32
    %c0_i32_0 = arith.constant 0 : i32
    %c0_i32_1 = arith.constant 0 : i32
    return %arg0, %c0_i32, %c0_i32_0 : i32, i32, i32
  }
  func.func @transform_13(%arg0: i32, %arg1: i32) -> (i32, i32, i32) {
    %c0_i32 = arith.constant 0 : i32
    %c0_i32_0 = arith.constant 0 : i32
    %c0_i32_1 = arith.constant 0 : i32
    return %arg0, %c0_i32, %c0_i32_0 : i32, i32, i32
  }
  func.func @transform_14(%arg0: i32, %arg1: i32) -> (i32, i32, i32) {
    %c0_i32 = arith.constant 0 : i32
    %c0_i32_0 = arith.constant 0 : i32
    %c0_i32_1 = arith.constant 0 : i32
    return %arg0, %c0_i32, %c0_i32_0 : i32, i32, i32
  }
  func.func @transform_15(%arg0: i32, %arg1: i32) -> (i32, i32) {
    %c0_i32 = arith.constant 0 : i32
    %c0_i32_0 = arith.constant 0 : i32
    %c0_i32_1 = arith.constant 0 : i32
    return %c0_i32, %c0_i32_0 : i32, i32
  }
  func.func @transform_16(%arg0: i32, %arg1: i32) -> (i32, i32) {
    %c0_i32 = arith.constant 0 : i32
    %c0_i32_0 = arith.constant 0 : i32
    %c0_i32_1 = arith.constant 0 : i32
    return %c0_i32, %c0_i32_0 : i32, i32
  }
  func.func @transform_17(%arg0: i32, %arg1: i32) -> (i32, i32) {
    %c0_i32 = arith.constant 0 : i32
    %c0_i32_0 = arith.constant 0 : i32
    %c0_i32_1 = arith.constant 0 : i32
    return %c0_i32, %c0_i32_0 : i32, i32
  }
  func.func @transform_18(%arg0: i32, %arg1: i32) -> (i32, i32) {
    %c0_i32 = arith.constant 0 : i32
    %c0_i32_0 = arith.constant 0 : i32
    %c0_i32_1 = arith.constant 0 : i32
    return %c0_i32, %c0_i32_0 : i32, i32
  }
  func.func @transform_19(%arg0: i32, %arg1: i32) -> (i32, i32) {
    %c0_i32 = arith.constant 0 : i32
    %c0_i32_0 = arith.constant 0 : i32
    %c0_i32_1 = arith.constant 0 : i32
    return %c0_i32, %c0_i32_0 : i32, i32
  }
}

</mosaic_0001>

<bundles_post_ra>
// kernel: tpu_custom_call.1
= control target key start
LH: loop header
LB: loop body
LE: loop exit
PB: predicated region body
PF: predicated region fallthrough
CT: control target
= control target key end

     0   :  { %s5446_s20 = smov 0   ;;  %s5448_s21 = smov 0   ;;  %s6877_s0 = inlined_call_operand.vmem [shape: f32[128,128], index: 0, kind: input, shape index: {}]   ;;  %s6878_s1 = inlined_call_operand.vmem [shape: bf16[768,128], index: 1, kind: input, shape index: {}]   ;;  %s6879_s2 = inlined_call_operand.vmem [shape: f32[768,1], index: 2, kind: input, shape index: {}]   ;;  %s6880_s3 = inlined_call_operand.vmem [shape: s32[768,1], index: 3, kind: input, shape index: {}]   ;;  %s6881_s4 = inlined_call_operand.vmem [shape: s32[1,768], index: 4, kind: input, shape index: {}]   ;;  %s6882_s5 = inlined_call_operand.vmem [shape: s32[1,128], index: 5, kind: input, shape index: {}]   ;;  %s6883_s6 = inlined_call_operand.vmem [shape: bf16[3,128,128], index: 6, kind: input, shape index: {}]   ;;  %s6884_s7 = inlined_call_operand.vmem [shape: f32[3,1,128], index: 7, kind: input, shape index: {}]   ;;  %s6885_s8 = inlined_call_operand.vmem [shape: bf16[3,128,128], index: 8, kind: input, shape index: {}]   ;;  %s6886_s9 = inlined_call_operand.vmem [shape: f32[3,1,128], index: 9, kind: input, shape index: {}]   ;;  %s6887_s10 = inlined_call_operand.vmem [shape: bf16[3,128,128], index: 10, kind: input, shape index: {}]   ;;  %s6888_s11 = inlined_call_operand.vmem [shape: bf16[3,128,128], index: 11, kind: input, shape index: {}]   ;;  %s6889_s12 = inlined_call_operand.vmem [shape: f32[3,1,128], index: 12, kind: input, shape index: {}]   ;;  %s6890_s13 = inlined_call_operand.vmem [shape: bf16[3,128,128], index: 13, kind: input, shape index: {}]   ;;  %s6891_s14 = inlined_call_operand.vmem [shape: f32[3,1,128], index: 14, kind: input, shape index: {}]   ;;  %s6892_s15 = inlined_call_operand.vmem [shape: bf16[128,128], index: 15, kind: input, shape index: {}]   ;;  %s6893_s16 = inlined_call_operand.vmem [shape: f32[1,128], index: 16, kind: input, shape index: {}]   ;;  %s6894_s17 = inlined_call_operand.vmem [shape: bf16[128,1], index: 17, kind: input, shape index: {}]   ;;  %s6895_s18 = inlined_call_operand.<no memory space> [shape: f32[1,1], index: 18, kind: input, shape index: {}]   ;;  %s6896_s19 = inlined_call_operand.vmem [shape: f32[2,1], index: 19, kind: output, shape index: {}]  }
   0x1   :  { %6904 = sst [smem:[#allocation12_spill]] %s6877_s0  ;;  %v24_v0 = vstv %s6895_s18  ;;  %s5452_s22 = smov 0  }
   0x2   :  { %6905 = sst [smem:[#allocation13_spill]] %s6878_s1  ;;  %25 = vst [vmem:[#allocation5] sm:$0x1] %v24_v0  ;;  %s5450_s1 = smov 0  }
   0x3   :  { %6906 = sst [smem:[#allocation14_spill]] %s6879_s2  ;;  %s5454_s2 = smov 0  }
   0x4   :  { %6907 = sst [smem:[#allocation15_spill]] %s6880_s3 }
   0x5   :  { %6908 = sst [smem:[#allocation16_spill]] %s6882_s5 }
   0x6   :  { %6909 = sst [smem:[#allocation17_spill]] %s6883_s6 }
   0x7   :  { %6910 = sst [smem:[#allocation18_spill]] %s6884_s7 }
   0x8   :  { %6911 = sst [smem:[#allocation19_spill]] %s6885_s8 }
   0x9   :  { %6912 = sst [smem:[#allocation20_spill]] %s6886_s9 }
   0xa   :  { %6913 = sst [smem:[#allocation21_spill]] %s6887_s10 }
   0xb   :  { %6914 = sst [smem:[#allocation22_spill]] %s6888_s11 }
   0xc   :  { %6915 = sst [smem:[#allocation23_spill]] %s6892_s15 }
   0xd   :  { %6916 = sst [smem:[#allocation24_spill]] %s6893_s16 }
   0xe   :  { %6917 = sst [smem:[#allocation25_spill]] %s6894_s17 }
   0xf   :  { %6918 = sst [smem:[#allocation26_spill]] %s6896_s19 }
  0x10 LB: > { %6919 = sst [smem:[#allocation6_spill]] %s5325_s21  ;;  %s40_s18 = sadd.s32 1, %s5329_s1  ;;  %s5337_s2 = sphi %s5454_s2, %s31_s2   ;;  %s5333_s22 = sphi %s5452_s22, %s7009_s22   ;;  %s5329_s1 = sphi %s5450_s1, %s7008_s1   ;;  %s5325_s21 = sphi %s5448_s21, %s7007_s21   ;;  %s5321_s20 = sphi %s5446_s20, %s7006_s20  }
  0x11   : > { %6920 = sst [smem:[#allocation7_spill]] %s5329_s1  ;;  %s43_s23 = sadd.s32 1, %s5333_s22 }
  0x12   : > { %6921 = sst [smem:[#allocation8_spill]] %s5333_s22  ;;  %p41_p0 = scmp.ge.s32.totalorder %s40_s18, 3 }
  0x13   : > { %6922 = sst [smem:[#allocation9_spill]] %s5337_s2  ;;  %p4263_p1 = scmp.ge.s32.totalorder %s5337_s2, 1 }
  0x14   : > { %p661_p2 = scmp.lt.s32.totalorder %s5337_s2, 10  ;;  %s7011_s18 = smov (%p41_p0, %s40_s18), 0 }
  0x15   : > { %6923 = sst [smem:[#allocation10_spill]] %s7011_s18  ;;  %s7013_s23 = smov (!%p41_p0, %s43_s23), %s5333_s22 }
  0x16   : > { %p662_p3 = pnand %p4263_p1, %p661_p2  ;;  %p45_p4 = scmp.ge.s32.totalorder %s7013_s23, 3 }
  0x17   : > { %s4264_s24 = sshll.u32 (!%p662_p3), %s5321_s20, 5  ;;  %s4270_s25 = sshll.u32 (!%p662_p3), %s5321_s20, 1 }
  0x18   : > { %s7015_s23 = smov (%p45_p4, %s7013_s23), 0  ;;  %665 = sbr.rel (%p662_p3) target bundleno = 2102 (0x836), region = 96 }
  0x19   : > { %6924 = sst [smem:[#allocation11_spill]] %s7015_s23  ;;  %p764_p5 = scmp.lt.s32.totalorder (!%p662_p3), %s4264_s24, 95 }
  0x1a   : > { %p782_p6 = scmp.lt.s32.totalorder (!%p662_p3), %s4270_s25, 5  ;;  %p786_p7 = scmp.lt.s32.totalorder (!%p662_p3), %s5325_s21, 2 }
  0x1b   : > { %s6925_s29 = sld [smem:[#allocation13_spill]] (!%p662_p3)  ;;  %p823_p8 = scmp.eq.s32.totalorder (!%p662_p3), %s5325_s21, 0 }
  0x1c   : > { %s6926_s18 = sld [smem:[#allocation14_spill]] (!%p662_p3)  ;;  %p824_p9 = scmp.eq.s32.totalorder (!%p662_p3), %s5321_s20, 0 }
  0x1d   : > { %s7017_s24 = smov (!%p764_p5, %s4264_s24), 95  ;;  %s7019_s25 = smov (!%p782_p6, %s4270_s25), 5 }
  0x1e   : > { %s4265_s3 = sshll.u32 %s7017_s24, 2  ;;  %s4267_s26 = sshll.u32 %s7017_s24, 3 }
  0x1f   : > { %s6927_s19 = sld [smem:[#allocation15_spill]]  ;;  %p825_p10 = pnand %p824_p9, %p823_p8 }
  0x20   : > { %s5505_s24 = scalar_select %p786_p7, %s5325_s21, 2 }
  0x21   : > { %s5488_s0 = scalar_lea.vmem %s6925_s29, %s4265_s3  ;;  %s6928_s7 = sld [smem:[#allocation18_spill]] }
  0x22   : > { %s5493_s22 = scalar_lea.vmem %s6926_s18, %s4267_s26  ;;  %s4799_s18 = sshll.u32 %s5505_s24, 6 }
  0x23   : > { %s6929_s6 = sld [smem:[#allocation17_spill]]  ;;  %s814_s17 = scalar_lea.vmem %s6889_s12, %s5505_s24 }
  0x24   : > { %s6930_s8 = sld [smem:[#allocation19_spill]]  ;;  %s5549_s28 = scalar_lea.vmem %s6890_s13, %s4799_s18 }
  0x25   : > { %s5498_s5 = scalar_lea.vmem %s6927_s19, %s4267_s26  ;;  %s6931_s9 = sld [smem:[#allocation20_spill]] }
  0x26   : > { %s6932_s10 = sld [smem:[#allocation21_spill]]  ;;  %s822_s15 = scalar_lea.vmem %s6891_s14, %s5505_s24 }
  0x27   : > { %s5514_s1 = scalar_lea.vmem %s6928_s7, %s5505_s24  ;;  %s6933_s11 = sld [smem:[#allocation22_spill]] }
  0x28   : > { %s6934_s7 = sld [smem:[#allocation12_spill]] (!%p825_p10) }
  0x29   : > { %s5519_s16 = scalar_lea.vmem %s6929_s6, %s4799_s18  ;;  %828 = sbr.rel (%p825_p10) target bundleno = 63 (0x3f), region = 100 }
  0x2a   : > { %s5524_s27 = scalar_lea.vmem %s6930_s8, %s4799_s18 }
  0x2b   : > { %s5530_s30 = scalar_lea.vmem %s6931_s9, %s5505_s24 }
  0x2c   : > { %s5535_s23 = scalar_lea.vmem %s6932_s10, %s4799_s18 }
  0x2d   : > { %s5540_s19 = scalar_lea.vmem %s6933_s11, %s4799_s18 }
  0x2e   : > { %v829_v1 = vld [vmem:[%s6934_s7] sm:$0xff]  ;;  %v830_v2 = vld [vmem:[%s6934_s7 + $0x8] sm:$0xff]  ;;  %v831_v3 = vld [vmem:[%s6934_s7 + $0x10] sm:$0xff] }
  0x2f   : > { %845 = vst [vmem:[#allocation2 + $0x30] sm:$0xff] %v829_v1  ;;  %v832_v4 = vld [vmem:[%s6934_s7 + $0x18] sm:$0xff]  ;;  %v833_v5 = vld [vmem:[%s6934_s7 + $0x20] sm:$0xff]  ;;  %v834_v6 = vld [vmem:[%s6934_s7 + $0x28] sm:$0xff] }
  0x30   : > { %846 = vst [vmem:[#allocation2] sm:$0xff] %v830_v2  ;;  %v835_v7 = vld [vmem:[%s6934_s7 + $0x30] sm:$0xff]  ;;  %v836_v8 = vld [vmem:[%s6934_s7 + $0x38] sm:$0xff]  ;;  %v837_v9 = vld [vmem:[%s6934_s7 + $0x40] sm:$0xff] }
  0x31   : > { %847 = vst [vmem:[#allocation2 + $0x58] sm:$0xff] %v831_v3  ;;  %v838_v10 = vld [vmem:[%s6934_s7 + $0x48] sm:$0xff]  ;;  %v839_v11 = vld [vmem:[%s6934_s7 + $0x50] sm:$0xff]  ;;  %v840_v12 = vld [vmem:[%s6934_s7 + $0x58] sm:$0xff] }
  0x32   : > { %848 = vst [vmem:[#allocation2 + $0x18] sm:$0xff] %v832_v4  ;;  %v841_v13 = vld [vmem:[%s6934_s7 + $0x60] sm:$0xff]  ;;  %v842_v14 = vld [vmem:[%s6934_s7 + $0x68] sm:$0xff]  ;;  %v843_v15 = vld [vmem:[%s6934_s7 + $0x70] sm:$0xff] }
  0x33   : > { %849 = vst [vmem:[#allocation2 + $0x50] sm:$0xff] %v833_v5  ;;  %v844_v16 = vld [vmem:[%s6934_s7 + $0x78] sm:$0xff] }
  0x34   : > { %850 = vst [vmem:[#allocation2 + $0x68] sm:$0xff] %v834_v6 }
  0x35   : > { %851 = vst [vmem:[#allocation2 + $0x8] sm:$0xff] %v835_v7 }
  0x36   : > { %852 = vst [vmem:[#allocation2 + $0x48] sm:$0xff] %v836_v8 }
  0x37   : > { %853 = vst [vmem:[#allocation2 + $0x40] sm:$0xff] %v837_v9 }
  0x38   : > { %854 = vst [vmem:[#allocation2 + $0x20] sm:$0xff] %v838_v10 }
  0x39   : > { %855 = vst [vmem:[#allocation2 + $0x10] sm:$0xff] %v839_v11 }
  0x3a   : > { %856 = vst [vmem:[#allocation2 + $0x38] sm:$0xff] %v840_v12 }
  0x3b   : > { %857 = vst [vmem:[#allocation2 + $0x60] sm:$0xff] %v841_v13 }
  0x3c   : > { %858 = vst [vmem:[#allocation2 + $0x70] sm:$0xff] %v842_v14 }
  0x3d   : > { %859 = vst [vmem:[#allocation2 + $0x78] sm:$0xff] %v843_v15 }
  0x3e   : > { %860 = vst [vmem:[#allocation2 + $0x28] sm:$0xff] %v844_v16 }
  0x3f PF: > { %p4281_p11 = scmp.ne.s32.totalorder %s5321_s20, 0 }
  0x41   : > { %863 = sbr.rel (%p4281_p11) target bundleno = 263 (0x107), region = 104 }
  0x46   : > { %v4811_v17 = vld [vmem:[%s5535_s23 + $0x38] sm:$0xff]  ;;  %v4810_v18 = vld [vmem:[%s5535_s23 + $0x30] sm:$0xff]  ;;  %v4809_v19 = vld [vmem:[%s5535_s23 + $0x28] sm:$0xff]  ;;  %v5339_v51 = vmov 0.0  }
  0x47   : > { %952 = vmatpush.bf16.msra.mxu0 %v4811_v17  ;;  %4931 = vmatpush.bf16.msra.mxu1 %v4811_v17  ;;  %v4808_v20 = vld [vmem:[%s5535_s23 + $0x20] sm:$0xff]  ;;  %v4807_v21 = vld [vmem:[%s5535_s23 + $0x18] sm:$0xff]  ;;  %v4806_v22 = vld [vmem:[%s5535_s23 + $0x10] sm:$0xff]  ;;  %1033 = vst [vmem:[#allocation4 + $0x30] sm:$0xff] %v5339_v51 }
  0x48   : > { %4932 = vmatpush.bf16.msra.mxu2 %v4811_v17  ;;  %4933 = vmatpush.bf16.msra.mxu3 %v4811_v17  ;;  %v4805_v23 = vld [vmem:[%s5535_s23 + $0x8] sm:$0xff]  ;;  %v4804_v24 = vld [vmem:[%s5535_s23] sm:$0xff]  ;;  %v864_v25 = vld [vmem:[#allocation2 + $0x30] sm:$0xff]  ;;  %1034 = vst [vmem:[#allocation4] sm:$0xff] %v5339_v51 }
  0x49   : > { %v865_v26 = vld [vmem:[#allocation2] sm:$0xff]  ;;  %v868_v27 = vld [vmem:[#allocation2 + $0x50] sm:$0xff]  ;;  %v869_v28 = vld [vmem:[#allocation2 + $0x68] sm:$0xff]  ;;  %1035 = vst [vmem:[#allocation4 + $0x40] sm:$0xff] %v5339_v51 }
  0x4a   : > { %v872_v29 = vld [vmem:[#allocation2 + $0x40] sm:$0xff]  ;;  %v877_v32 = vld [vmem:[#allocation2 + $0x70] sm:$0xff]  ;;  %v880_v33 = vpack.c.bf16 %v865_v26, %v864_v25  ;;  %v882_v34 = vpack.c.bf16 %v869_v28, %v868_v27  ;;  %v866_v37 = vld [vmem:[#allocation2 + $0x58] sm:$0xff]  ;;  %1036 = vst [vmem:[#allocation4 + $0x58] sm:$0xff] %v5339_v51 }
  0x4b   : > { %953 = vmatpush.bf16.msra.mxu0 %v4810_v18  ;;  %4934 = vmatpush.bf16.msra.mxu1 %v4810_v18  ;;  %v873_v30 = vld [vmem:[#allocation2 + $0x20] sm:$0xff]  ;;  %v867_v38 = vld [vmem:[#allocation2 + $0x18] sm:$0xff]  ;;  %v870_v39 = vld [vmem:[#allocation2 + $0x8] sm:$0xff]  ;;  %1037 = vst [vmem:[#allocation4 + $0x8] sm:$0xff] %v5339_v51 }
  0x4c   : > { %4935 = vmatpush.bf16.msra.mxu2 %v4810_v18  ;;  %4936 = vmatpush.bf16.msra.mxu3 %v4810_v18  ;;  %v876_v31 = vld [vmem:[#allocation2 + $0x60] sm:$0xff]  ;;  %v884_v35 = vpack.c.bf16 %v873_v30, %v872_v29  ;;  %v871_v40 = vld [vmem:[#allocation2 + $0x48] sm:$0xff]  ;;  %v874_v41 = vld [vmem:[#allocation2 + $0x10] sm:$0xff]  ;;  %v881_v45 = vpack.c.bf16 %v867_v38, %v866_v37  ;;  %1038 = vst [vmem:[#allocation4 + $0x28] sm:$0xff] %v5339_v51 }
  0x4d   : > { %v886_v36 = vpack.c.bf16 %v877_v32, %v876_v31  ;;  %v875_v42 = vld [vmem:[#allocation2 + $0x38] sm:$0xff]  ;;  %v879_v44 = vld [vmem:[#allocation2 + $0x28] sm:$0xff]  ;;  %v883_v46 = vpack.c.bf16 %v871_v40, %v870_v39  ;;  %1039 = vst [vmem:[#allocation4 + $0x38] sm:$0xff] %v5339_v51 }
  0x4e   : > { %v878_v43 = vld [vmem:[#allocation2 + $0x78] sm:$0xff]  ;;  %v885_v47 = vpack.c.bf16 %v875_v42, %v874_v41  ;;  %1040 = vst [vmem:[#allocation4 + $0x20] sm:$0xff] %v5339_v51 }
  0x4f   : > { %954 = vmatpush.bf16.msra.mxu0 %v4809_v19  ;;  %4937 = vmatpush.bf16.msra.mxu1 %v4809_v19  ;;  %v887_v48 = vpack.c.bf16 %v879_v44, %v878_v43  ;;  %1041 = vst [vmem:[#allocation4 + $0x78] sm:$0xff] %v5339_v51 }
  0x50   : > { %4938 = vmatpush.bf16.msra.mxu2 %v4809_v19  ;;  %4939 = vmatpush.bf16.msra.mxu3 %v4809_v19  ;;  %1042 = vst [vmem:[#allocation4 + $0x50] sm:$0xff] %v5339_v51 }
  0x51   : > { %1043 = vst [vmem:[#allocation4 + $0x18] sm:$0xff] %v5339_v51 }
  0x52   : > { %1044 = vst [vmem:[#allocation4 + $0x70] sm:$0xff] %v5339_v51 }
  0x53   : > { %955 = vmatpush.bf16.msra.mxu0 %v4808_v20  ;;  %4940 = vmatpush.bf16.msra.mxu1 %v4808_v20  ;;  %1045 = vst [vmem:[#allocation4 + $0x60] sm:$0xff] %v5339_v51 }
  0x54   : > { %4941 = vmatpush.bf16.msra.mxu2 %v4808_v20  ;;  %4942 = vmatpush.bf16.msra.mxu3 %v4808_v20  ;;  %1046 = vst [vmem:[#allocation4 + $0x10] sm:$0xff] %v5339_v51 }
  0x55   : > { %1047 = vst [vmem:[#allocation4 + $0x68] sm:$0xff] %v5339_v51 }
  0x56   : > { %1048 = vst [vmem:[#allocation4 + $0x48] sm:$0xff] %v5339_v51 }
  0x57   : > { %956 = vmatpush.bf16.msra.mxu0 %v4807_v21  ;;  %4943 = vmatpush.bf16.msra.mxu1 %v4807_v21 }
  0x58   : > { %4944 = vmatpush.bf16.msra.mxu2 %v4807_v21  ;;  %4945 = vmatpush.bf16.msra.mxu3 %v4807_v21 }
  0x5b   : > { %957 = vmatpush.bf16.msra.mxu0 %v4806_v22  ;;  %4946 = vmatpush.bf16.msra.mxu1 %v4806_v22 }
  0x5c   : > { %4947 = vmatpush.bf16.msra.mxu2 %v4806_v22  ;;  %4948 = vmatpush.bf16.msra.mxu3 %v4806_v22 }
  0x5f   : > { %958 = vmatpush.bf16.msra.mxu0 %v4805_v23  ;;  %4949 = vmatpush.bf16.msra.mxu1 %v4805_v23 }
  0x60   : > { %4950 = vmatpush.bf16.msra.mxu2 %v4805_v23  ;;  %4951 = vmatpush.bf16.msra.mxu3 %v4805_v23 }
  0x63   : > { %959 = vmatpush.bf16.msra.mxu0 %v4804_v24  ;;  %4952 = vmatpush.bf16.msra.mxu1 %v4804_v24 }
  0x64   : > { %4953 = vmatpush.bf16.msra.mxu2 %v4804_v24  ;;  %4954 = vmatpush.bf16.msra.mxu3 %v4804_v24 }
  0x66   : > { %960 = vmatmul.bf16.vlgmr.msra.gmra.mxu0 %v880_v33  ;;  %970 = vmatmul.bf16.vlgmr.msra.gmra.mxu1 %v882_v34 }
  0x67   : > { %980 = vmatmul.bf16.vlgmr.msra.gmra.mxu2 %v884_v35  ;;  %990 = vmatmul.bf16.vlgmr.msra.gmra.mxu3 %v886_v36 }
  0x76   : > { %965 = vmatmul.bf16.gmra.mxu0 %v881_v45  ;;  %975 = vmatmul.bf16.gmra.mxu1 %v883_v46 }
  0x77   : > { %985 = vmatmul.bf16.gmra.mxu2 %v885_v47  ;;  %995 = vmatmul.bf16.gmra.mxu3 %v887_v48 }
  0xe3   : > { %v961_v49 = vpop.f32.mrf.mxu0  ;;  %v971_v50 = vpop.f32.mrf.mxu1 }
  0xea   : > { %v981_v52 = vpop.f32.mrf.mxu2  ;;  %v991_v53 = vpop.f32.mrf.mxu3 }
  0xeb   : > { %v963_v54 = vpop.f32.mrf.mxu0  ;;  %v973_v55 = vpop.f32.mrf.mxu1 }
  0xec   : > { %v4887_v56 = vpack.c.bf16 %v963_v54, %v961_v49  ;;  %v4897_v57 = vpack.c.bf16 %v973_v55, %v971_v50 }
  0xee   : > { %4888 = vst [vmem:[#allocation3 + $0x28] sm:$0xff] %v4887_v56  }
  0xef   : > { %4925 = vst [vmem:[#allocation3 + $0x10] sm:$0xff] %v4897_v57  }
  0xf2   : > { %v983_v58 = vpop.f32.mrf.mxu2  ;;  %v993_v59 = vpop.f32.mrf.mxu3 }
  0xf3   : > { %v4907_v60 = vpack.c.bf16 %v983_v58, %v981_v52  ;;  %v4917_v61 = vpack.c.bf16 %v993_v59, %v991_v53  ;;  %v966_v62 = vpop.f32.mrf.mxu0  ;;  %v976_v63 = vpop.f32.mrf.mxu1 }
  0xf5   : > { %4927 = vst [vmem:[#allocation3 + $0x18] sm:$0xff] %v4907_v60  }
  0xf6   : > { %4929 = vst [vmem:[#allocation3 + $0x38] sm:$0xff] %v4917_v61  }
  0xfa   : > { %v986_v0 = vpop.f32.mrf.mxu2  ;;  %v996_v1 = vpop.f32.mrf.mxu3 }
  0xfb   : > { %v968_v2 = vpop.f32.mrf.mxu0  ;;  %v978_v3 = vpop.f32.mrf.mxu1 }
  0xfc   : > { %v4892_v4 = vpack.c.bf16 %v968_v2, %v966_v62  ;;  %v4902_v5 = vpack.c.bf16 %v978_v3, %v976_v63 }
  0xfe   : > { %4924 = vst [vmem:[#allocation3] sm:$0xff] %v4892_v4  }
  0xff   : > { %4926 = vst [vmem:[#allocation3 + $0x20] sm:$0xff] %v4902_v5  }
 0x102   : > { %v988_v6 = vpop.f32.mrf.mxu2  ;;  %v998_v7 = vpop.f32.mrf.mxu3 }
 0x103   : > { %v4912_v8 = vpack.c.bf16 %v988_v6, %v986_v0  ;;  %v4922_v9 = vpack.c.bf16 %v998_v7, %v996_v1 }
 0x105   : > { %4928 = vst [vmem:[#allocation3 + $0x8] sm:$0xff] %v4912_v8  }
 0x106   : > { %4930 = vst [vmem:[#allocation3 + $0x30] sm:$0xff] %v4922_v9  }
 0x107 PF: > { %v2249_v10 = vld [vmem:[%s5498_s5 + $0x20] sm:$0xff]  ;;  %v2247_v11 = vld [vmem:[%s5498_s5 + $0x10] sm:$0xff]  ;;  %v5340_v13 = vmov 0   ;;  %v4835_v14 = vld [vmem:[%s5519_s16 + $0x38] sm:$0xff]  ;;  %p2964_p12 = scmp.eq.s32.totalorder %s5321_s20, 2  ;;  %p4634_p13 = scmp.ne.s32.totalorder %s5321_s20, 2 }
 0x108   : > { %v2245_v12 = vld [vmem:[%s5498_s5] sm:$0xff]  ;;  %5033 = vset.pattern.permute.xlu2 %v5340_v13  ;;  %5032 = vset.pattern.permute.xlu1 %v5340_v13  ;;  %v4834_v15 = vld [vmem:[%s5519_s16 + $0x30] sm:$0xff]  ;;  %v2250_v16 = vld [vmem:[%s5498_s5 + $0x28] sm:$0xff] }
 0x109   : > { %5031 = vset.pattern.permute.xlu0 %v5340_v13  ;;  %2290 = vperm.xlu2 %5033, %v2249_v10   ;;  %v2248_v17 = vld [vmem:[%s5498_s5 + $0x18] sm:$0xff]  ;;  %v2246_v18 = vld [vmem:[%s5498_s5 + $0x8] sm:$0xff]  ;;  %v4832_v20 = vld [vmem:[%s5519_s16 + $0x20] sm:$0xff] }
 0x10a   : > { %2284 = vperm.xlu1 %5032, %v2247_v11   ;;  %2278 = vperm.xlu0 %5031, %v2245_v12   ;;  %v4833_v19 = vld [vmem:[%s5519_s16 + $0x28] sm:$0xff]  ;;  %v2253_v21 = vld [vmem:[%s5498_s5 + $0x40] sm:$0xff]  ;;  %v2252_v22 = vld [vmem:[%s5498_s5 + $0x38] sm:$0xff] }
 0x10b   : > { %1245 = vmatpush.bf16.msra.mxu0 %v4835_v14  ;;  %v2251_v23 = vld [vmem:[%s5498_s5 + $0x30] sm:$0xff]  ;;  %v4831_v24 = vld [vmem:[%s5519_s16 + $0x18] sm:$0xff]  ;;  %v2254_v28 = vld [vmem:[%s5498_s5 + $0x48] sm:$0xff]  ;;  %v2243_v14 = vlaneseq }
 0x10c   : > { %v4830_v25 = vld [vmem:[%s5519_s16 + $0x10] sm:$0xff]  ;;  %v2256_v26 = vld [vmem:[%s5498_s5 + $0x58] sm:$0xff]  ;;  %v4829_v29 = vld [vmem:[%s5519_s16 + $0x8] sm:$0xff] }
 0x10d   : > { %v2255_v27 = vld [vmem:[%s5498_s5 + $0x50] sm:$0xff]  ;;  %v4828_v30 = vld [vmem:[%s5519_s16] sm:$0xff]  ;;  %v2258_v32 = vld [vmem:[%s5498_s5 + $0x68] sm:$0xff] }
 0x10e   : > { %v2259_v31 = vld [vmem:[%s5498_s5 + $0x70] sm:$0xff]  ;;  %v2257_v33 = vld [vmem:[%s5498_s5 + $0x60] sm:$0xff]  ;;  %v2262_v35 = vld [vmem:[%s5498_s5 + $0x88] sm:$0xff] }
 0x10f   : > { %1246 = vmatpush.bf16.msra.mxu0 %v4834_v15  ;;  %v4812_v34 = vld [vmem:[%s5488_s0] sm:$0xff]  ;;  %v2260_v37 = vld [vmem:[%s5498_s5 + $0x78] sm:$0xff]  ;;  %v2263_v40 = vld [vmem:[%s5498_s5 + $0x90] sm:$0xff] }
 0x110   : > { %v2261_v36 = vld [vmem:[%s5498_s5 + $0x80] sm:$0xff]  ;;  %v2264_v39 = vld [vmem:[%s5498_s5 + $0x98] sm:$0xff]  ;;  %v4813_v41 = vld [vmem:[%s5488_s0 + $0x8] sm:$0xff] }
 0x111   : > { %2293 = vperm.xlu2 %5033, %v2250_v16   ;;  %v2265_v38 = vld [vmem:[%s5498_s5 + $0xa0] sm:$0xff]  ;;  %v2268_v42 = vld [vmem:[%s5498_s5 + $0xb8] sm:$0xff]  ;;  %v2267_v43 = vld [vmem:[%s5498_s5 + $0xb0] sm:$0xff] }
 0x112   : > { %2287 = vperm.xlu1 %5032, %v2248_v17   ;;  %2281 = vperm.xlu0 %5031, %v2246_v18   ;;  %v2266_v44 = vld [vmem:[%s5498_s5 + $0xa8] sm:$0xff]  ;;  %v4851_v45 = vld [vmem:[#allocation3 + $0x30] sm:$0xff]  ;;  %v2269_v48 = vld [vmem:[%s5498_s5 + $0xc0] sm:$0xff] }
 0x113   : > { %1247 = vmatpush.bf16.msra.mxu0 %v4833_v19  ;;  %v2271_v46 = vld [vmem:[%s5498_s5 + $0xd0] sm:$0xff]  ;;  %2549 = vmatpush.bf16.msra.mxu2 %v4851_v45  ;;  %v2270_v47 = vld [vmem:[%s5498_s5 + $0xc8] sm:$0xff]  ;;  %v4850_v50 = vld [vmem:[#allocation3 + $0x38] sm:$0xff]  ;;  %v5675_v19 = vand.u32 127, %v2243_v14 }
 0x114   : > { %v4814_v49 = vld [vmem:[%s5488_s0 + $0x10] sm:$0xff]  ;;  %v4849_v51 = vld [vmem:[#allocation3 + $0x8] sm:$0xff]  ;;  %v2273_v53 = vld [vmem:[%s5498_s5 + $0xe0] sm:$0xff] }
 0x115   : > { %v2274_v52 = vld [vmem:[%s5498_s5 + $0xe8] sm:$0xff]  ;;  %v2272_v54 = vld [vmem:[%s5498_s5 + $0xd8] sm:$0xff]  ;;  %v4847_v56 = vld [vmem:[#allocation3 + $0x20] sm:$0xff] }
 0x116   : > { %v4848_v55 = vld [vmem:[#allocation3 + $0x18] sm:$0xff]  ;;  %v2033_v57 = vld [vmem:[%s5493_s22 + $0x70] sm:$0xff]  ;;  %v4845_v62 = vld [vmem:[#allocation3] sm:$0xff] }
 0x117   : > { %1248 = vmatpush.bf16.msra.mxu0 %v4832_v20  ;;  %2550 = vmatpush.bf16.msra.mxu2 %v4850_v50  ;;  %v2276_v58 = vld [vmem:[%s5498_s5 + $0xf8] sm:$0xff]  ;;  %v2275_v59 = vld [vmem:[%s5498_s5 + $0xf0] sm:$0xff]  ;;  %v2032_v63 = vld [vmem:[%s5493_s22 + $0x68] sm:$0xff] }
 0x118   : > { %v4815_v60 = vld [vmem:[%s5488_s0 + $0x18] sm:$0xff]  ;;  %v4846_v61 = vld [vmem:[#allocation3 + $0x10] sm:$0xff]  ;;  %v2031_v1 = vld [vmem:[%s5493_s22 + $0x60] sm:$0xff] }
 0x119   : > { %2302 = vperm.xlu2 %5033, %v2253_v21   ;;  %v2034_v0 = vld [vmem:[%s5493_s22 + $0x78] sm:$0xff]  ;;  %v4844_v2 = vld [vmem:[#allocation3 + $0x28] sm:$0xff]  ;;  %v2027_v3 = vld [vmem:[%s5493_s22 + $0x40] sm:$0xff] }
 0x11a   : > { %2299 = vperm.xlu1 %5032, %v2252_v22   ;;  %2296 = vperm.xlu0 %5031, %v2251_v23   ;;  %v2030_v4 = vld [vmem:[%s5493_s22 + $0x58] sm:$0xff]  ;;  %v2029_v5 = vld [vmem:[%s5493_s22 + $0x50] sm:$0xff]  ;;  %v4816_v6 = vld [vmem:[%s5488_s0 + $0x20] sm:$0xff] }
 0x11b   : > { %1249 = vmatpush.bf16.msra.mxu0 %v4831_v24  ;;  %2551 = vmatpush.bf16.msra.mxu2 %v4849_v51  ;;  %v2026_v7 = vld [vmem:[%s5493_s22 + $0x38] sm:$0xff]  ;;  %v2028_v8 = vld [vmem:[%s5493_s22 + $0x48] sm:$0xff]  ;;  %v2025_v9 = vld [vmem:[%s5493_s22 + $0x30] sm:$0xff] }
 0x11c   : > { %v2021_v10 = vld [vmem:[%s5493_s22 + $0x10] sm:$0xff]  ;;  %v2024_v11 = vld [vmem:[%s5493_s22 + $0x28] sm:$0xff]  ;;  %v2023_v12 = vld [vmem:[%s5493_s22 + $0x20] sm:$0xff] }
 0x11d   : > { %v4817_v13 = vld [vmem:[%s5488_s0 + $0x28] sm:$0xff]  ;;  %v2022_v17 = vld [vmem:[%s5493_s22 + $0x18] sm:$0xff]  ;;  %v2019_v18 = vld [vmem:[%s5493_s22] sm:$0xff] }
 0x11e   : > { %v2020_v16 = vld [vmem:[%s5493_s22 + $0x8] sm:$0xff]  ;;  %v2049_v21 = vld [vmem:[%s5493_s22 + $0xf0] sm:$0xff]  ;;  %v2047_v22 = vld [vmem:[%s5493_s22 + $0xe0] sm:$0xff] }
 0x11f   : > { %1250 = vmatpush.bf16.msra.mxu0 %v4830_v25  ;;  %2552 = vmatpush.bf16.msra.mxu2 %v4848_v55  ;;  %v2050_v24 = vld [vmem:[%s5493_s22 + $0xf8] sm:$0xff]  ;;  %v4818_v25 = vld [vmem:[%s5488_s0 + $0x30] sm:$0xff]  ;;  %v5705_v45 = vld [vmem:[%s5514_s1] ss:$0 sm:$0xff] }
 0x120   : > { %v4820_v50 = vld [vmem:[%s5488_s0 + $0x40] sm:$0xff] }
 0x121   : > { %2311 = vperm.xlu2 %5033, %v2256_v26   ;;  %v5341_v26 = vmov 1.0|1.0  }
 0x122   : > { %2308 = vperm.xlu1 %5032, %v2255_v27   ;;  %2305 = vperm.xlu0 %5031, %v2254_v28   ;;  %v2046_v27 = vld [vmem:[%s5493_s22 + $0xd8] sm:$0xff]  ;;  %v2048_v28 = vld [vmem:[%s5493_s22 + $0xe8] sm:$0xff] }
 0x123   : > { %1251 = vmatpush.bf16.msra.mxu0 %v4829_v29  ;;  %2553 = vmatpush.bf16.msra.mxu2 %v4847_v56  ;;  %v2045_v29 = vld [vmem:[%s5493_s22 + $0xd0] sm:$0xff]  ;;  %v4836_v56 = vld [vmem:[%s5524_s27] sm:$0xff] }
 0x127   : > { %1252 = vmatpush.bf16.msra.mxu0 %v4828_v30  ;;  %2554 = vmatpush.bf16.msra.mxu2 %v4846_v61 }
 0x129   : > { %2320 = vperm.xlu2 %5033, %v2259_v31   ;;  %v4843_v31 = vld [vmem:[%s5524_s27 + $0x38] sm:$0xff] }
 0x12a   : > { %2317 = vperm.xlu1 %5032, %v2258_v32   ;;  %2314 = vperm.xlu0 %5031, %v2257_v33   ;;  %v4842_v32 = vld [vmem:[%s5524_s27 + $0x30] sm:$0xff] }
 0x12b   : > { %1253 = vmatmul.bf16.vlgmr.msra.gmra.mxu0 %v4812_v34  ;;  %2555 = vmatpush.bf16.msra.mxu2 %v4845_v62  ;;  %v2041_v33 = vld [vmem:[%s5493_s22 + $0xb0] sm:$0xff] }
 0x12c   : > { %1930 = vmatpush.bf16.msra.mxu1 %v4843_v31 }
 0x12f   : > { %2556 = vmatpush.bf16.msra.mxu2 %v4844_v2 }
 0x130   : > { %1931 = vmatpush.bf16.msra.mxu1 %v4842_v32 }
 0x131   : > { %2329 = vperm.xlu2 %5033, %v2262_v35   ;;  %v2043_v35 = vld [vmem:[%s5493_s22 + $0xc0] sm:$0xff] }
 0x132   : > { %2326 = vperm.xlu1 %5032, %v2261_v36   ;;  %2323 = vperm.xlu0 %5031, %v2260_v37   ;;  %v2044_v36 = vld [vmem:[%s5493_s22 + $0xc8] sm:$0xff]  ;;  %v4819_v37 = vld [vmem:[%s5488_s0 + $0x38] sm:$0xff] }
 0x139   : > { %2338 = vperm.xlu2 %5033, %v2265_v38   ;;  %v4841_v38 = vld [vmem:[%s5524_s27 + $0x28] sm:$0xff] }
 0x13a   : > { %2335 = vperm.xlu1 %5032, %v2264_v39   ;;  %2332 = vperm.xlu0 %5031, %v2263_v40   ;;  %v4840_v39 = vld [vmem:[%s5524_s27 + $0x20] sm:$0xff]  ;;  %v2040_v40 = vld [vmem:[%s5493_s22 + $0xa8] sm:$0xff] }
 0x13b   : > { %1258 = vmatmul.bf16.gmra.mxu0 %v4813_v41  ;;  %1932 = vmatpush.bf16.msra.mxu1 %v4841_v38  ;;  %v2042_v41 = vld [vmem:[%s5493_s22 + $0xb8] sm:$0xff] }
 0x13f   : > { %1933 = vmatpush.bf16.msra.mxu1 %v4840_v39 }
 0x141   : > { %2347 = vperm.xlu2 %5033, %v2268_v42   ;;  %v2039_v42 = vld [vmem:[%s5493_s22 + $0xa0] sm:$0xff] }
 0x142   : > { %2344 = vperm.xlu1 %5032, %v2267_v43   ;;  %2341 = vperm.xlu0 %5031, %v2266_v44   ;;  %v4839_v44 = vld [vmem:[%s5524_s27 + $0x18] sm:$0xff] }
 0x143   : > { %1934 = vmatpush.bf16.msra.mxu1 %v4839_v44 }
 0x149   : > { %2356 = vperm.xlu2 %5033, %v2271_v46   ;;  %v4838_v46 = vld [vmem:[%s5524_s27 + $0x10] sm:$0xff] }
 0x14a   : > { %2353 = vperm.xlu1 %5032, %v2270_v47   ;;  %2350 = vperm.xlu0 %5031, %v2269_v48   ;;  %v2035_v47 = vld [vmem:[%s5493_s22 + $0x80] sm:$0xff]  ;;  %v2037_v48 = vld [vmem:[%s5493_s22 + $0x90] sm:$0xff] }
 0x14b   : > { %1263 = vmatmul.bf16.gmra.mxu0 %v4814_v49  ;;  %v2038_v49 = vld [vmem:[%s5493_s22 + $0x98] sm:$0xff]  ;;  %1935 = vmatpush.bf16.msra.mxu1 %v4838_v46 }
 0x151   : > { %2365 = vperm.xlu2 %5033, %v2274_v52  }
 0x152   : > { %2362 = vperm.xlu1 %5032, %v2273_v53   ;;  %2359 = vperm.xlu0 %5031, %v2272_v54   ;;  %v4837_v53 = vld [vmem:[%s5524_s27 + $0x8] sm:$0xff] }
 0x153   : > { %1936 = vmatpush.bf16.msra.mxu1 %v4837_v53 }
 0x157   : > { %1937 = vmatpush.bf16.msra.mxu1 %v4836_v56 }
 0x159   : > { %2123 = vperm.xlu2 %5033, %v2033_v57  }
 0x15a   : > { %2371 = vperm.xlu1 %5032, %v2276_v58   ;;  %2368 = vperm.xlu0 %5031, %v2275_v59   ;;  %v2036_v58 = vld [vmem:[%s5493_s22 + $0x88] sm:$0xff] }
 0x15b   : > { %1268 = vmatmul.bf16.gmra.mxu0 %v4815_v60 }
 0x161   : > { %2118 = vperm.xlu2 %5033, %v2032_v63  }
 0x162   : > { %2128 = vperm.xlu0 %5031, %v2034_v0   ;;  %2113 = vperm.xlu1 %5032, %v2031_v1  }
 0x163   : > { %v2291_v34 = vpop.permute.xlu2 %2290 }
 0x164   : > { %vm2377_vm6 = vcmp.eq.s32.totalorder %v2291_v34, %v5675_v19 }
 0x169   : > { %2093 = vperm.xlu2 %5033, %v2027_v3   ;;  %v4821_v3 = vld [vmem:[%s5488_s0 + $0x48] sm:$0xff] }
 0x16a   : > { %2108 = vperm.xlu1 %5032, %v2030_v4   ;;  %2103 = vperm.xlu0 %5031, %v2029_v5  }
 0x16b   : > { %1273 = vmatmul.bf16.gmra.mxu0 %v4816_v6  ;;  %v2294_v43 = vpop.permute.xlu2 %2293 }
 0x16c   : > { %vm2378_vm7 = vcmp.eq.s32.totalorder %v2294_v43, %v5675_v19 }
 0x16d   : > { %vm4542_vm8 = vmpackc.low %vm2378_vm7, %vm2377_vm6 }
 0x171   : > { %2088 = vperm.xlu2 %5033, %v2026_v7  }
 0x172   : > { %2098 = vperm.xlu0 %5031, %v2028_v8   ;;  %2083 = vperm.xlu1 %5032, %v2025_v9  }
 0x179   : > { %2063 = vperm.xlu2 %5033, %v2021_v10  }
 0x17a   : > { %2078 = vperm.xlu1 %5032, %v2024_v11   ;;  %2073 = vperm.xlu0 %5031, %v2023_v12  }
 0x17b   : > { %1278 = vmatmul.bf16.gmra.mxu0 %v4817_v13 }
 0x17c   : > { %v2279_v15 = vpop.permute.xlu0 %2278  ;;  %v2285_v23 = vpop.permute.xlu1 %2284 }
 0x17d   : > { %vm2373_vm0 = vcmp.eq.s32.totalorder %v2279_v15, %v5675_v19  ;;  %vm2375_vm3 = vcmp.eq.s32.totalorder %v2285_v23, %v5675_v19 }
 0x181   : > { %2058 = vperm.xlu2 %5033, %v2020_v16   ;;  %v2303_v16 = vpop.permute.xlu2 %2302 }
 0x182   : > { %2068 = vperm.xlu0 %5031, %v2022_v17   ;;  %2053 = vperm.xlu1 %5032, %v2019_v18   ;;  %vm2381_vm12 = vcmp.eq.s32.totalorder %v2303_v16, %v5675_v19 }
 0x184   : > { %v2282_v20 = vpop.permute.xlu0 %2281  ;;  %v2288_v30 = vpop.permute.xlu1 %2287 }
 0x185   : > { %vm2374_vm1 = vcmp.eq.s32.totalorder %v2282_v20, %v5675_v19  ;;  %vm2376_vm4 = vcmp.eq.s32.totalorder %v2288_v30, %v5675_v19 }
 0x186   : > { %vm4538_vm2 = vmpackc.low %vm2374_vm1, %vm2373_vm0 }
 0x187   : > { %4539 = vmatmul.msk.bf16.vlgmr.msra.gmra.mxu2 %vm4538_vm2, %v5341_v26  ;;  %vm4540_vm5 = vmpackc.low %vm2376_vm4, %vm2375_vm3 }
 0x189   : > { %2193 = vperm.xlu2 %5033, %v2047_v22  }
 0x18a   : > { %2203 = vperm.xlu0 %5031, %v2049_v21   ;;  %2208 = vperm.xlu1 %5032, %v2050_v24  }
 0x18b   : > { %1283 = vmatmul.bf16.gmra.mxu0 %v4818_v25 }
 0x18c   : > { %v2300_v60 = vpop.permute.xlu1 %2299  ;;  %v2297_v61 = vpop.permute.xlu0 %2296 }
 0x18d   : > { %vm2380_vm9 = vcmp.eq.s32.totalorder %v2300_v60, %v5675_v19  ;;  %vm2379_vm10 = vcmp.eq.s32.totalorder %v2297_v61, %v5675_v19 }
 0x18e   : > { %vm4544_vm11 = vmpackc.low %vm2380_vm9, %vm2379_vm10 }
 0x191   : > { %2188 = vperm.xlu2 %5033, %v2046_v27  }
 0x192   : > { %2198 = vperm.xlu0 %5031, %v2048_v28   ;;  %2183 = vperm.xlu1 %5032, %v2045_v29  }
 0x194   : > { %v2306_v17 = vpop.permute.xlu0 %2305 }
 0x195   : > { %vm2382_vm13 = vcmp.eq.s32.totalorder %v2306_v17, %v5675_v19 }
 0x196   : > { %vm4546_vm14 = vmpackc.low %vm2382_vm13, %vm2381_vm12 }
 0x197   : > { %4541 = vmatmul.msk.bf16.gmra.mxu2 %vm4540_vm5, %v5341_v26 }
 0x199   : > { %2163 = vperm.xlu2 %5033, %v2041_v33   ;;  %v4822_v33 = vld [vmem:[%s5488_s0 + $0x50] sm:$0xff] }
 0x19a   : > { %2173 = vperm.xlu0 %5031, %v2043_v35   ;;  %2178 = vperm.xlu1 %5032, %v2044_v36  }
 0x19b   : > { %1288 = vmatmul.bf16.gmra.mxu0 %v4819_v37 }
 0x1a1   : > { %2158 = vperm.xlu2 %5033, %v2040_v40  }
 0x1a2   : > { %2168 = vperm.xlu0 %5031, %v2042_v41   ;;  %2153 = vperm.xlu1 %5032, %v2039_v42  }
 0x1a7   : > { %4543 = vmatmul.msk.bf16.gmra.mxu2 %vm4542_vm8, %v5341_v26 }
 0x1a8   : > { %v1254_v51 = vpop.f32.mrf.mxu0 }
 0x1a9   : > { %v5714_v52 = vadd.f32 %v5705_v45, %v1254_v51  ;;  %2133 = vperm.xlu2 %5033, %v2035_v47  }
 0x1aa   : > { %2143 = vperm.xlu0 %5031, %v2037_v48   ;;  %2148 = vperm.xlu1 %5032, %v2038_v49  }
 0x1ab   : > { %v1366_v54 = vand.u32 2147483647, %v5714_v52  ;;  %1293 = vmatmul.bf16.gmra.mxu0 %v4820_v50  ;;  %v1334_v36 = vmax.f32 %v5714_v52, 0.0 }
 0x1ad   : > { %v1398_v55 = vsub.f32 0.0, %v1366_v54 }
 0x1af   : > { %v1430_v57 = vmul.f32 1.442695, %v1398_v55 }
 0x1b0   : > { %v1256_v59 = vpop.f32.mrf.mxu0 }
 0x1b1   : > { %5036 = vpow2.f32 %v1430_v57  ;;  %v5721_v62 = vadd.f32 %v5705_v45, %v1256_v59  ;;  %v2309_v59 = vpop.permute.xlu1 %2308 }
 0x1b2   : > { %2138 = vperm.xlu0 %5031, %v2036_v58   ;;  %v2312_v58 = vpop.permute.xlu2 %2311  ;;  %vm2383_vm2 = vcmp.eq.s32.totalorder %v2309_v59, %v5675_v19 }
 0x1b3   : > { %v1367_v63 = vand.u32 2147483647, %v5721_v62  ;;  %v1335_v42 = vmax.f32 %v5721_v62, 0.0  ;;  %vm2384_vm1 = vcmp.eq.s32.totalorder %v2312_v58, %v5675_v19 }
 0x1b4   : > { %vm4548_vm3 = vmpackc.low %vm2384_vm1, %vm2383_vm2 }
 0x1b5   : > { %v1399_v0 = vsub.f32 0.0, %v1367_v63 }
 0x1b7   : > { %v5037_v1 = vpop.eup %5036  ;;  %v1432_v2 = vmul.f32 1.442695, %v1399_v0  ;;  %4545 = vmatmul.msk.bf16.gmra.mxu2 %vm4544_vm11, %v5341_v26 }
 0x1b8   : > { %v1259_v4 = vpop.f32.mrf.mxu0  ;;  %v1494_v5 = vadd.f32 1.0, %v5037_v1  ;;  %v1497_v9 = vmul.f32 -0.5, %v5037_v1  ;;  %v1500_v22 = vand.u32 2147483647, %v5037_v1 }
 0x1b9   : > { %5038 = vpow2.f32 %v1432_v2  ;;  %v5729_v6 = vadd.f32 %v5705_v45, %v1259_v4 }
 0x1ba   : > { %5040 = vlog2.f32 %v1494_v5  ;;  %v1498_v20 = vadd.f32 1.0, %v1497_v9  ;;  %vm5738_vm15 = vcmp.lt.f32.partialorder %v1500_v22, 0.0004427343 }
 0x1bb   : > { %v1368_v7 = vand.u32 2147483647, %v5729_v6  ;;  %1298 = vmatmul.bf16.gmra.mxu0 %v4821_v3 }
 0x1bc   : > { %v1499_v27 = vmul.f32 %v5037_v1, %v1498_v20 }
 0x1bd   : > { %v1400_v8 = vsub.f32 0.0, %v1368_v7 }
 0x1bf   : > { %v5039_v10 = vpop.eup %5038  ;;  %v1434_v11 = vmul.f32 1.442695, %v1400_v8 }
 0x1c0   : > { %v5041_v12 = vpop.eup %5040  ;;  %v1261_v13 = vpop.f32.mrf.mxu0  ;;  %v1503_v15 = vadd.f32 1.0, %v5039_v10  ;;  %v1506_v21 = vmul.f32 -0.5, %v5039_v10  ;;  %v1509_v30 = vand.u32 2147483647, %v5039_v10 }
 0x1c1   : > { %5042 = vpow2.f32 %v1434_v11  ;;  %v5733_v18 = vadd.f32 %v5705_v45, %v1261_v13  ;;  %v1496_v24 = vmul.f32 0.6931472, %v5041_v12  ;;  %v1336_v13 = vmax.f32 %v5729_v6, 0.0 }
 0x1c2   : > { %5044 = vlog2.f32 %v1503_v15  ;;  %v1507_v28 = vadd.f32 1.0, %v1506_v21  ;;  %vm1510_vm0 = vcmp.lt.f32.partialorder %v1509_v30, 0.0004427343 }
 0x1c3   : > { %v1369_v23 = vand.u32 2147483647, %v5733_v18  ;;  %v1502_v34 = vsel %vm5738_vm15, %v1499_v27, %v1496_v24  ;;  %v1337_v22 = vmax.f32 %v5733_v18, 0.0 }
 0x1c4   : > { %v1508_v41 = vmul.f32 %v5039_v10, %v1507_v28  ;;  %v1782_v43 = vadd.f32 %v1502_v34, %v1334_v36  ;;  %v4823_v10 = vld [vmem:[%s5488_s0 + $0x58] sm:$0xff] }
 0x1c5   : > { %v1401_v25 = vsub.f32 0.0, %v1369_v23 }
 0x1c6   : > { %v4410_v50 = vadd.f32 -0.6931472, %v1782_v43 }
 0x1c7   : > { %v5043_v31 = vpop.eup %5042  ;;  %v1436_v32 = vmul.f32 1.442695, %v1401_v25  ;;  %4547 = vmatmul.msk.bf16.gmra.mxu2 %vm4546_vm14, %v5341_v26 }
 0x1c8   : > { %v5045_v35 = vpop.eup %5044  ;;  %v1264_v37 = vpop.f32.mrf.mxu0  ;;  %v1512_v38 = vadd.f32 1.0, %v5043_v31  ;;  %v1515_v49 = vmul.f32 -0.5, %v5043_v31  ;;  %v1518_v63 = vand.u32 2147483647, %v5043_v31 }
 0x1c9   : > { %5046 = vpow2.f32 %v1436_v32  ;;  %v5748_v39 = vadd.f32 %v5705_v45, %v1264_v37  ;;  %v1505_v40 = vmul.f32 0.6931472, %v5045_v35 }
 0x1ca   : > { %5048 = vlog2.f32 %v1512_v38  ;;  %v1516_v61 = vadd.f32 1.0, %v1515_v49  ;;  %vm5758_vm4 = vcmp.lt.f32.partialorder %v1518_v63, 0.0004427343 }
 0x1cb   : > { %v1370_v44 = vand.u32 2147483647, %v5748_v39  ;;  %1303 = vmatmul.bf16.gmra.mxu0 %v4822_v33  ;;  %v1511_v46 = vsel %vm1510_vm0, %v1508_v41, %v1505_v40  ;;  %v2318_v41 = vpop.permute.xlu1 %2317 }
 0x1cc   : > { %v1783_v47 = vadd.f32 %v1511_v46, %v1335_v42  ;;  %v1517_v3 = vmul.f32 %v5043_v31, %v1516_v61  ;;  %v2315_v42 = vpop.permute.xlu0 %2314  ;;  %vm2386_vm6 = vcmp.eq.s32.totalorder %v2318_v41, %v5675_v19 }
 0x1cd   : > { %v1402_v48 = vsub.f32 0.0, %v1370_v44  ;;  %vm2385_vm7 = vcmp.eq.s32.totalorder %v2315_v42, %v5675_v19 }
 0x1ce   : > { %v4411_v51 = vadd.f32 -0.6931472, %v1783_v47  ;;  %vm4550_vm9 = vmpackc.low %vm2386_vm6, %vm2385_vm7 }
 0x1cf   : > { %v5047_v52 = vpop.eup %5046  ;;  %v1438_v53 = vmul.f32 1.442695, %v1402_v48 }
 0x1d0   : > { %v5049_v54 = vpop.eup %5048  ;;  %v1266_v55 = vpop.f32.mrf.mxu0  ;;  %v1846_v56 = vpack.c.bf16 %v4411_v51, %v4410_v50  ;;  %v1521_v57 = vadd.f32 1.0, %v5047_v52  ;;  %v1524_v62 = vmul.f32 -0.5, %v5047_v52  ;;  %v1527_v7 = vand.u32 2147483647, %v5047_v52 }
 0x1d1   : > { %5050 = vpow2.f32 %v1438_v53  ;;  %v5753_v60 = vadd.f32 %v5705_v45, %v1266_v55  ;;  %v1514_v1 = vmul.f32 0.6931472, %v5049_v54  ;;  %v4824_v53 = vld [vmem:[%s5488_s0 + $0x60] sm:$0xff] }
 0x1d2   : > { %1938 = vmatmul.bf16.vlgmr.msra.gmra.mxu1 %v1846_v56  ;;  %5052 = vlog2.f32 %v1521_v57  ;;  %v1525_v4 = vadd.f32 1.0, %v1524_v62  ;;  %vm1528_vm5 = vcmp.lt.f32.partialorder %v1527_v7, 0.0004427343  ;;  %v1338_v56 = vmax.f32 %v5748_v39, 0.0 }
 0x1d3   : > { %v1371_v0 = vand.u32 2147483647, %v5753_v60  ;;  %v1520_v11 = vsel %vm5758_vm4, %v1517_v3, %v1514_v1  ;;  %v1339_v63 = vmax.f32 %v5753_v60, 0.0  ;;  %v2321_v1 = vpop.permute.xlu2 %2320 }
 0x1d4   : > { %v1526_v21 = vmul.f32 %v5047_v52, %v1525_v4  ;;  %v1784_v23 = vadd.f32 %v1520_v11, %v1336_v13  ;;  %vm2387_vm11 = vcmp.eq.s32.totalorder %v2321_v1, %v5675_v19 }
 0x1d5   : > { %v1403_v2 = vsub.f32 0.0, %v1371_v0 }
 0x1d6   : > { %v4412_v29 = vadd.f32 -0.6931472, %v1784_v23  ;;  %v2324_v23 = vpop.permute.xlu0 %2323 }
 0x1d7   : > { %v5051_v8 = vpop.eup %5050  ;;  %v1440_v9 = vmul.f32 1.442695, %v1403_v2  ;;  %4549 = vmatmul.msk.bf16.gmra.mxu2 %vm4548_vm3, %v5341_v26  ;;  %vm2388_vm12 = vcmp.eq.s32.totalorder %v2324_v23, %v5675_v19 }
 0x1d8   : > { %v5053_v12 = vpop.eup %5052  ;;  %v1269_v15 = vpop.f32.mrf.mxu0  ;;  %v1530_v16 = vadd.f32 1.0, %v5051_v8  ;;  %v1533_v28 = vmul.f32 -0.5, %v5051_v8  ;;  %v1536_v40 = vand.u32 2147483647, %v5051_v8  ;;  %vm4552_vm14 = vmpackc.low %vm2388_vm12, %vm2387_vm11 }
 0x1d9   : > { %5054 = vpow2.f32 %v1440_v9  ;;  %v5768_v17 = vadd.f32 %v5705_v45, %v1269_v15  ;;  %v1523_v20 = vmul.f32 0.6931472, %v5053_v12 }
 0x1da   : > { %5056 = vlog2.f32 %v1530_v16  ;;  %v1534_v37 = vadd.f32 1.0, %v1533_v28  ;;  %vm5778_vm8 = vcmp.lt.f32.partialorder %v1536_v40, 0.0004427343 }
 0x1db   : > { %v1372_v24 = vand.u32 2147483647, %v5768_v17  ;;  %1308 = vmatmul.bf16.gmra.mxu0 %v4823_v10  ;;  %v1529_v25 = vsel %vm1528_vm5, %v1526_v21, %v1523_v20 }
 0x1dc   : > { %v1785_v6 = vadd.f32 %v1529_v25, %v1337_v22  ;;  %v1535_v47 = vmul.f32 %v5051_v8, %v1534_v37  ;;  %v5795_v22 = vpop.permute.xlu1 %2326  ;;  %v1340_v37 = vmax.f32 %v5768_v17, 0.0 }
 0x1dd   : > { %v1404_v27 = vsub.f32 0.0, %v1372_v24  ;;  %vm2389_vm1 = vcmp.eq.s32.totalorder %v5795_v22, %v5675_v19 }
 0x1de   : > { %v4413_v30 = vadd.f32 -0.6931472, %v1785_v6  ;;  %v2330_v6 = vpop.permute.xlu2 %2329 }
 0x1df   : > { %v5055_v31 = vpop.eup %5054  ;;  %v1442_v32 = vmul.f32 1.442695, %v1404_v27  ;;  %vm2390_vm0 = vcmp.eq.s32.totalorder %v2330_v6, %v5675_v19 }
 0x1e0   : > { %v5057_v33 = vpop.eup %5056  ;;  %v1271_v34 = vpop.f32.mrf.mxu0  ;;  %v1847_v35 = vpack.c.bf16 %v4413_v30, %v4412_v29  ;;  %v1539_v36 = vadd.f32 1.0, %v5055_v31  ;;  %v1542_v38 = vmul.f32 -0.5, %v5055_v31  ;;  %v1545_v50 = vand.u32 2147483647, %v5055_v31  ;;  %vm4554_vm3 = vmpackc.low %vm2390_vm0, %vm2389_vm1 }
 0x1e1   : > { %5058 = vpow2.f32 %v1442_v32  ;;  %v5773_v18 = vadd.f32 %v5705_v45, %v1271_v34  ;;  %v1532_v44 = vmul.f32 0.6931472, %v5057_v33  ;;  %v4825_v34 = vld [vmem:[%s5488_s0 + $0x68] sm:$0xff] }
 0x1e2   : > { %1943 = vmatmul.bf16.gmra.mxu1 %v1847_v35  ;;  %5060 = vlog2.f32 %v1539_v36  ;;  %v1543_v48 = vadd.f32 1.0, %v1542_v38  ;;  %vm1546_vm10 = vcmp.lt.f32.partialorder %v1545_v50, 0.0004427343 }
 0x1e3   : > { %v1373_v43 = vand.u32 2147483647, %v5773_v18  ;;  %v1538_v54 = vsel %vm5778_vm8, %v1535_v47, %v1532_v44  ;;  %v1341_v44 = vmax.f32 %v5773_v18, 0.0 }
 0x1e4   : > { %v1544_v62 = vmul.f32 %v5055_v31, %v1543_v48  ;;  %v1786_v0 = vadd.f32 %v1538_v54, %v1338_v56  ;;  %v5814_v49 = vpop.permute.xlu1 %2335 }
 0x1e5   : > { %v1405_v46 = vsub.f32 0.0, %v1373_v43  ;;  %vm2392_vm5 = vcmp.eq.s32.totalorder %v5814_v49, %v5675_v19 }
 0x1e6   : > { %v4414_v7 = vadd.f32 -0.6931472, %v1786_v0 }
 0x1e7   : > { %v5059_v51 = vpop.eup %5058  ;;  %v1444_v52 = vmul.f32 1.442695, %v1405_v46  ;;  %4551 = vmatmul.msk.bf16.gmra.mxu2 %vm4550_vm9, %v5341_v26 }
 0x1e8   : > { %v5061_v55 = vpop.eup %5060  ;;  %v1274_v57 = vpop.f32.mrf.mxu0  ;;  %v1548_v58 = vadd.f32 1.0, %v5059_v51  ;;  %v1551_v5 = vmul.f32 -0.5, %v5059_v51  ;;  %v1554_v21 = vand.u32 2147483647, %v5059_v51 }
 0x1e9   : > { %5062 = vpow2.f32 %v1444_v52  ;;  %v5788_v59 = vadd.f32 %v5705_v45, %v1274_v57  ;;  %v1541_v61 = vmul.f32 0.6931472, %v5061_v55  ;;  %v5816_v55 = vpop.permute.xlu2 %2338 }
 0x1ea   : > { %5064 = vlog2.f32 %v1548_v58  ;;  %v1552_v16 = vadd.f32 1.0, %v1551_v5  ;;  %vm5800_vm13 = vcmp.lt.f32.partialorder %v1554_v21, 0.0004427343 }
 0x1eb   : > { %v1374_v2 = vand.u32 2147483647, %v5788_v59  ;;  %1313 = vmatmul.bf16.gmra.mxu0 %v4824_v53  ;;  %v1547_v39 = vsel %vm1546_vm10, %v1544_v62, %v1541_v61  ;;  %vm2393_vm10 = vcmp.eq.s32.totalorder %v5816_v55, %v5675_v19 }
 0x1ec   : > { %v1787_v3 = vadd.f32 %v1547_v39, %v1339_v63  ;;  %v1553_v28 = vmul.f32 %v5059_v51, %v1552_v16  ;;  %v1342_v16 = vmax.f32 %v5788_v59, 0.0 }
 0x1ed   : > { %v1406_v4 = vsub.f32 0.0, %v1374_v2 }
 0x1ee   : > { %v4415_v8 = vadd.f32 -0.6931472, %v1787_v3 }
 0x1ef   : > { %v5063_v9 = vpop.eup %5062  ;;  %v1446_v10 = vmul.f32 1.442695, %v1406_v4 }
 0x1f0   : > { %v5065_v11 = vpop.eup %5064  ;;  %v1276_v12 = vpop.f32.mrf.mxu0  ;;  %v1848_v13 = vpack.c.bf16 %v4415_v8, %v4414_v7  ;;  %v1557_v15 = vadd.f32 1.0, %v5063_v9  ;;  %v1560_v20 = vmul.f32 -0.5, %v5063_v9  ;;  %v1563_v31 = vand.u32 2147483647, %v5063_v9 }
 0x1f1   : > { %5066 = vpow2.f32 %v1446_v10  ;;  %v5793_v60 = vadd.f32 %v5705_v45, %v1276_v12  ;;  %v1550_v25 = vmul.f32 0.6931472, %v5065_v11  ;;  %v5829_v10 = vpop.permute.xlu1 %2344  ;;  %v4826_v12 = vld [vmem:[%s5488_s0 + $0x70] sm:$0xff]  ;;  %v5836_v22 = vpop.permute.xlu2 %2347 }
 0x1f2   : > { %1948 = vmatmul.bf16.gmra.mxu1 %v1848_v13  ;;  %5068 = vlog2.f32 %v1557_v15  ;;  %v1561_v29 = vadd.f32 1.0, %v1560_v20  ;;  %vm1564_vm15 = vcmp.lt.f32.partialorder %v1563_v31, 0.0004427343  ;;  %vm2395_vm0 = vcmp.eq.s32.totalorder %v5829_v10, %v5675_v19 }
 0x1f3   : > { %v1375_v24 = vand.u32 2147483647, %v5793_v60  ;;  %v1556_v35 = vsel %vm5800_vm13, %v1553_v28, %v1550_v25  ;;  %v1343_v6 = vmax.f32 %v5793_v60, 0.0 }
 0x1f4   : > { %v1562_v43 = vmul.f32 %v5063_v9, %v1561_v29  ;;  %v1788_v46 = vadd.f32 %v1556_v35, %v1340_v37  ;;  %v2333_v35 = vpop.permute.xlu0 %2332 }
 0x1f5   : > { %v1407_v27 = vsub.f32 0.0, %v1375_v24  ;;  %vm2391_vm6 = vcmp.eq.s32.totalorder %v2333_v35, %v5675_v19 }
 0x1f6   : > { %v4416_v52 = vadd.f32 -0.6931472, %v1788_v46  ;;  %vm4556_vm8 = vmpackc.low %vm2392_vm5, %vm2391_vm6 }
 0x1f7   : > { %v5067_v32 = vpop.eup %5066  ;;  %v1448_v33 = vmul.f32 1.442695, %v1407_v27  ;;  %4553 = vmatmul.msk.bf16.gmra.mxu2 %vm4552_vm14, %v5341_v26 }
 0x1f8   : > { %v5069_v36 = vpop.eup %5068  ;;  %v1279_v38 = vpop.f32.mrf.mxu0  ;;  %v1566_v40 = vadd.f32 1.0, %v5067_v32  ;;  %v1569_v51 = vmul.f32 -0.5, %v5067_v32  ;;  %v1572_v1 = vand.u32 2147483647, %v5067_v32 }
 0x1f9   : > { %5070 = vpow2.f32 %v1448_v33  ;;  %v5810_v41 = vadd.f32 %v5705_v45, %v1279_v38  ;;  %v1559_v42 = vmul.f32 0.6931472, %v5069_v36  ;;  %v5843_v60 = vpop.permute.xlu1 %2353 }
 0x1fa   : > { %5072 = vlog2.f32 %v1566_v40  ;;  %v1570_v63 = vadd.f32 1.0, %v1569_v51  ;;  %vm5825_vm2 = vcmp.lt.f32.partialorder %v1572_v1, 0.0004427343 }
 0x1fb   : > { %v1376_v47 = vand.u32 2147483647, %v5810_v41  ;;  %1318 = vmatmul.bf16.gmra.mxu0 %v4825_v34  ;;  %v1565_v48 = vsel %vm1564_vm15, %v1562_v43, %v1559_v42  ;;  %vm2396_vm15 = vcmp.eq.s32.totalorder %v5836_v22, %v5675_v19 }
 0x1fc   : > { %v1789_v17 = vadd.f32 %v1565_v48, %v1341_v44  ;;  %v1571_v4 = vmul.f32 %v5067_v32, %v1570_v63  ;;  %v5848_v48 = vpop.permute.xlu2 %2356 }
 0x1fd   : > { %v1408_v50 = vsub.f32 0.0, %v1376_v47 }
 0x1fe   : > { %v4417_v53 = vadd.f32 -0.6931472, %v1789_v17 }
 0x1ff   : > { %v5071_v54 = vpop.eup %5070  ;;  %v1450_v56 = vmul.f32 1.442695, %v1408_v50 }
 0x200   : > { %v5073_v57 = vpop.eup %5072  ;;  %v1281_v18 = vpop.f32.mrf.mxu0  ;;  %v1849_v58 = vpack.c.bf16 %v4417_v53, %v4416_v52  ;;  %v1575_v61 = vadd.f32 1.0, %v5071_v54  ;;  %v1578_v0 = vmul.f32 -0.5, %v5071_v54  ;;  %v1581_v8 = vand.u32 2147483647, %v5071_v54 }
 0x201   : > { %5074 = vpow2.f32 %v1450_v56  ;;  %v5819_v62 = vadd.f32 %v5705_v45, %v1281_v18  ;;  %v1568_v39 = vmul.f32 0.6931472, %v5073_v57 }
 0x202   : > { %1953 = vmatmul.bf16.gmra.mxu1 %v1849_v58  ;;  %5076 = vlog2.f32 %v1575_v61  ;;  %v1579_v5 = vadd.f32 1.0, %v1578_v0  ;;  %vm1582_vm4 = vcmp.lt.f32.partialorder %v1581_v8, 0.0004427343  ;;  %v4827_v61 = vld [vmem:[%s5488_s0 + $0x78] sm:$0xff]  ;;  %v1344_v0 = vmax.f32 %v5810_v41, 0.0  ;;  %s6961_s0 = scalar_lea.vmem %s6881_s4, %s7019_s25 }
 0x203   : > { %v1377_v2 = vand.u32 2147483647, %v5819_v62  ;;  %v1574_v13 = vsel %vm5825_vm2, %v1571_v4, %v1568_v39  ;;  %v2342_v39 = vpop.permute.xlu0 %2341  ;;  %v1345_v7 = vmax.f32 %v5819_v62, 0.0  ;;  %vm4560_vm2 = vmpackc.low %vm2396_vm15, %vm2395_vm0 }
 0x204   : > { %v1580_v25 = vmul.f32 %v5071_v54, %v1579_v5  ;;  %v1790_v27 = vadd.f32 %v1574_v13, %v1342_v16  ;;  %v5872_v13 = vpop.permute.xlu2 %2365  ;;  %vm2394_vm11 = vcmp.eq.s32.totalorder %v2342_v39, %v5675_v19 }
 0x205   : > { %v1409_v3 = vsub.f32 0.0, %v1377_v2  ;;  %vm4558_vm13 = vmpackc.low %vm2394_vm11, %vm2393_vm10 }
 0x206   : > { %v4418_v32 = vadd.f32 -0.6931472, %v1790_v27 }
 0x207   : > { %v5075_v9 = vpop.eup %5074  ;;  %v1452_v11 = vmul.f32 1.442695, %v1409_v3  ;;  %4555 = vmatmul.msk.bf16.gmra.mxu2 %vm4554_vm3, %v5341_v26 }
 0x208   : > { %v5077_v15 = vpop.eup %5076  ;;  %v1284_v20 = vpop.f32.mrf.mxu0  ;;  %v1584_v21 = vadd.f32 1.0, %v5075_v9  ;;  %v1587_v31 = vmul.f32 -0.5, %v5075_v9  ;;  %v1590_v47 = vand.u32 2147483647, %v5075_v9 }
 0x209   : > { %5078 = vpow2.f32 %v1452_v11  ;;  %v5839_v23 = vadd.f32 %v5705_v45, %v1284_v20  ;;  %v1577_v24 = vmul.f32 0.6931472, %v5077_v15 }
 0x20a   : > { %5080 = vlog2.f32 %v1584_v21  ;;  %v1588_v44 = vadd.f32 1.0, %v1587_v31  ;;  %v5854_v54 = vpop.f32.mrf.mxu2  ;;  %vm5856_vm7 = vcmp.lt.f32.partialorder %v1590_v47, 0.0004427343 }
 0x20b   : > { %v1378_v28 = vand.u32 2147483647, %v5839_v23  ;;  %1323 = vmatmul.bf16.gmra.mxu0 %v4826_v12  ;;  %v1583_v59 = vsel %vm1582_vm4, %v1580_v25, %v1577_v24  ;;  %vm2398_vm4 = vcmp.eq.s32.totalorder %v5843_v60, %v5675_v19 }
 0x20c   : > { %v1791_v29 = vadd.f32 %v1583_v59, %v1343_v6  ;;  %v1589_v52 = vmul.f32 %v5075_v9, %v1588_v44  ;;  %v5869_v9 = vpop.permute.xlu1 %2362  ;;  %v5891_v47 = vpop.permute.xlu2 %2123 }
 0x20d   : > { %v1410_v30 = vsub.f32 0.0, %v1378_v28  ;;  %vm2401_vm15 = vcmp.eq.s32.totalorder %v5869_v9, %v5675_v19 }
 0x20e   : > { %v4419_v33 = vadd.f32 -0.6931472, %v1791_v29 }
 0x20f   : > { %v5079_v34 = vpop.eup %5078  ;;  %v1454_v36 = vmul.f32 1.442695, %v1410_v30 }
 0x210   : > { %v5081_v37 = vpop.eup %5080  ;;  %v1286_v38 = vpop.f32.mrf.mxu0  ;;  %v1850_v40 = vpack.c.bf16 %v4419_v33, %v4418_v32  ;;  %v1593_v42 = vadd.f32 1.0, %v5079_v34  ;;  %v1596_v46 = vmul.f32 -0.5, %v5079_v34  ;;  %v1599_v57 = vand.u32 2147483647, %v5079_v34 }
 0x211   : > { %5082 = vpow2.f32 %v1454_v36  ;;  %v5846_v43 = vadd.f32 %v5705_v45, %v1286_v38  ;;  %v1586_v50 = vmul.f32 0.6931472, %v5081_v37  ;;  %v5879_v33 = vpop.permute.xlu0 %2350 }
 0x212   : > { %1958 = vmatmul.bf16.gmra.mxu1 %v1850_v40  ;;  %5084 = vlog2.f32 %v1593_v42  ;;  %v1597_v53 = vadd.f32 1.0, %v1596_v46  ;;  %vm1600_vm9 = vcmp.lt.f32.partialorder %v1599_v57, 0.0004427343  ;;  %v5874_v62 = vpop.f32.mrf.mxu2  ;;  %vm2397_vm5 = vcmp.eq.s32.totalorder %v5879_v33, %v5675_v19 }
 0x213   : > { %v1379_v17 = vand.u32 2147483647, %v5846_v43  ;;  %v1592_v63 = vsel %vm5856_vm7, %v1589_v52, %v1586_v50  ;;  %vm4562_vm7 = vmpackc.low %vm2398_vm4, %vm2397_vm5 }
 0x214   : > { %v1598_v5 = vmul.f32 %v5079_v34, %v1597_v53  ;;  %v1792_v8 = vadd.f32 %v1592_v63, %v1344_v0  ;;  %v5885_v36 = vpop.permute.xlu1 %2371 }
 0x215   : > { %v1411_v51 = vsub.f32 0.0, %v1379_v17 }
 0x216   : > { %v4420_v20 = vadd.f32 -0.6931472, %v1792_v8 }
 0x217   : > { %v5083_v18 = vpop.eup %5082  ;;  %v1456_v58 = vmul.f32 1.442695, %v1411_v51  ;;  %4557 = vmatmul.msk.bf16.gmra.mxu2 %vm4556_vm8, %v5341_v26  ;;  %v1346_v51 = vmax.f32 %v5839_v23, 0.0 }
 0x218   : > { %v5085_v49 = vpop.eup %5084  ;;  %v1289_v1 = vpop.f32.mrf.mxu0  ;;  %v1602_v2 = vadd.f32 1.0, %v5083_v18  ;;  %v1605_v16 = vmul.f32 -0.5, %v5083_v18  ;;  %v1608_v32 = vand.u32 2147483647, %v5083_v18 }
 0x219   : > { %5086 = vpow2.f32 %v1456_v58  ;;  %v5866_v3 = vadd.f32 %v5705_v45, %v1289_v1  ;;  %v1595_v4 = vmul.f32 0.6931472, %v5085_v49  ;;  %v1347_v58 = vmax.f32 %v5846_v43, 0.0  ;;  %v5904_v1 = vpop.permute.xlu0 %2359 }
 0x21a   : > { %5088 = vlog2.f32 %v1602_v2  ;;  %v1606_v30 = vadd.f32 1.0, %v1605_v16  ;;  %vm5887_vm12 = vcmp.lt.f32.partialorder %v1608_v32, 0.0004427343  ;;  %v5908_v16 = vpop.permute.xlu2 %2118  ;;  %vm2400_vm10 = vcmp.eq.s32.totalorder %v5904_v1, %v5675_v19 }
 0x21b   : > { %v1380_v41 = vand.u32 2147483647, %v5866_v3  ;;  %1328 = vmatmul.bf16.gmra.mxu0 %v4827_v61  ;;  %v1601_v11 = vsel %vm1600_vm9, %v1598_v5, %v1595_v4  ;;  %v5901_v61 = vpop.f32.mrf.mxu2  ;;  %v1348_v10 = vmax.f32 %v5866_v3, 0.0  ;;  %vm2399_vm9 = vcmp.eq.s32.totalorder %v5848_v48, %v5675_v19 }
 0x21c   : > { %v1793_v12 = vadd.f32 %v1601_v11, %v1345_v7  ;;  %v1607_v38 = vmul.f32 %v5083_v18, %v1606_v30  ;;  %v5906_v8 = vpop.permute.xlu1 %2113 }
 0x21d   : > { %v1412_v15 = vsub.f32 0.0, %v1380_v41 }
 0x21e   : > { %v4421_v21 = vadd.f32 -0.6931472, %v1793_v12 }
 0x21f   : > { %v5087_v24 = vpop.eup %5086  ;;  %v1458_v25 = vmul.f32 1.442695, %v1412_v15 }
 0x220   : > { %v5089_v6 = vpop.eup %5088  ;;  %v1291_v27 = vpop.f32.mrf.mxu0  ;;  %v1851_v28 = vpack.c.bf16 %v4421_v21, %v4420_v20  ;;  %v1611_v59 = vadd.f32 1.0, %v5087_v24  ;;  %v1614_v31 = vmul.f32 -0.5, %v5087_v24  ;;  %v1617_v44 = vand.u32 2147483647, %v5087_v24 }
 0x221   : > { %5090 = vpow2.f32 %v1458_v25  ;;  %v5877_v29 = vadd.f32 %v5705_v45, %v1291_v27  ;;  %v1604_v35 = vmul.f32 0.6931472, %v5089_v6 }
 0x222   : > { %1963 = vmatmul.bf16.gmra.mxu1 %v1851_v28  ;;  %5092 = vlog2.f32 %v1611_v59  ;;  %v1615_v40 = vadd.f32 1.0, %v1614_v31  ;;  %vm1618_vm14 = vcmp.lt.f32.partialorder %v1617_v44, 0.0004427343 }
 0x223   : > { %v1381_v34 = vand.u32 2147483647, %v5877_v29  ;;  %v1610_v55 = vsel %vm5887_vm12, %v1607_v38, %v1604_v35  ;;  %v5918_v28 = vpop.f32.mrf.mxu2  ;;  %vm4564_vm12 = vmpackc.low %vm2400_vm10, %vm2399_vm9 }
 0x224   : > { %v1616_v18 = vmul.f32 %v5087_v24, %v1615_v40  ;;  %v1794_v63 = vadd.f32 %v1610_v55, %v1346_v51  ;;  %v1349_v51 = vmax.f32 %v5877_v29, 0.0 }
 0x225   : > { %v1413_v37 = vsub.f32 0.0, %v1381_v34 }
 0x226   : > { %v4422_v4 = vadd.f32 -0.6931472, %v1794_v63 }
 0x227   : > { %v5091_v46 = vpop.eup %5090  ;;  %v1460_v17 = vmul.f32 1.442695, %v1413_v37  ;;  %4559 = vmatmul.msk.bf16.gmra.mxu2 %vm4558_vm13, %v5341_v26  ;;  %v5924_v37 = vpop.permute.xlu0 %2368 }
 0x228   : > { %v5093_v50 = vpop.eup %5092  ;;  %v1294_v52 = vpop.f32.mrf.mxu0  ;;  %v1620_v53 = vadd.f32 1.0, %v5091_v46  ;;  %v1623_v39 = vmul.f32 -0.5, %v5091_v46  ;;  %v1626_v25 = vand.u32 2147483647, %v5091_v46  ;;  %vm2403_vm4 = vcmp.eq.s32.totalorder %v5924_v37, %v5675_v19 }
 0x229   : > { %5094 = vpow2.f32 %v1460_v17  ;;  %v5898_v56 = vadd.f32 %v5705_v45, %v1294_v52  ;;  %v1613_v57 = vmul.f32 0.6931472, %v5093_v50 }
 0x22a   : > { %5096 = vlog2.f32 %v1620_v53  ;;  %v1624_v21 = vadd.f32 1.0, %v1623_v39  ;;  %vm5920_vm1 = vcmp.lt.f32.partialorder %v1626_v25, 0.0004427343  ;;  %v5936_v53 = vpop.permute.xlu2 %2093 }
 0x22b   : > { %v1382_v49 = vand.u32 2147483647, %v5898_v56  ;;  %v1619_v23 = vsel %vm1618_vm14, %v1616_v18, %v1613_v57  ;;  %vm2402_vm14 = vcmp.eq.s32.totalorder %v5872_v13, %v5675_v19 }
 0x22c   : > { %v1795_v0 = vadd.f32 %v1619_v23, %v1347_v58  ;;  %v1625_v30 = vmul.f32 %v5091_v46, %v1624_v21  ;;  %v5930_v46 = vpop.permute.xlu1 %2108 }
 0x22d   : > { %v1414_v2 = vsub.f32 0.0, %v1382_v49  ;;  %v5939_v49 = vpop.f32.mrf.mxu2 }
 0x22e   : > { %v4423_v5 = vadd.f32 -0.6931472, %v1795_v0 }
 0x22f   : > { %v5095_v7 = vpop.eup %5094  ;;  %v1462_v41 = vmul.f32 1.442695, %v1414_v2 }
 0x230   : > { %v5097_v43 = vpop.eup %5096  ;;  %v1296_v11 = vpop.f32.mrf.mxu0  ;;  %v1852_v12 = vpack.c.bf16 %v4423_v5, %v4422_v4  ;;  %v1629_v15 = vadd.f32 1.0, %v5095_v7  ;;  %v1632_v24 = vmul.f32 -0.5, %v5095_v7  ;;  %v1635_v34 = vand.u32 2147483647, %v5095_v7 }
 0x231   : > { %5098 = vpow2.f32 %v1462_v41  ;;  %v5911_v20 = vadd.f32 %v5705_v45, %v1296_v11  ;;  %v1622_v27 = vmul.f32 0.6931472, %v5097_v43  ;;  %v5941_v41 = vpop.permute.xlu0 %2128 }
 0x232   : > { %1968 = vmatmul.bf16.gmra.mxu1 %v1852_v12  ;;  %5100 = vlog2.f32 %v1629_v15  ;;  %v1633_v31 = vadd.f32 1.0, %v1632_v24  ;;  %vm1636_vm3 = vcmp.lt.f32.partialorder %v1635_v34, 0.0004427343 }
 0x233   : > { %v1383_v6 = vand.u32 2147483647, %v5911_v20  ;;  %v1628_v22 = vsel %vm5920_vm1, %v1625_v30, %v1622_v27  ;;  %vm4566_vm1 = vmpackc.low %vm2402_vm14, %vm2401_vm15 }
 0x234   : > { %v1634_v50 = vmul.f32 %v5095_v7, %v1633_v31  ;;  %v1796_v52 = vadd.f32 %v1628_v22, %v1348_v10  ;;  %v5946_v21 = vpop.permute.xlu1 %2083 }
 0x235   : > { %v1415_v59 = vsub.f32 0.0, %v1383_v6  ;;  %v5953_v6 = vpop.permute.xlu2 %2088  ;;  %v5962_v33 = vpop.f32.mrf.mxu2 }
 0x236   : > { %v4424_v23 = vadd.f32 -0.6931472, %v1796_v52 }
 0x237   : > { %v5099_v35 = vpop.eup %5098  ;;  %v1464_v38 = vmul.f32 1.442695, %v1415_v59  ;;  %4561 = vmatmul.msk.bf16.gmra.mxu2 %vm4560_vm2, %v5341_v26 }
 0x238   : > { %v5101_v40 = vpop.eup %5100  ;;  %v1299_v42 = vpop.f32.mrf.mxu0  ;;  %v1638_v44 = vadd.f32 1.0, %v5099_v35  ;;  %v1641_v63 = vmul.f32 -0.5, %v5099_v35  ;;  %v1644_v15 = vand.u32 2147483647, %v5099_v35 }
 0x239   : > { %5102 = vpow2.f32 %v1464_v38  ;;  %v5933_v17 = vadd.f32 %v5705_v45, %v1299_v42  ;;  %v1631_v55 = vmul.f32 0.6931472, %v5101_v40  ;;  %v1350_v40 = vmax.f32 %v5898_v56, 0.0  ;;  %v5969_v52 = vpop.permute.xlu0 %2103 }
 0x23a   : > { %5104 = vlog2.f32 %v1638_v44  ;;  %v1642_v11 = vadd.f32 1.0, %v1641_v63  ;;  %vm5955_vm6 = vcmp.lt.f32.partialorder %v1644_v15, 0.0004427343 }
 0x23b   : > { %v1384_v3 = vand.u32 2147483647, %v5933_v17  ;;  %v1637_v57 = vsel %vm1636_vm3, %v1634_v50, %v1631_v55  ;;  %v1351_v50 = vmax.f32 %v5911_v20, 0.0  ;;  %v1352_v48 = vmax.f32 %v5933_v17, 0.0 }
 0x23c   : > { %v1797_v18 = vadd.f32 %v1637_v57, %v1349_v51  ;;  %v1643_v59 = vmul.f32 %v5099_v35, %v1642_v11  ;;  %vm2404_vm3 = vcmp.eq.s32.totalorder %v5885_v36, %v5675_v19 }
 0x23d   : > { %v1416_v58 = vsub.f32 0.0, %v1384_v3  ;;  %vm4568_vm5 = vmpackc.low %vm2404_vm3, %vm2403_vm4 }
 0x23e   : > { %v4425_v0 = vadd.f32 -0.6931472, %v1797_v18  ;;  %v5972_v18 = vpop.permute.xlu1 %2078 }
 0x23f   : > { %v5103_v2 = vpop.eup %5102  ;;  %v1466_v39 = vmul.f32 1.442695, %v1416_v58 }
 0x240   : > { %v5105_v4 = vpop.eup %5104  ;;  %v1301_v5 = vpop.f32.mrf.mxu0  ;;  %v1853_v29 = vpack.c.bf16 %v4425_v0, %v4424_v23  ;;  %v1647_v7 = vadd.f32 1.0, %v5103_v2  ;;  %v1650_v12 = vmul.f32 -0.5, %v5103_v2  ;;  %v1653_v32 = vand.u32 2147483647, %v5103_v2 }
 0x241   : > { %5106 = vpow2.f32 %v1466_v39  ;;  %v5944_v43 = vadd.f32 %v5705_v45, %v1301_v5  ;;  %v1640_v25 = vmul.f32 0.6931472, %v5105_v4  ;;  %v5977_v5 = vld [vmem:[%s5530_s30] ss:$0 sm:$0xff] }
 0x242   : > { %1973 = vmatmul.bf16.gmra.mxu1 %v1853_v29  ;;  %5108 = vlog2.f32 %v1647_v7  ;;  %v1651_v30 = vadd.f32 1.0, %v1650_v12  ;;  %vm1654_vm8 = vcmp.lt.f32.partialorder %v1653_v32, 0.0004427343  ;;  %v5980_v12 = vld [vmem:[%s5514_s1] ss:$0 sm:$0xff] }
 0x243   : > { %v1385_v24 = vand.u32 2147483647, %v5944_v43  ;;  %v1646_v22 = vsel %vm5955_vm6, %v1643_v59, %v1640_v25 }
 0x244   : > { %v1652_v55 = vmul.f32 %v5103_v2, %v1651_v30  ;;  %v1798_v51 = vadd.f32 %v1646_v22, %v1350_v40  ;;  %v5974_v2 = vpop.permute.xlu2 %2063 }
 0x245   : > { %v1417_v27 = vsub.f32 0.0, %v1385_v24 }
 0x246   : > { %v4426_v63 = vadd.f32 -0.6931472, %v1798_v51 }
 0x247   : > { %v5107_v34 = vpop.eup %5106  ;;  %v1468_v38 = vmul.f32 1.442695, %v1417_v27  ;;  %4563 = vmatmul.msk.bf16.gmra.mxu2 %vm4562_vm7, %v5341_v26  ;;  %v5985_v27 = vpop.f32.mrf.mxu2 }
 0x248   : > { %v5109_v60 = vpop.eup %5108  ;;  %v1304_v10 = vpop.f32.mrf.mxu0  ;;  %v1656_v35 = vadd.f32 1.0, %v5107_v34  ;;  %v1662_v59 = vand.u32 2147483647, %v5107_v34 }
 0x249   : > { %5110 = vpow2.f32 %v1468_v38  ;;  %v5966_v42 = vadd.f32 %v5705_v45, %v1304_v10  ;;  %v1649_v44 = vmul.f32 0.6931472, %v5109_v60  ;;  %v1659_v45 = vmul.f32 -0.5, %v5107_v34  ;;  %v5993_v38 = vpop.permute.xlu0 %2098 }
 0x24a   : > { %5112 = vlog2.f32 %v1656_v35  ;;  %vm5995_vm11 = vcmp.lt.f32.partialorder %v1662_v59, 0.0004427343 }
 0x24b   : > { %v1386_v56 = vand.u32 2147483647, %v5966_v42  ;;  %v1655_v3 = vsel %vm1654_vm8, %v1652_v55, %v1649_v44  ;;  %v1660_v24 = vadd.f32 1.0, %v1659_v45  ;;  %v2054_v55 = vpop.permute.xlu1 %2053 }
 0x24c   : > { %v1799_v57 = vadd.f32 %v1655_v3, %v1351_v50  ;;  %v1353_v3 = vmax.f32 %v5944_v43, 0.0 }
 0x24d   : > { %v1418_v58 = vsub.f32 0.0, %v1386_v56  ;;  %v1661_v60 = vmul.f32 %v5107_v34, %v1660_v24 }
 0x24e   : > { %v4427_v23 = vadd.f32 -0.6931472, %v1799_v57 }
 0x24f   : > { %v5111_v0 = vpop.eup %5110  ;;  %v1470_v20 = vmul.f32 1.442695, %v1418_v58  ;;  %v1939_v39 = vpop.f32.mrf.mxu1 }
 0x250   : > { %v5113_v4 = vpop.eup %5112  ;;  %v1306_v29 = vpop.f32.mrf.mxu0  ;;  %v1854_v7 = vpack.c.bf16 %v4427_v23, %v4426_v63  ;;  %v1665_v11 = vadd.f32 1.0, %v5111_v0  ;;  %v1668_v25 = vmul.f32 -0.5, %v5111_v0  ;;  %v1940_v32 = vadd.f32 %v5977_v5, %v1939_v39 }
 0x251   : > { %5114 = vpow2.f32 %v1470_v20  ;;  %v5983_v15 = vadd.f32 %v5980_v12, %v1306_v29  ;;  %v1658_v31 = vmul.f32 0.6931472, %v5113_v4  ;;  %v1671_v35 = vand.u32 2147483647, %v5111_v0  ;;  %v2059_v63 = vpop.permute.xlu2 %2058 }
 0x252   : > { %1978 = vmatmul.bf16.gmra.mxu1 %v1854_v7  ;;  %5116 = vlog2.f32 %v1665_v11  ;;  %v1669_v40 = vadd.f32 1.0, %v1668_v25  ;;  %v2211_v34 = vmul.f32 %v2054_v55, %v1940_v32  ;;  %v6009_v7 = vpop.f32.mrf.mxu2 }
 0x253   : > { %v1387_v30 = vand.u32 2147483647, %v5983_v15  ;;  %v1664_v1 = vsel %vm5995_vm11, %v1661_v60, %v1658_v31  ;;  %vm1672_vm13 = vcmp.lt.f32.partialorder %v1671_v35, 0.0004427343  ;;  %v6019_v60 = vpop.permute.xlu0 %2073 }
 0x254   : > { %v1670_v20 = vmul.f32 %v5111_v0, %v1669_v40  ;;  %v1800_v4 = vadd.f32 %v1664_v1, %v1352_v48  ;;  %v6012_v24 = vmul.f32 %v5854_v54, %v2211_v34 }
 0x255   : > { %v1419_v22 = vsub.f32 0.0, %v1387_v30 }
 0x256   : > { %v4428_v31 = vadd.f32 -0.6931472, %v1800_v4 }
 0x257   : > { %v5115_v44 = vpop.eup %5114  ;;  %v1472_v50 = vmul.f32 1.442695, %v1419_v22  ;;  %v1941_v51 = vpop.f32.mrf.mxu1  ;;  %4565 = vmatmul.msk.bf16.gmra.mxu2 %vm4564_vm12, %v5341_v26 }
 0x258   : > { %v5117_v56 = vpop.eup %5116  ;;  %v1942_v57 = vadd.f32 %v5977_v5, %v1941_v51  ;;  %v1309_v58 = vpop.f32.mrf.mxu0  ;;  %v1674_v45 = vadd.f32 1.0, %v5115_v44  ;;  %v1677_v30 = vmul.f32 -0.5, %v5115_v44  ;;  %v1680_v1 = vand.u32 2147483647, %v5115_v44 }
 0x259   : > { %5118 = vpow2.f32 %v1472_v50  ;;  %v6006_v23 = vadd.f32 %v5980_v12, %v1309_v58  ;;  %v1667_v17 = vmul.f32 0.6931472, %v5117_v56 }
 0x25a   : > { %v2212_v39 = vmul.f32 %v2059_v63, %v1942_v57  ;;  %5120 = vlog2.f32 %v1674_v45  ;;  %v1678_v50 = vadd.f32 1.0, %v1677_v30  ;;  %v6030_v63 = vpop.f32.mrf.mxu2  ;;  %vm6032_vm0 = vcmp.lt.f32.partialorder %v1680_v1, 0.0004427343 }
 0x25b   : > { %v1388_v43 = vand.u32 2147483647, %v6006_v23  ;;  %v1673_v29 = vsel %vm1672_vm13, %v1670_v20, %v1667_v17 }
 0x25c   : > { %v1801_v11 = vadd.f32 %v1673_v29, %v1353_v3  ;;  %v6015_v25 = vmul.f32 %v5874_v62, %v2212_v39  ;;  %v1679_v58 = vmul.f32 %v5115_v44, %v1678_v50  ;;  %v1354_v29 = vmax.f32 %v5966_v42, 0.0 }
 0x25d   : > { %v1420_v59 = vsub.f32 0.0, %v1388_v43 }
 0x25e   : > { %v4429_v0 = vadd.f32 -0.6931472, %v1801_v11  ;;  %v2670_v32 = vpack.c.bf16 %v6015_v25, %v6012_v24 }
 0x25f   : > { %v5119_v22 = vpop.eup %5118  ;;  %v1474_v40 = vmul.f32 1.442695, %v1420_v59  ;;  %v1944_v10 = vpop.f32.mrf.mxu1 }
 0x260   : > { %v5121_v35 = vpop.eup %5120  ;;  %v1311_v55 = vpop.f32.mrf.mxu0  ;;  %v1855_v48 = vpack.c.bf16 %v4429_v0, %v4428_v31  ;;  %v1683_v54 = vadd.f32 1.0, %v5119_v22  ;;  %v1686_v51 = vmul.f32 -0.5, %v5119_v22  ;;  %v1945_v34 = vadd.f32 %v5977_v5, %v1944_v10 }
 0x261   : > { %5122 = vpow2.f32 %v1474_v40  ;;  %v6022_v62 = vadd.f32 %v5980_v12, %v1311_v55  ;;  %v1676_v3 = vmul.f32 0.6931472, %v5121_v35  ;;  %v1689_v20 = vand.u32 2147483647, %v5119_v22  ;;  %v2069_v31 = vpop.permute.xlu0 %2068 }
 0x262   : > { %1983 = vmatmul.bf16.gmra.mxu1 %v1855_v48  ;;  %5124 = vlog2.f32 %v1683_v54  ;;  %v1687_v45 = vadd.f32 1.0, %v1686_v51  ;;  %v2213_v44 = vmul.f32 %v5974_v2, %v1945_v34  ;;  %v1355_v35 = vmax.f32 %v5983_v15, 0.0 }
 0x263   : > { %v1389_v56 = vand.u32 2147483647, %v6022_v62  ;;  %v1682_v13 = vsel %vm6032_vm0, %v1679_v58, %v1676_v3  ;;  %vm1690_vm2 = vcmp.lt.f32.partialorder %v1689_v20, 0.0004427343 }
 0x264   : > { %v1688_v10 = vmul.f32 %v5119_v22, %v1687_v45  ;;  %v1802_v42 = vadd.f32 %v1682_v13, %v1354_v29  ;;  %v6048_v50 = vmul.f32 %v5901_v61, %v2213_v44  ;;  %v6055_v45 = vpop.f32.mrf.mxu2 }
 0x265   : > { %v1421_v57 = vsub.f32 0.0, %v1389_v56 }
 0x266   : > { %v4430_v56 = vadd.f32 -0.6931472, %v1802_v42 }
 0x267   : > { %v5123_v39 = vpop.eup %5122  ;;  %v1476_v4 = vmul.f32 1.442695, %v1421_v57  ;;  %v1946_v43 = vpop.f32.mrf.mxu1  ;;  %4567 = vmatmul.msk.bf16.gmra.mxu2 %vm4566_vm1, %v5341_v26 }
 0x268   : > { %v5125_v9 = vpop.eup %5124  ;;  %v1947_v11 = vadd.f32 %v5977_v5, %v1946_v43  ;;  %v1314_v59 = vpop.f32.mrf.mxu0  ;;  %v1692_v30 = vadd.f32 1.0, %v5123_v39  ;;  %v1695_v22 = vmul.f32 -0.5, %v5123_v39  ;;  %v1698_v29 = vand.u32 2147483647, %v5123_v39 }
 0x269   : > { %5126 = vpow2.f32 %v1476_v4  ;;  %v6043_v0 = vadd.f32 %v5980_v12, %v1314_v59  ;;  %v1685_v40 = vmul.f32 0.6931472, %v5125_v9 }
 0x26a   : > { %v2214_v55 = vmul.f32 %v2069_v31, %v1947_v11  ;;  %5128 = vlog2.f32 %v1692_v30  ;;  %v1696_v13 = vadd.f32 1.0, %v1695_v22  ;;  %vm6067_vm6 = vcmp.lt.f32.partialorder %v1698_v29, 0.0004427343 }
 0x26b   : > { %v1390_v2 = vand.u32 2147483647, %v6043_v0  ;;  %v1691_v48 = vsel %vm1690_vm2, %v1688_v10, %v1685_v40  ;;  %v1357_v22 = vmax.f32 %v6022_v62, 0.0 }
 0x26c   : > { %v1803_v54 = vadd.f32 %v1691_v48, %v1355_v35  ;;  %v6051_v51 = vmul.f32 %v5918_v28, %v2214_v55  ;;  %v1697_v31 = vmul.f32 %v5123_v39, %v1696_v13  ;;  %v1356_v35 = vmax.f32 %v6006_v23, 0.0 }
 0x26d   : > { %v1422_v1 = vsub.f32 0.0, %v1390_v2 }
 0x26e   : > { %v4431_v3 = vadd.f32 -0.6931472, %v1803_v54  ;;  %v2671_v15 = vpack.c.bf16 %v6051_v51, %v6048_v50 }
 0x26f   : > { %v5127_v34 = vpop.eup %5126  ;;  %v1478_v57 = vmul.f32 1.442695, %v1422_v1  ;;  %v1949_v58 = vpop.f32.mrf.mxu1 }
 0x270   : > { %v1316_v17 = vpop.f32.mrf.mxu0  ;;  %v1856_v20 = vpack.c.bf16 %v4431_v3, %v4430_v56  ;;  %v1701_v4 = vadd.f32 1.0, %v5127_v34  ;;  %v5129_v61 = vpop.eup %5128  ;;  %v1704_v43 = vmul.f32 -0.5, %v5127_v34  ;;  %v1950_v44 = vadd.f32 %v5977_v5, %v1949_v58 }
 0x271   : > { %5130 = vpow2.f32 %v1478_v57  ;;  %v6058_v28 = vadd.f32 %v5980_v12, %v1316_v17  ;;  %v1694_v11 = vmul.f32 0.6931472, %v5129_v61  ;;  %v1707_v40 = vand.u32 2147483647, %v5127_v34  ;;  %v6079_v3 = vpop.f32.mrf.mxu2 }
 0x272   : > { %1988 = vmatmul.bf16.gmra.mxu1 %v1856_v20  ;;  %5132 = vlog2.f32 %v1701_v4  ;;  %v1705_v30 = vadd.f32 1.0, %v1704_v43  ;;  %v2215_v19 = vmul.f32 %v6019_v60, %v1950_v44 }
 0x273   : > { %v1391_v9 = vand.u32 2147483647, %v6058_v28  ;;  %v1700_v39 = vsel %vm6067_vm6, %v1697_v31, %v1694_v11  ;;  %vm1708_vm7 = vcmp.lt.f32.partialorder %v1707_v40, 0.0004427343 }
 0x274   : > { %v1706_v56 = vmul.f32 %v5127_v34, %v1705_v30  ;;  %v1804_v17 = vadd.f32 %v1700_v39, %v1356_v35  ;;  %v6085_v4 = vmul.f32 %v5939_v49, %v2215_v19 }
 0x275   : > { %v1423_v59 = vsub.f32 0.0, %v1391_v9 }
 0x276   : > { %v4432_v44 = vadd.f32 -0.6931472, %v1804_v17 }
 0x277   : > { %v5131_v10 = vpop.eup %5130  ;;  %v1480_v55 = vmul.f32 1.442695, %v1423_v59  ;;  %v1951_v42 = vpop.f32.mrf.mxu1  ;;  %4569 = vmatmul.msk.bf16.gmra.mxu2 %vm4568_vm5, %v5341_v26 }
 0x278   : > { %v5133_v36 = vpop.eup %5132  ;;  %v1710_v48 = vadd.f32 1.0, %v5131_v10  ;;  %v1952_v37 = vadd.f32 %v5977_v5, %v1951_v42  ;;  %v1319_v54 = vpop.f32.mrf.mxu0  ;;  %v1713_v43 = vmul.f32 -0.5, %v5131_v10  ;;  %v1716_v35 = vand.u32 2147483647, %v5131_v10 }
 0x279   : > { %5134 = vpow2.f32 %v1480_v55  ;;  %v6077_v23 = vadd.f32 %v5980_v12, %v1319_v54  ;;  %v1703_v1 = vmul.f32 0.6931472, %v5133_v36  ;;  %v6096_v42 = vpop.f32.mrf.mxu2 }
 0x27a   : > { %v2216_v60 = vmul.f32 %v5972_v18, %v1952_v37  ;;  %5136 = vlog2.f32 %v1710_v48  ;;  %v1714_v40 = vadd.f32 1.0, %v1713_v43  ;;  %vm6100_vm8 = vcmp.lt.f32.partialorder %v1716_v35, 0.0004427343 }
 0x27b   : > { %v1392_v57 = vand.u32 2147483647, %v6077_v23  ;;  %v1709_v58 = vsel %vm1708_vm7, %v1706_v56, %v1703_v1  ;;  %v1358_v1 = vmax.f32 %v6043_v0, 0.0 }
 0x27c   : > { %v1805_v20 = vadd.f32 %v1709_v58, %v1357_v22  ;;  %v6088_v61 = vmul.f32 %v5962_v33, %v2216_v60  ;;  %v1715_v37 = vmul.f32 %v5131_v10, %v1714_v40 }
 0x27d   : > { %v1424_v34 = vsub.f32 0.0, %v1392_v57 }
 0x27e   : > { %v4433_v13 = vadd.f32 -0.6931472, %v1805_v20  ;;  %v2672_v62 = vpack.c.bf16 %v6088_v61, %v6085_v4 }
 0x27f   : > { %v5135_v18 = vpop.eup %5134  ;;  %v1482_v9 = vmul.f32 1.442695, %v1424_v34  ;;  %v1954_v29 = vpop.f32.mrf.mxu1 }
 0x280   : > { %v1719_v11 = vadd.f32 1.0, %v5135_v18  ;;  %v1321_v59 = vpop.f32.mrf.mxu0  ;;  %v5137_v30 = vpop.eup %5136  ;;  %v1722_v31 = vmul.f32 -0.5, %v5135_v18  ;;  %v1857_v33 = vpack.c.bf16 %v4433_v13, %v4432_v44  ;;  %v1955_v36 = vadd.f32 %v5977_v5, %v1954_v29 }
 0x281   : > { %5138 = vpow2.f32 %v1482_v9  ;;  %v6093_v49 = vadd.f32 %v5980_v12, %v1321_v59  ;;  %v1712_v2 = vmul.f32 0.6931472, %v5137_v30  ;;  %v1725_v54 = vand.u32 2147483647, %v5135_v18 }
 0x282   : > { %5140 = vlog2.f32 %v1719_v11  ;;  %1993 = vmatmul.bf16.gmra.mxu1 %v1857_v33  ;;  %v1723_v48 = vadd.f32 1.0, %v1722_v31  ;;  %v2217_v20 = vmul.f32 %v5946_v21, %v1955_v36  ;;  %v1359_v9 = vmax.f32 %v6058_v28, 0.0  ;;  %v6120_v33 = vpop.f32.mrf.mxu2 }
 0x283   : > { %v1393_v55 = vand.u32 2147483647, %v6093_v49  ;;  %v1718_v58 = vsel %vm6100_vm8, %v1715_v37, %v1712_v2  ;;  %vm1726_vm9 = vcmp.lt.f32.partialorder %v1725_v54, 0.0004427343 }
 0x284   : > { %v1724_v13 = vmul.f32 %v5135_v18, %v1723_v48  ;;  %v1806_v44 = vadd.f32 %v1718_v58, %v1358_v1  ;;  %v6115_v30 = vmul.f32 %v5985_v27, %v2217_v20 }
 0x285   : > { %v1425_v19 = vsub.f32 0.0, %v1393_v55 }
 0x286   : > { %v4434_v55 = vadd.f32 -0.6931472, %v1806_v44 }
 0x287   : > { %v5139_v39 = vpop.eup %5138  ;;  %v1484_v22 = vmul.f32 1.442695, %v1425_v19  ;;  %v1956_v60 = vpop.f32.mrf.mxu1 }
 0x288   : > { %v5141_v57 = vpop.eup %5140  ;;  %v1728_v17 = vadd.f32 1.0, %v5139_v39  ;;  %v1957_v34 = vadd.f32 %v5977_v5, %v1956_v60  ;;  %v1324_v10 = vpop.f32.mrf.mxu0  ;;  %v1731_v28 = vmul.f32 -0.5, %v5139_v39  ;;  %v1734_v60 = vand.u32 2147483647, %v5139_v39 }
 0x289   : > { %v1721_v43 = vmul.f32 0.6931472, %v5141_v57  ;;  %5142 = vpow2.f32 %v1484_v22  ;;  %v6109_v0 = vadd.f32 %v5980_v12, %v1324_v10 }
 0x28a   : > { %v2218_v29 = vmul.f32 %v5953_v6, %v1957_v34  ;;  %5144 = vlog2.f32 %v1728_v17  ;;  %v1732_v56 = vadd.f32 1.0, %v1731_v28  ;;  %vm1735_vm10 = vcmp.lt.f32.partialorder %v1734_v60, 0.0004427343 }
 0x28b   : > { %v1727_v11 = vsel %vm1726_vm9, %v1724_v13, %v1721_v43  ;;  %v1394_v59 = vand.u32 2147483647, %v6109_v0 }
 0x28c   : > { %v1807_v21 = vadd.f32 %v1727_v11, %v1359_v9  ;;  %v6118_v18 = vmul.f32 %v6009_v7, %v2218_v29  ;;  %v1733_v10 = vmul.f32 %v5139_v39, %v1732_v56  ;;  %v6135_v11 = vpop.f32.mrf.mxu2  ;;  %v1361_v39 = vmax.f32 %v6093_v49, 0.0 }
 0x28d   : > { %v1426_v31 = vsub.f32 0.0, %v1394_v59 }
 0x28e   : > { %v4435_v40 = vadd.f32 -0.6931472, %v1807_v21  ;;  %v2673_v6 = vpack.c.bf16 %v6118_v18, %v6115_v30 }
 0x28f   : > { %v5143_v35 = vpop.eup %5142  ;;  %v1486_v2 = vmul.f32 1.442695, %v1426_v31  ;;  %v1959_v36 = vpop.f32.mrf.mxu1 }
 0x290   : > { %v1737_v48 = vadd.f32 1.0, %v5143_v35  ;;  %v1960_v19 = vadd.f32 %v5977_v5, %v1959_v36  ;;  %v1326_v27 = vpop.f32.mrf.mxu0  ;;  %v5145_v37 = vpop.eup %5144  ;;  %v1740_v54 = vmul.f32 -0.5, %v5143_v35  ;;  %v1858_v1 = vpack.c.bf16 %v4435_v40, %v4434_v55 }
 0x291   : > { %5146 = vpow2.f32 %v1486_v2  ;;  %v6126_v7 = vadd.f32 %v5980_v12, %v1326_v27  ;;  %v1730_v58 = vmul.f32 0.6931472, %v5145_v37  ;;  %v1743_v43 = vand.u32 2147483647, %v5143_v35 }
 0x292   : > { %5148 = vlog2.f32 %v1737_v48  ;;  %v2219_v22 = vmul.f32 %v5936_v53, %v1960_v19  ;;  %1998 = vmatmul.bf16.gmra.mxu1 %v1858_v1  ;;  %v1741_v20 = vadd.f32 1.0, %v1740_v54  ;;  %v1360_v53 = vmax.f32 %v6077_v23, 0.0 }
 0x293   : > { %v1395_v57 = vand.u32 2147483647, %v6126_v7  ;;  %v1736_v59 = vsel %vm1735_vm10, %v1733_v10, %v1730_v58  ;;  %vm1744_vm11 = vcmp.lt.f32.partialorder %v1743_v43, 0.0004427343 }
 0x294   : > { %v6131_v17 = vmul.f32 %v6030_v63, %v2219_v22  ;;  %v1742_v63 = vmul.f32 %v5143_v35, %v1741_v20  ;;  %v1808_v55 = vadd.f32 %v1736_v59, %v1360_v53  ;;  %v6148_v20 = vpop.f32.mrf.mxu2 }
 0x295   : > { %v1427_v34 = vsub.f32 0.0, %v1395_v57 }
 0x296   : > { %v4436_v54 = vadd.f32 -0.6931472, %v1808_v55 }
 0x297   : > { %v5147_v13 = vpop.eup %5146  ;;  %v1488_v9 = vmul.f32 1.442695, %v1427_v34  ;;  %v6133_v29 = vpop.f32.mrf.mxu1 }
 0x298   : > { %v5149_v44 = vpop.eup %5148  ;;  %v1746_v21 = vadd.f32 1.0, %v5147_v13  ;;  %v1329_v31 = vpop.f32.mrf.mxu0  ;;  %v1749_v27 = vmul.f32 -0.5, %v5147_v13  ;;  %v1752_v10 = vand.u32 2147483647, %v5147_v13 }
 0x299   : > { %v1739_v40 = vmul.f32 0.6931472, %v5149_v44  ;;  %5150 = vpow2.f32 %v1488_v9  ;;  %v6139_v28 = vadd.f32 %v5980_v12, %v1329_v31 }
 0x29a   : > { %5152 = vlog2.f32 %v1746_v21  ;;  %v1750_v34 = vadd.f32 1.0, %v1749_v27  ;;  %vm1753_vm12 = vcmp.lt.f32.partialorder %v1752_v10, 0.0004427343 }
 0x29b   : > { %v1745_v2 = vsel %vm1744_vm11, %v1742_v63, %v1739_v40  ;;  %v1396_v36 = vand.u32 2147483647, %v6139_v28  ;;  %v6151_v40 = vpop.permute.xlu0 %2203 }
 0x29c   : > { %v1809_v48 = vadd.f32 %v1745_v2, %v1361_v39  ;;  %v1751_v59 = vmul.f32 %v5147_v13, %v1750_v34 }
 0x29d   : > { %v1428_v19 = vsub.f32 0.0, %v1396_v36  ;;  %v1362_v36 = vmax.f32 %v6109_v0, 0.0 }
 0x29e   : > { %v4437_v23 = vadd.f32 -0.6931472, %v1809_v48 }
 0x29f   : > { %v5151_v37 = vpop.eup %5150  ;;  %v1490_v1 = vmul.f32 1.442695, %v1428_v19  ;;  %v6143_v35 = vpop.f32.mrf.mxu1 }
 0x2a0   : > { %v1755_v56 = vadd.f32 1.0, %v5151_v37  ;;  %v1331_v22 = vpop.f32.mrf.mxu0  ;;  %v5153_v60 = vpop.eup %5152  ;;  %v1758_v57 = vmul.f32 -0.5, %v5151_v37  ;;  %v1859_v58 = vpack.c.bf16 %v4437_v23, %v4436_v54  ;;  %v1761_v21 = vand.u32 2147483647, %v5151_v37 }
 0x2a1   : > { %5154 = vpow2.f32 %v1490_v1  ;;  %v6146_v49 = vadd.f32 %v5980_v12, %v1331_v22  ;;  %v1748_v9 = vmul.f32 0.6931472, %v5153_v60  ;;  %v1363_v23 = vmax.f32 %v6126_v7, 0.0  ;;  %v2595_v54 = vpop.f32.mrf.mxu2 }
 0x2a2   : > { %5156 = vlog2.f32 %v1755_v56  ;;  %2003 = vmatmul.bf16.gmra.mxu1 %v1859_v58  ;;  %v1759_v44 = vadd.f32 1.0, %v1758_v57  ;;  %vm1762_vm13 = vcmp.lt.f32.partialorder %v1761_v21, 0.0004427343  ;;  %v6157_v57 = vpop.permute.xlu2 %2193 }
 0x2a3   : > { %v1397_v43 = vand.u32 2147483647, %v6146_v49  ;;  %v1754_v55 = vsel %vm1753_vm12, %v1751_v59, %v1748_v9 }
 0x2a4   : > { %v1760_v19 = vmul.f32 %v5151_v37, %v1759_v44  ;;  %v1810_v13 = vadd.f32 %v1754_v55, %v1362_v36 }
 0x2a5   : > { %v1429_v53 = vsub.f32 0.0, %v1397_v43  ;;  %v6159_v43 = vpop.permute.xlu0 %2198 }
 0x2a6   : > { %v4438_v58 = vadd.f32 -0.6931472, %v1810_v13 }
 0x2a7   : > { %v5155_v31 = vpop.eup %5154  ;;  %v1492_v12 = vmul.f32 1.442695, %v1429_v53  ;;  %v6153_v63 = vpop.f32.mrf.mxu1 }
 0x2a8   : > { %v5157_v39 = vpop.eup %5156  ;;  %v1764_v2 = vadd.f32 1.0, %v5155_v31  ;;  %v1767_v56 = vmul.f32 -0.5, %v5155_v31  ;;  %v1770_v44 = vand.u32 2147483647, %v5155_v31 }
 0x2a9   : > { %v1757_v48 = vmul.f32 0.6931472, %v5157_v39  ;;  %5158 = vpow2.f32 %v1492_v12  ;;  %v6161_v12 = vpop.f32.mrf.mxu2 }
 0x2aa   : > { %5160 = vlog2.f32 %v1764_v2  ;;  %v1768_v37 = vadd.f32 1.0, %v1767_v56  ;;  %vm1771_vm14 = vcmp.lt.f32.partialorder %v1770_v44, 0.0004427343 }
 0x2ab   : > { %v1763_v27 = vsel %vm1762_vm13, %v1760_v19, %v1757_v48  ;;  %v1364_v48 = vmax.f32 %v6139_v28, 0.0  ;;  %v6164_v19 = vpop.permute.xlu2 %2188 }
 0x2ac   : > { %v1811_v1 = vadd.f32 %v1763_v27, %v1363_v23  ;;  %v1769_v59 = vmul.f32 %v5155_v31, %v1768_v37 }
 0x2ad   : > { %v6167_v56 = vpop.permute.xlu0 %2173 }
 0x2ae   : > { %v4439_v22 = vadd.f32 -0.6931472, %v1811_v1  ;;  %v1365_v1 = vmax.f32 %v6146_v49, 0.0 }
 0x2af   : > { %v5159_v60 = vpop.eup %5158  ;;  %v1969_v34 = vpop.f32.mrf.mxu1 }
 0x2b0   : > { %v5161_v10 = vpop.eup %5160  ;;  %v1773_v0 = vadd.f32 1.0, %v5159_v60  ;;  %v1776_v9 = vmul.f32 -0.5, %v5159_v60  ;;  %v1860_v7 = vpack.c.bf16 %v4439_v22, %v4438_v58  ;;  %v1779_v39 = vand.u32 2147483647, %v5159_v60 }
 0x2b1   : > { %v1766_v53 = vmul.f32 0.6931472, %v5161_v10  ;;  %v2600_v37 = vpop.f32.mrf.mxu2 }
 0x2b2   : > { %5162 = vlog2.f32 %v1773_v0  ;;  %2008 = vmatmul.bf16.gmra.mxu1 %v1860_v7  ;;  %v1777_v21 = vadd.f32 1.0, %v1776_v9  ;;  %vm1780_vm15 = vcmp.lt.f32.partialorder %v1779_v39, 0.0004427343  ;;  %v6169_v7 = vpop.permute.xlu1 %2208 }
 0x2b3   : > { %v1772_v55 = vsel %vm1771_vm14, %v1769_v59, %v1766_v53  ;;  %v6171_v28 = vpop.permute.xlu2 %2163  ;;  %v1970_v59 = vadd.f32 %v5977_v5, %v1969_v34 }
 0x2b4   : > { %v1778_v13 = vmul.f32 %v5159_v60, %v1777_v21  ;;  %v1812_v27 = vadd.f32 %v1772_v55, %v1364_v48 }
 0x2b5   : > { %v6174_v44 = vpop.permute.xlu0 %2168 }
 0x2b6   : > { %v4440_v58 = vadd.f32 -0.6931472, %v1812_v27  ;;  %v2223_v27 = vmul.f32 %v5906_v8, %v1970_v59 }
 0x2b7   : > { %v1971_v2 = vpop.f32.mrf.mxu1 }
 0x2b8   : > { %v5163_v36 = vpop.eup %5162  ;;  %v1972_v49 = vadd.f32 %v5977_v5, %v1971_v2  ;;  %v1965_v2 = vadd.f32 %v5977_v5, %v6143_v35  ;;  %v2650_v8 = vmul.f32 %v6120_v33, %v2223_v27 }
 0x2b9   : > { %v1775_v23 = vmul.f32 0.6931472, %v5163_v36  ;;  %v2603_v55 = vpop.f32.mrf.mxu2  ;;  %v1967_v36 = vadd.f32 %v5977_v5, %v6153_v63 }
 0x2ba   : > { %v2224_v48 = vmul.f32 %v5908_v16, %v1972_v49 }
 0x2bb   : > { %v1781_v31 = vsel %vm1780_vm15, %v1778_v13, %v1775_v23  ;;  %v6184_v13 = vpop.permute.xlu1 %2183  ;;  %v2222_v63 = vmul.f32 %v5930_v46, %v1967_v36 }
 0x2bc   : > { %v1813_v22 = vadd.f32 %v1781_v31, %v1365_v1  ;;  %v6190_v1 = vpop.permute.xlu2 %2158  ;;  %v1962_v31 = vadd.f32 %v5977_v5, %v6133_v29 }
 0x2be   : > { %v4441_v10 = vadd.f32 -0.6931472, %v1813_v22  ;;  %v2144_v22 = vpop.permute.xlu0 %2143  ;;  %v2220_v35 = vmul.f32 %v5993_v38, %v1962_v31 }
 0x2bf   : > { %v1974_v0 = vpop.f32.mrf.mxu1 }
 0x2c0   : > { %v1861_v9 = vpack.c.bf16 %v4441_v10, %v4440_v58  ;;  %v1975_v60 = vadd.f32 %v5977_v5, %v1974_v0  ;;  %v2221_v10 = vmul.f32 %v5969_v52, %v1965_v2 }
 0x2c1   : > { %v2605_v0 = vpop.f32.mrf.mxu2 }
 0x2c2   : > { %2013 = vmatmul.bf16.gmra.mxu1 %v1861_v9  ;;  %v2225_v21 = vmul.f32 %v5891_v47, %v1975_v60  ;;  %v2648_v46 = vmul.f32 %v6079_v3, %v2221_v10  ;;  %v2647_v60 = vmul.f32 %v6055_v45, %v2220_v35 }
 0x2c3   : > { %v6202_v9 = vpop.permute.xlu1 %2178 }
 0x2c4   : > { %v2652_v34 = vmul.f32 %v6148_v20, %v2225_v21  ;;  %v2134_v52 = vpop.permute.xlu2 %2133  ;;  %v2674_v59 = vpack.c.bf16 %v2647_v60, %v6131_v17  ;;  %v6225_v17 = vld [vmem:[%s6961_s0] sm:$0x3] }
 0x2c5   : > { %v6235_v30 = vperm.slane %v6225_v17, 0 }
 0x2c7   : > { %v1976_v53 = vpop.f32.mrf.mxu1 }
 0x2c8   : > { %v1977_v39 = vadd.f32 %v5977_v5, %v1976_v53  ;;  %v2139_v53 = vpop.permute.xlu0 %2138 }
 0x2ca   : > { %v2226_v23 = vmul.f32 %v5941_v41, %v1977_v39  ;;  %v2651_v41 = vmul.f32 %v6135_v11, %v2224_v48  ;;  %v2608_v39 = vpop.f32.mrf.mxu2 }
 0x2cb   : > { %v2154_v36 = vpop.permute.xlu1 %2153 }
 0x2cc   : > { %v2653_v47 = vmul.f32 %v2595_v54, %v2226_v23  ;;  %v2676_v20 = vpack.c.bf16 %v2651_v41, %v2650_v8  ;;  %v2649_v54 = vmul.f32 %v6096_v42, %v2222_v63  ;;  %v6218_v23 = vshrl.u32 %v2243_v14, 7 }
 0x2ce   : > { %v2677_v16 = vpack.c.bf16 %v2653_v47, %v2652_v34  ;;  %v2675_v11 = vpack.c.bf16 %v2649_v54, %v2648_v46  ;;  %vm2706_vm0 = vcmp.eq.s32.totalorder %v6235_v30, %v6218_v23  ;;  %v6257_v47 = vadd.s32 16, %v6218_v23 }
 0x2cf   : > { %v1979_v58 = vpop.f32.mrf.mxu1  ;;  %v6260_v24 = vadd.s32 24, %v6218_v23  ;;  %v6277_v8 = vadd.s32 32, %v6218_v23  ;;  %v6280_v35 = vadd.s32 40, %v6218_v23 }
 0x2d0   : > { %2834 = vmatpush.bf16.msra.mxu3 %v2677_v16  ;;  %v1980_v29 = vadd.f32 %v5977_v5, %v1979_v58  ;;  %vm2710_vm3 = vcmp.eq.s32.totalorder %v6235_v30, %v6257_v47 }
 0x2d1   : > { %vm2712_vm4 = vcmp.eq.s32.totalorder %v6235_v30, %v6260_v24  ;;  %vm2714_vm6 = vcmp.eq.s32.totalorder %v6235_v30, %v6277_v8  ;;  %vm2716_vm7 = vcmp.eq.s32.totalorder %v6235_v30, %v6280_v35 }
 0x2d2   : > { %v2227_v33 = vmul.f32 %v2134_v52, %v1980_v29  ;;  %v2610_v18 = vpop.f32.mrf.mxu2  ;;  %vm4604_vm5 = vmpackc.low %vm2712_vm4, %vm2710_vm3 }
 0x2d3   : > { %v2149_v27 = vpop.permute.xlu1 %2148  ;;  %vm4606_vm8 = vmpackc.low %vm2716_vm7, %vm2714_vm6 }
 0x2d4   : > { %2835 = vmatpush.bf16.msra.mxu3 %v2676_v20  ;;  %v6208_v21 = vmul.f32 %v6161_v12, %v2227_v33 }
 0x2d7   : > { %v1981_v49 = vpop.f32.mrf.mxu1 }
 0x2d8   : > { %v1982_v38 = vadd.f32 %v5977_v5, %v1981_v49  ;;  %2836 = vmatpush.bf16.msra.mxu3 %v2675_v11 }
 0x2da   : > { %v2228_v42 = vmul.f32 %v2139_v53, %v1982_v38  ;;  %v6301_v38 = vadd.s32 48, %v6218_v23 }
 0x2dc   : > { %2837 = vmatpush.bf16.msra.mxu3 %v2674_v59  ;;  %v6210_v3 = vmul.f32 %v2600_v37, %v2228_v42  ;;  %v6232_v37 = vadd.s32 8, %v6218_v23  ;;  %vm2718_vm9 = vcmp.eq.s32.totalorder %v6235_v30, %v6301_v38 }
 0x2de   : > { %v2678_v45 = vpack.c.bf16 %v6210_v3, %v6208_v21  ;;  %vm2708_vm1 = vcmp.eq.s32.totalorder %v6235_v30, %v6232_v37 }
 0x2df   : > { %v1984_v48 = vpop.f32.mrf.mxu1  ;;  %vm4602_vm2 = vmpackc.low %vm2708_vm1, %vm2706_vm0 }
 0x2e0   : > { %2838 = vmatpush.bf16.msra.mxu3 %v2673_v6  ;;  %v1985_v12 = vadd.f32 %v5977_v5, %v1984_v48  ;;  %v6317_v48 = vadd.s32 72, %v6218_v23 }
 0x2e2   : > { %v2229_v6 = vmul.f32 %v2144_v22, %v1985_v12  ;;  %vm2724_vm13 = vcmp.eq.s32.totalorder %v6235_v30, %v6317_v48 }
 0x2e4   : > { %2839 = vmatpush.bf16.msra.mxu3 %v2672_v62  ;;  %v6248_v61 = vmul.f32 %v2603_v55, %v2229_v6  ;;  %v6325_v6 = vadd.s32 80, %v6218_v23 }
 0x2e6   : > { %vm2726_vm15 = vcmp.eq.s32.totalorder %v6235_v30, %v6325_v6 }
 0x2e7   : > { %v1986_v14 = vpop.f32.mrf.mxu1 }
 0x2e8   : > { %v1987_v2 = vadd.f32 %v5977_v5, %v1986_v14  ;;  %2840 = vmatpush.bf16.msra.mxu3 %v2671_v15  ;;  %v2613_v15 = vpop.f32.mrf.mxu2 }
 0x2ea   : > { %v2230_v4 = vmul.f32 %v2149_v27, %v1987_v2  ;;  %v6328_v2 = vadd.s32 88, %v6218_v23 }
 0x2ec   : > { %2841 = vmatpush.bf16.msra.mxu3 %v2670_v32  ;;  %v6250_v62 = vmul.f32 %v2605_v0, %v2230_v4  ;;  %vm2728_vm0 = vcmp.eq.s32.totalorder %v6235_v30, %v6328_v2 }
 0x2ed   : > { %vm4612_vm1 = vmpackc.low %vm2728_vm0, %vm2726_vm15 }
 0x2ee   : > { %v2679_v50 = vpack.c.bf16 %v6250_v62, %v6248_v61 }
 0x2ef   : > { %v1989_v51 = vpop.f32.mrf.mxu1  ;;  %4603 = vmatmul.msk.bf16.vlgmr.msra.gmra.mxu3 %vm4602_vm2, %v5341_v26 }
 0x2f0   : > { %v1990_v34 = vadd.f32 %v5977_v5, %v1989_v51  ;;  %v2615_v63 = vpop.f32.mrf.mxu2 }
 0x2f2   : > { %v2231_v32 = vmul.f32 %v2154_v36, %v1990_v34  ;;  %v6314_v36 = vadd.s32 64, %v6218_v23  ;;  %v6336_v34 = vadd.s32 96, %v6218_v23 }
 0x2f4   : > { %v6268_v16 = vmul.f32 %v2608_v39, %v2231_v32  ;;  %vm2722_vm12 = vcmp.eq.s32.totalorder %v6235_v30, %v6314_v36  ;;  %v6340_v32 = vadd.s32 104, %v6218_v23  ;;  %vm2730_vm2 = vcmp.eq.s32.totalorder %v6235_v30, %v6336_v34 }
 0x2f5   : > { %vm4610_vm14 = vmpackc.low %vm2724_vm13, %vm2722_vm12 }
 0x2f6   : > { %vm2732_vm3 = vcmp.eq.s32.totalorder %v6235_v30, %v6340_v32 }
 0x2f7   : > { %v1991_v25 = vpop.f32.mrf.mxu1  ;;  %vm4614_vm4 = vmpackc.low %vm2732_vm3, %vm2730_vm2 }
 0x2f8   : > { %v1992_v55 = vadd.f32 %v5977_v5, %v1991_v25 }
 0x2fa   : > { %v2232_v31 = vmul.f32 %v6190_v1, %v1992_v55  ;;  %v2618_v1 = vpop.f32.mrf.mxu2 }
 0x2fc   : > { %v6270_v41 = vmul.f32 %v2610_v18, %v2232_v31 }
 0x2fe   : > { %v2680_v22 = vpack.c.bf16 %v6270_v41, %v6268_v16 }
 0x2ff   : > { %4605 = vmatmul.msk.bf16.gmra.mxu3 %vm4604_vm5, %v5341_v26  ;;  %v1994_v58 = vpop.f32.mrf.mxu1 }
 0x300   : > { %v1995_v10 = vadd.f32 %v5977_v5, %v1994_v58 }
 0x302   : > { %v2233_v54 = vmul.f32 %v6171_v28, %v1995_v10  ;;  %v6296_v60 = vpop.f32.mrf.mxu2 }
 0x304   : > { %v6289_v46 = vmul.f32 %v2613_v15, %v2233_v54 }
 0x307   : > { %v1996_v20 = vpop.f32.mrf.mxu1 }
 0x308   : > { %v1997_v0 = vadd.f32 %v5977_v5, %v1996_v20 }
 0x30a   : > { %v2234_v29 = vmul.f32 %v6174_v44, %v1997_v0  ;;  %v6304_v44 = vadd.s32 56, %v6218_v23  ;;  %v2623_v59 = vpop.f32.mrf.mxu2 }
 0x30c   : > { %v6291_v11 = vmul.f32 %v2615_v63, %v2234_v29  ;;  %vm2720_vm10 = vcmp.eq.s32.totalorder %v6235_v30, %v6304_v44 }
 0x30d   : > { %vm4608_vm11 = vmpackc.low %vm2720_vm10, %vm2718_vm9 }
 0x30e   : > { %v2681_v28 = vpack.c.bf16 %v6291_v11, %v6289_v46  ;;  %v2818_v46 = vld [vmem:[#allocation4 + $0x30] sm:$0xff] }
 0x30f   : > { %4607 = vmatmul.msk.bf16.gmra.mxu3 %vm4606_vm8, %v5341_v26  ;;  %v1999_v52 = vpop.f32.mrf.mxu1 }
 0x310   : > { %v2000_v49 = vadd.f32 %v5977_v5, %v1999_v52 }
 0x312   : > { %v2235_v33 = vmul.f32 %v6167_v56, %v2000_v49  ;;  %v2625_v39 = vpop.f32.mrf.mxu2 }
 0x314   : > { %v6306_v53 = vmul.f32 %v2618_v1, %v2235_v33 }
 0x317   : > { %v2001_v42 = vpop.f32.mrf.mxu1 }
 0x31a   : > { %v2628_v14 = vpop.f32.mrf.mxu2 }
 0x31f   : > { %4609 = vmatmul.msk.bf16.gmra.mxu3 %vm4608_vm11, %v5341_v26  ;;  %v2004_v56 = vpop.f32.mrf.mxu1 }
 0x320   : > { %v2005_v29 = vadd.f32 %v5977_v5, %v2004_v56  ;;  %v2701_v56 = vadd.s32 112, %v6218_v23 }
 0x322   : > { %v2630_v27 = vpop.f32.mrf.mxu2  ;;  %vm2734_vm5 = vcmp.eq.s32.totalorder %v6235_v30, %v2701_v56 }
 0x327   : > { %v2006_v12 = vpop.f32.mrf.mxu1 }
 0x328   : > { %v2007_v1 = vadd.f32 %v5977_v5, %v2006_v12 }
 0x32a   : > { %v2633_v15 = vpop.f32.mrf.mxu2 }
 0x32f   : > { %4611 = vmatmul.msk.bf16.gmra.mxu3 %vm4610_vm14, %v5341_v26  ;;  %v2009_v18 = vpop.f32.mrf.mxu1 }
 0x330   : > { %v2010_v63 = vadd.f32 %v5977_v5, %v2009_v18 }
 0x332   : > { %v2635_v0 = vpop.f32.mrf.mxu2  ;;  %v2239_v52 = vmul.f32 %v6157_v57, %v2010_v63 }
 0x337   : > { %v2011_v4 = vpop.f32.mrf.mxu1 }
 0x338   : > { %v2012_v55 = vadd.f32 %v5977_v5, %v2011_v4  ;;  %v2238_v4 = vmul.f32 %v6164_v19, %v2007_v1 }
 0x33a   : > { %v2240_v20 = vmul.f32 %v6159_v43, %v2012_v55  ;;  %v2237_v43 = vmul.f32 %v6184_v13, %v2005_v29 }
 0x33c   : > { %v2667_v12 = vmul.f32 %v2630_v27, %v2240_v20  ;;  %v2664_v57 = vmul.f32 %v2623_v59, %v2237_v43 }
 0x33f   : > { %4613 = vmatmul.msk.bf16.gmra.mxu3 %vm4612_vm1, %v5341_v26  ;;  %v2014_v51 = vpop.f32.mrf.mxu1 }
 0x340   : > { %v2015_v25 = vadd.f32 %v5977_v5, %v2014_v51 }
 0x342   : > { %v2241_v58 = vmul.f32 %v6151_v40, %v2015_v25  ;;  %v5165_v40 = vld [vmem:[%s5530_s30] ss:$0 sm:$0xff] }
 0x343   : > { %v2002_v18 = vadd.f32 %v5165_v40, %v2001_v42  ;;  %v2702_v42 = vadd.s32 120, %v6218_v23 }
 0x344   : > { %v2668_v49 = vmul.f32 %v2633_v15, %v2241_v58  ;;  %v2823_v58 = vld [vmem:[#allocation4 + $0x28] sm:$0xff] }
 0x345   : > { %v2236_v25 = vmul.f32 %v6202_v9, %v2002_v18  ;;  %vm2736_vm6 = vcmp.eq.s32.totalorder %v6235_v30, %v2702_v42  ;;  %v2705_v9 = vperm.slane %v6225_v17, 1 }
 0x346   : > { %vm4616_vm7 = vmpackc.low %vm2736_vm6, %vm2734_vm5 }
 0x347   : > { %v2016_v31 = vpop.f32.mrf.mxu1  ;;  %v2663_v19 = vmul.f32 %v6296_v60, %v2236_v25  ;;  %vm2707_vm8 = vcmp.eq.s32.totalorder %v2705_v9, %v6218_v23  ;;  %vm2709_vm9 = vcmp.eq.s32.totalorder %v2705_v9, %v6232_v37  ;;  %vm2711_vm11 = vcmp.eq.s32.totalorder %v2705_v9, %v6257_v47 }
 0x348   : > { %v2017_v10 = vadd.f32 %v5977_v5, %v2016_v31  ;;  %v2665_v5 = vmul.f32 %v2625_v39, %v2238_v4  ;;  %vm4618_vm10 = vmpackc.low %vm2709_vm9, %vm2707_vm8  ;;  %vm2713_vm12 = vcmp.eq.s32.totalorder %v2705_v9, %v6260_v24  ;;  %vm2715_vm14 = vcmp.eq.s32.totalorder %v2705_v9, %v6277_v8  ;;  %v2820_v39 = vld [vmem:[#allocation4 + $0x40] sm:$0xff]  ;;  %v2826_v4 = vld [vmem:[#allocation4 + $0x78] sm:$0xff] }
 0x349   : > { %v2682_v13 = vpack.c.bf16 %v2663_v19, %v6306_v53  ;;  %vm4620_vm13 = vmpackc.low %vm2713_vm12, %vm2711_vm11  ;;  %vm2717_vm15 = vcmp.eq.s32.totalorder %v2705_v9, %v6280_v35  ;;  %vm2719_vm1 = vcmp.eq.s32.totalorder %v2705_v9, %v6301_v38  ;;  %vm2721_vm2 = vcmp.eq.s32.totalorder %v2705_v9, %v6304_v44  ;;  %v2819_v38 = vld [vmem:[#allocation4] sm:$0xff]  ;;  %v2829_v19 = vld [vmem:[#allocation4 + $0x70] sm:$0xff] }
 0x34a   : > { %v2242_v54 = vmul.f32 %v6169_v7, %v2017_v10  ;;  %v2666_v7 = vmul.f32 %v2628_v14, %v2239_v52  ;;  %v2683_v15 = vpack.c.bf16 %v2665_v5, %v2664_v57  ;;  %vm4622_vm0 = vmpackc.low %vm2717_vm15, %vm2715_vm14  ;;  %vm2725_vm5 = vcmp.eq.s32.totalorder %v2705_v9, %v6317_v48  ;;  %v2828_v57 = vld [vmem:[#allocation4 + $0x18] sm:$0xff] }
 0x34b   : > { %vm4624_vm3 = vmpackc.low %vm2721_vm2, %vm2719_vm1  ;;  %vm2729_vm8 = vcmp.eq.s32.totalorder %v2705_v9, %v6328_v2  ;;  %vm2733_vm11 = vcmp.eq.s32.totalorder %v2705_v9, %v6340_v32  ;;  %vm2737_vm14 = vcmp.eq.s32.totalorder %v2705_v9, %v2702_v42 }
 0x34c   : > { %v2669_v33 = vmul.f32 %v2635_v0, %v2242_v54  ;;  %v2684_v55 = vpack.c.bf16 %v2667_v12, %v2666_v7  ;;  %v2824_v54 = vld [vmem:[#allocation4 + $0x38] sm:$0xff]  ;;  %v2827_v7 = vld [vmem:[#allocation4 + $0x50] sm:$0xff] }
 0x34e   : > { %v2685_v51 = vpack.c.bf16 %v2669_v33, %v2668_v49  ;;  %v2825_v49 = vld [vmem:[#allocation4 + $0x20] sm:$0xff] }
 0x34f   : > { %4615 = vmatmul.msk.bf16.gmra.mxu3 %vm4614_vm4, %v5341_v26  ;;  %vm2723_vm4 = vcmp.eq.s32.totalorder %v2705_v9, %v6314_v36 }
 0x350   : > { %2883 = vmatpush.bf16.msrb.mxu3 %v2685_v51  ;;  %vm4626_vm6 = vmpackc.low %vm2725_vm5, %vm2723_vm4 }
 0x354   : > { %2884 = vmatpush.bf16.msrb.mxu3 %v2684_v55 }
 0x358   : > { %2885 = vmatpush.bf16.msrb.mxu3 %v2683_v15 }
 0x35c   : > { %2886 = vmatpush.bf16.msrb.mxu3 %v2682_v13 }
 0x35f   : > { %4617 = vmatmul.msk.bf16.gmra.mxu3 %vm4616_vm7, %v5341_v26  ;;  %vm2727_vm7 = vcmp.eq.s32.totalorder %v2705_v9, %v6325_v6 }
 0x360   : > { %2887 = vmatpush.bf16.msrb.mxu3 %v2681_v28  ;;  %vm4628_vm9 = vmpackc.low %vm2729_vm8, %vm2727_vm7 }
 0x364   : > { %2888 = vmatpush.bf16.msrb.mxu3 %v2680_v22 }
 0x368   : > { %2889 = vmatpush.bf16.msrb.mxu3 %v2679_v50 }
 0x36c   : > { %2890 = vmatpush.bf16.msrb.mxu3 %v2678_v45 }
 0x36f   : > { %4619 = vmatmul.msk.bf16.vlgmr.msrb.gmra.mxu3 %vm4618_vm10, %v5341_v26  ;;  %vm2731_vm10 = vcmp.eq.s32.totalorder %v2705_v9, %v6336_v34  ;;  %v2822_v34 = vld [vmem:[#allocation4 + $0x8] sm:$0xff] }
 0x370   : > { %vm4630_vm12 = vmpackc.low %vm2733_vm11, %vm2731_vm10 }
 0x372   : > { %v2843_v30 = vpop.f32.mrf.mxu3 }
 0x37a   : > { %v2845_v16 = vpop.f32.mrf.mxu3 }
 0x37f   : > { %4621 = vmatmul.msk.bf16.gmra.mxu3 %vm4620_vm13, %v5341_v26  ;;  %vm2735_vm13 = vcmp.eq.s32.totalorder %v2705_v9, %v2701_v56 }
 0x380   : > { %vm4632_vm15 = vmpackc.low %vm2737_vm14, %vm2735_vm13 }
 0x382   : > { %v2848_v17 = vpop.f32.mrf.mxu3 }
 0x38a   : > { %v2850_v61 = vpop.f32.mrf.mxu3 }
 0x38f   : > { %4623 = vmatmul.msk.bf16.gmra.mxu3 %vm4622_vm0, %v5341_v26 }
 0x392   : > { %v2853_v21 = vpop.f32.mrf.mxu3 }
 0x39a   : > { %v2855_v3 = vpop.f32.mrf.mxu3 }
 0x39f   : > { %4625 = vmatmul.msk.bf16.gmra.mxu3 %vm4624_vm3, %v5341_v26 }
 0x3a2   : > { %v2858_v45 = vpop.f32.mrf.mxu3 }
 0x3aa   : > { %v6392_v37 = vpop.f32.mrf.mxu3 }
 0x3af   : > { %4627 = vmatmul.msk.bf16.gmra.mxu3 %vm4626_vm6, %v5341_v26 }
 0x3b2   : > { %v6397_v62 = vpop.f32.mrf.mxu3 }
 0x3ba   : > { %v6399_v50 = vpop.f32.mrf.mxu3 }
 0x3bf   : > { %4629 = vmatmul.msk.bf16.gmra.mxu3 %vm4628_vm9, %v5341_v26 }
 0x3c2   : > { %v6404_v47 = vpop.f32.mrf.mxu3 }
 0x3ca   : > { %v6406_v24 = vpop.f32.mrf.mxu3 }
 0x3cf   : > { %4631 = vmatmul.msk.bf16.gmra.mxu3 %vm4630_vm12, %v5341_v26 }
 0x3d2   : > { %v6411_v41 = vpop.f32.mrf.mxu3 }
 0x3da   : > { %v6413_v22 = vpop.f32.mrf.mxu3 }
 0x3df   : > { %4633 = vmatmul.msk.bf16.gmra.mxu3 %vm4632_vm15, %v5341_v26  ;;  %v2821_v26 = vld [vmem:[#allocation4 + $0x58] sm:$0xff] }
 0x3e2   : > { %v6416_v8 = vpop.f32.mrf.mxu3 }
 0x3ea   : > { %v6418_v35 = vpop.f32.mrf.mxu3 }
 0x3f2   : > { %v2892_v11 = vpop.f32.mrf.mxu3 }
 0x3f3   : > { %v2893_v28 = vadd.f32 %v2892_v11, %v2843_v30 }
 0x3f5   : > { %v2932_v60 = vadd.f32 %v2893_v28, %v2818_v46 }
 0x3f7   : > { %2948 = vst [vmem:[#allocation4 + $0x30] sm:$0xff] %v2932_v60 }
 0x3fa   : > { %v2894_v44 = vpop.f32.mrf.mxu3 }
 0x3fb   : > { %v2895_v53 = vadd.f32 %v2894_v44, %v2845_v16  ;;  %v2830_v16 = vld [vmem:[#allocation4 + $0x60] sm:$0xff] }
 0x3fd   : > { %v2933_v59 = vadd.f32 %v2895_v53, %v2819_v38 }
 0x3ff   : > { %2949 = vst [vmem:[#allocation4] sm:$0xff] %v2933_v59 }
 0x402   : > { %v2897_v36 = vpop.f32.mrf.mxu3 }
 0x403   : > { %v2898_v48 = vadd.f32 %v2897_v36, %v2848_v17 }
 0x405   : > { %v2934_v14 = vadd.f32 %v2898_v48, %v2820_v39 }
 0x407   : > { %2950 = vst [vmem:[#allocation4 + $0x40] sm:$0xff] %v2934_v14 }
 0x40a   : > { %v2899_v6 = vpop.f32.mrf.mxu3 }
 0x40b   : > { %v2900_v2 = vadd.f32 %v2899_v6, %v2850_v61 }
 0x40d   : > { %v2935_v27 = vadd.f32 %v2900_v2, %v2821_v26 }
 0x40f   : > { %2951 = vst [vmem:[#allocation4 + $0x58] sm:$0xff] %v2935_v27 }
 0x412   : > { %v2902_v32 = vpop.f32.mrf.mxu3 }
 0x413   : > { %v2903_v31 = vadd.f32 %v2902_v32, %v2853_v21 }
 0x415   : > { %v2936_v63 = vadd.f32 %v2903_v31, %v2822_v34 }
 0x417   : > { %2952 = vst [vmem:[#allocation4 + $0x8] sm:$0xff] %v2936_v63 }
 0x41a   : > { %v2904_v10 = vpop.f32.mrf.mxu3 }
 0x41b   : > { %v2905_v1 = vadd.f32 %v2904_v10, %v2855_v3  ;;  %v2831_v3 = vld [vmem:[#allocation4 + $0x10] sm:$0xff] }
 0x41d   : > { %v2937_v20 = vadd.f32 %v2905_v1, %v2823_v58 }
 0x41f   : > { %2953 = vst [vmem:[#allocation4 + $0x28] sm:$0xff] %v2937_v20 }
 0x422   : > { %v2907_v0 = vpop.f32.mrf.mxu3 }
 0x423   : > { %v2908_v29 = vadd.f32 %v2907_v0, %v2858_v45 }
 0x425   : > { %v2938_v52 = vadd.f32 %v2908_v29, %v2824_v54 }
 0x427   : > { %2954 = vst [vmem:[#allocation4 + $0x38] sm:$0xff] %v2938_v52 }
 0x42a   : > { %v2909_v33 = vpop.f32.mrf.mxu3 }
 0x42b   : > { %v2910_v40 = vadd.f32 %v2909_v33, %v6392_v37 }
 0x42d   : > { %v2939_v18 = vadd.f32 %v2910_v40, %v2825_v49 }
 0x42f   : > { %2955 = vst [vmem:[#allocation4 + $0x20] sm:$0xff] %v2939_v18 }
 0x432   : > { %v2912_v51 = vpop.f32.mrf.mxu3 }
 0x433   : > { %v2913_v12 = vadd.f32 %v2912_v51, %v6397_v62 }
 0x435   : > { %v2940_v43 = vadd.f32 %v2913_v12, %v2826_v4 }
 0x437   : > { %2956 = vst [vmem:[#allocation4 + $0x78] sm:$0xff] %v2940_v43 }
 0x43a   : > { %v2914_v25 = vpop.f32.mrf.mxu3 }
 0x43b   : > { %v2915_v55 = vadd.f32 %v2914_v25, %v6399_v50  ;;  %v2832_v50 = vld [vmem:[#allocation4 + $0x68] sm:$0xff] }
 0x43d   : > { %v2941_v5 = vadd.f32 %v2915_v55, %v2827_v7 }
 0x43f   : > { %2957 = vst [vmem:[#allocation4 + $0x50] sm:$0xff] %v2941_v5 }
 0x442   : > { %v2917_v56 = vpop.f32.mrf.mxu3 }
 0x443   : > { %v2918_v42 = vadd.f32 %v2917_v56, %v6404_v47 }
 0x445   : > { %v2942_v15 = vadd.f32 %v2918_v42, %v2828_v57 }
 0x447   : > { %2958 = vst [vmem:[#allocation4 + $0x18] sm:$0xff] %v2942_v15 }
 0x44a   : > { %v2919_v13 = vpop.f32.mrf.mxu3 }
 0x44b   : > { %v2920_v9 = vadd.f32 %v2919_v13, %v6406_v24  ;;  %v2833_v24 = vld [vmem:[#allocation4 + $0x48] sm:$0xff] }
 0x44d   : > { %v2943_v30 = vadd.f32 %v2920_v9, %v2829_v19 }
 0x44f   : > { %2959 = vst [vmem:[#allocation4 + $0x70] sm:$0xff] %v2943_v30 }
 0x452   : > { %v2922_v17 = vpop.f32.mrf.mxu3 }
 0x453   : > { %v2923_v61 = vadd.f32 %v2922_v17, %v6411_v41 }
 0x455   : > { %v2944_v21 = vadd.f32 %v2923_v61, %v2830_v16 }
 0x457   : > { %2960 = vst [vmem:[#allocation4 + $0x60] sm:$0xff] %v2944_v21 }
 0x45a   : > { %v2924_v45 = vpop.f32.mrf.mxu3 }
 0x45b   : > { %v2925_v37 = vadd.f32 %v2924_v45, %v6413_v22 }
 0x45d   : > { %v2945_v62 = vadd.f32 %v2925_v37, %v2831_v3 }
 0x45f   : > { %2961 = vst [vmem:[#allocation4 + $0x10] sm:$0xff] %v2945_v62 }
 0x462   : > { %v2927_v47 = vpop.f32.mrf.mxu3 }
 0x463   : > { %v2928_v46 = vadd.f32 %v2927_v47, %v6416_v8 }
 0x465   : > { %v2946_v11 = vadd.f32 %v2928_v46, %v2832_v50 }
 0x467   : > { %2962 = vst [vmem:[#allocation4 + $0x68] sm:$0xff] %v2946_v11 }
 0x46a   : > { %v2929_v28 = vpop.f32.mrf.mxu3 }
 0x46b   : > { %v2930_v60 = vadd.f32 %v2929_v28, %v6418_v35  ;;  %2967 = sbr.rel (%p4634_p13) target bundleno = 1536 (0x600), region = 108 }
 0x46d   : > { %v2947_v38 = vadd.f32 %v2930_v60, %v2833_v24 }
 0x46f   : > { %2963 = vst [vmem:[#allocation4 + $0x48] sm:$0xff] %v2947_v38 }
 0x470   : > { %v4859_v41 = vld [vmem:[%s5540_s19 + $0x38] sm:$0xff]  ;;  %v4858_v22 = vld [vmem:[%s5540_s19 + $0x30] sm:$0xff]  ;;  %v4857_v8 = vld [vmem:[%s5540_s19 + $0x28] sm:$0xff] }
 0x471   : > { %3060 = vmatpush.bf16.msra.mxu0 %v4859_v41  ;;  %4955 = vmatpush.bf16.msra.mxu2 %v4859_v41  ;;  %v4856_v35 = vld [vmem:[%s5540_s19 + $0x20] sm:$0xff]  ;;  %v4855_v44 = vld [vmem:[%s5540_s19 + $0x18] sm:$0xff]  ;;  %v4854_v53 = vld [vmem:[%s5540_s19 + $0x10] sm:$0xff] }
 0x472   : > { %v4853_v59 = vld [vmem:[%s5540_s19 + $0x8] sm:$0xff]  ;;  %v4852_v39 = vld [vmem:[%s5540_s19] sm:$0xff]  ;;  %v2968_v36 = vld [vmem:[#allocation4 + $0x30] sm:$0xff] }
 0x473   : > { %v2969_v48 = vld [vmem:[#allocation4] sm:$0xff]  ;;  %v2976_v14 = vld [vmem:[#allocation4 + $0x78] sm:$0xff]  ;;  %v2977_v26 = vld [vmem:[#allocation4 + $0x50] sm:$0xff] }
 0x474   : > { %v2984_v6 = vpack.c.bf16 %v2969_v48, %v2968_v36  ;;  %v2988_v2 = vpack.c.bf16 %v2977_v26, %v2976_v14  ;;  %v2970_v27 = vld [vmem:[#allocation4 + $0x40] sm:$0xff]  ;;  %v2971_v34 = vld [vmem:[#allocation4 + $0x58] sm:$0xff]  ;;  %v2979_v31 = vld [vmem:[#allocation4 + $0x70] sm:$0xff] }
 0x475   : > { %3061 = vmatpush.bf16.msra.mxu0 %v4858_v22  ;;  %4956 = vmatpush.bf16.msra.mxu2 %v4858_v22  ;;  %v2978_v32 = vld [vmem:[#allocation4 + $0x18] sm:$0xff]  ;;  %v2985_v63 = vpack.c.bf16 %v2971_v34, %v2970_v27  ;;  %v2972_v10 = vld [vmem:[#allocation4 + $0x8] sm:$0xff]  ;;  %v2980_v20 = vld [vmem:[#allocation4 + $0x60] sm:$0xff] }
 0x476   : > { %v2989_v58 = vpack.c.bf16 %v2979_v31, %v2978_v32  ;;  %v2973_v1 = vld [vmem:[#allocation4 + $0x28] sm:$0xff]  ;;  %v2981_v54 = vld [vmem:[#allocation4 + $0x10] sm:$0xff]  ;;  %v2974_v52 = vld [vmem:[#allocation4 + $0x38] sm:$0xff] }
 0x477   : > { %v2986_v0 = vpack.c.bf16 %v2973_v1, %v2972_v10  ;;  %v2990_v29 = vpack.c.bf16 %v2981_v54, %v2980_v20  ;;  %v2975_v49 = vld [vmem:[#allocation4 + $0x20] sm:$0xff]  ;;  %v2982_v33 = vld [vmem:[#allocation4 + $0x68] sm:$0xff]  ;;  %v4867_v51 = vld [vmem:[%s5549_s28 + $0x38] sm:$0xff] }
 0x478   : > { %v2983_v40 = vld [vmem:[#allocation4 + $0x48] sm:$0xff]  ;;  %v2987_v18 = vpack.c.bf16 %v2975_v49, %v2974_v52  ;;  %3441 = vmatpush.bf16.msra.mxu1 %v4867_v51  ;;  %4963 = vmatpush.bf16.msra.mxu3 %v4867_v51  ;;  %v4866_v12 = vld [vmem:[%s5549_s28 + $0x30] sm:$0xff]  ;;  %v4864_v7 = vld [vmem:[%s5549_s28 + $0x20] sm:$0xff] }
 0x479   : > { %3062 = vmatpush.bf16.msra.mxu0 %v4857_v8  ;;  %4957 = vmatpush.bf16.msra.mxu2 %v4857_v8  ;;  %v2991_v4 = vpack.c.bf16 %v2983_v40, %v2982_v33  ;;  %v4865_v43 = vld [vmem:[%s5549_s28 + $0x28] sm:$0xff]  ;;  %v4863_v25 = vld [vmem:[%s5549_s28 + $0x18] sm:$0xff]  ;;  %v6449_v55 = vld [vmem:[%s814_s17] ss:$0 sm:$0xff] }
 0x47a   : > { %v4862_v5 = vld [vmem:[%s5549_s28 + $0x10] sm:$0xff]  ;;  %v4861_v42 = vld [vmem:[%s5549_s28 + $0x8] sm:$0xff]  ;;  %v4860_v13 = vld [vmem:[%s5549_s28] sm:$0xff] }
 0x47c   : > { %3442 = vmatpush.bf16.msra.mxu1 %v4866_v12  ;;  %4964 = vmatpush.bf16.msra.mxu3 %v4866_v12 }
 0x47d   : > { %3063 = vmatpush.bf16.msra.mxu0 %v4856_v35  ;;  %4958 = vmatpush.bf16.msra.mxu2 %v4856_v35 }
 0x480   : > { %3443 = vmatpush.bf16.msra.mxu1 %v4865_v43  ;;  %4965 = vmatpush.bf16.msra.mxu3 %v4865_v43 }
 0x481   : > { %3064 = vmatpush.bf16.msra.mxu0 %v4855_v44  ;;  %4959 = vmatpush.bf16.msra.mxu2 %v4855_v44 }
 0x484   : > { %3444 = vmatpush.bf16.msra.mxu1 %v4864_v7  ;;  %4966 = vmatpush.bf16.msra.mxu3 %v4864_v7 }
 0x485   : > { %3065 = vmatpush.bf16.msra.mxu0 %v4854_v53  ;;  %4960 = vmatpush.bf16.msra.mxu2 %v4854_v53 }
 0x488   : > { %3445 = vmatpush.bf16.msra.mxu1 %v4863_v25  ;;  %4967 = vmatpush.bf16.msra.mxu3 %v4863_v25 }
 0x489   : > { %3066 = vmatpush.bf16.msra.mxu0 %v4853_v59  ;;  %4961 = vmatpush.bf16.msra.mxu2 %v4853_v59 }
 0x48c   : > { %3446 = vmatpush.bf16.msra.mxu1 %v4862_v5  ;;  %4968 = vmatpush.bf16.msra.mxu3 %v4862_v5 }
 0x48d   : > { %3067 = vmatpush.bf16.msra.mxu0 %v4852_v39  ;;  %4962 = vmatpush.bf16.msra.mxu2 %v4852_v39 }
 0x490   : > { %3068 = vmatmul.bf16.vlgmr.msra.gmra.mxu0 %v2984_v6  ;;  %3088 = vmatmul.bf16.vlgmr.msra.gmra.mxu2 %v2988_v2 }
 0x491   : > { %3447 = vmatpush.bf16.msra.mxu1 %v4861_v42  ;;  %4969 = vmatpush.bf16.msra.mxu3 %v4861_v42 }
 0x495   : > { %3448 = vmatpush.bf16.msra.mxu1 %v4860_v13  ;;  %4970 = vmatpush.bf16.msra.mxu3 %v4860_v13 }
 0x4a0   : > { %3073 = vmatmul.bf16.gmra.mxu0 %v2985_v63  ;;  %3093 = vmatmul.bf16.gmra.mxu2 %v2989_v58 }
 0x4b0   : > { %3078 = vmatmul.bf16.gmra.mxu0 %v2986_v0  ;;  %3098 = vmatmul.bf16.gmra.mxu2 %v2990_v29 }
 0x4c0   : > { %3083 = vmatmul.bf16.gmra.mxu0 %v2987_v18  ;;  %3103 = vmatmul.bf16.gmra.mxu2 %v2991_v4 }
 0x50d   : > { %v3069_v57 = vpop.f32.mrf.mxu0 }
 0x50e   : > { %v6453_v56 = vadd.f32 %v6449_v55, %v3069_v57 }
 0x510   : > { %v3125_v15 = vand.u32 2147483647, %v6453_v56  ;;  %v3109_v26 = vmax.f32 %v6453_v56, 0.0 }
 0x512   : > { %v3141_v19 = vsub.f32 0.0, %v3125_v15 }
 0x513   : > { %v3089_v9 = vpop.f32.mrf.mxu2 }
 0x514   : > { %v3157_v30 = vmul.f32 1.442695, %v3141_v19  ;;  %v6459_v16 = vadd.f32 %v6449_v55, %v3089_v9 }
 0x515   : > { %v3071_v17 = vpop.f32.mrf.mxu0 }
 0x516   : > { %5168 = vpow2.f32 %v3157_v30  ;;  %v3133_v61 = vand.u32 2147483647, %v6459_v16  ;;  %v6463_v21 = vadd.f32 %v6449_v55, %v3071_v17  ;;  %v3117_v29 = vmax.f32 %v6459_v16, 0.0 }
 0x518   : > { %v3149_v3 = vsub.f32 0.0, %v3133_v61  ;;  %v3126_v45 = vand.u32 2147483647, %v6463_v21  ;;  %v3110_v40 = vmax.f32 %v6463_v21, 0.0 }
 0x51a   : > { %v3173_v37 = vmul.f32 1.442695, %v3149_v3  ;;  %v3142_v62 = vsub.f32 0.0, %v3126_v45 }
 0x51b   : > { %v3091_v50 = vpop.f32.mrf.mxu2 }
 0x51c   : > { %v5169_v47 = vpop.eup %5168  ;;  %5170 = vpow2.f32 %v3173_v37  ;;  %v3159_v46 = vmul.f32 1.442695, %v3142_v62  ;;  %v6467_v11 = vadd.f32 %v6449_v55, %v3091_v50 }
 0x51d   : > { %v3074_v24 = vpop.f32.mrf.mxu0  ;;  %v3189_v28 = vadd.f32 1.0, %v5169_v47  ;;  %v3192_v41 = vmul.f32 -0.5, %v5169_v47  ;;  %v3195_v36 = vand.u32 2147483647, %v5169_v47 }
 0x51e   : > { %5172 = vpow2.f32 %v3159_v46  ;;  %v3134_v60 = vand.u32 2147483647, %v6467_v11  ;;  %v6471_v38 = vadd.f32 %v6449_v55, %v3074_v24  ;;  %v3118_v18 = vmax.f32 %v6467_v11, 0.0 }
 0x51f   : > { %5174 = vlog2.f32 %v3189_v28  ;;  %v3193_v59 = vadd.f32 1.0, %v3192_v41  ;;  %vm6482_vm0 = vcmp.lt.f32.partialorder %v3195_v36, 0.0004427343 }
 0x520   : > { %v3150_v22 = vsub.f32 0.0, %v3134_v60  ;;  %v3127_v8 = vand.u32 2147483647, %v6471_v38  ;;  %v3111_v4 = vmax.f32 %v6471_v38, 0.0 }
 0x521   : > { %v3194_v1 = vmul.f32 %v5169_v47, %v3193_v59 }
 0x522   : > { %v5171_v35 = vpop.eup %5170  ;;  %v3175_v44 = vmul.f32 1.442695, %v3150_v22  ;;  %v3143_v53 = vsub.f32 0.0, %v3127_v8 }
 0x523   : > { %v3094_v39 = vpop.f32.mrf.mxu2  ;;  %v3261_v48 = vadd.f32 1.0, %v5171_v35  ;;  %v3264_v63 = vmul.f32 -0.5, %v5171_v35  ;;  %v3267_v33 = vand.u32 2147483647, %v5171_v35 }
 0x524   : > { %v5173_v14 = vpop.eup %5172  ;;  %5176 = vpow2.f32 %v3175_v44  ;;  %v3161_v6 = vmul.f32 1.442695, %v3143_v53  ;;  %v6476_v2 = vadd.f32 %v6449_v55, %v3094_v39 }
 0x525   : > { %v5175_v27 = vpop.eup %5174  ;;  %v3076_v34 = vpop.f32.mrf.mxu0  ;;  %v3198_v32 = vadd.f32 1.0, %v5173_v14  ;;  %v3201_v31 = vmul.f32 -0.5, %v5173_v14  ;;  %5178 = vlog2.f32 %v3261_v48  ;;  %v3265_v51 = vadd.f32 1.0, %v3264_v63 }
 0x526   : > { %5180 = vpow2.f32 %v3161_v6  ;;  %v3135_v58 = vand.u32 2147483647, %v6476_v2  ;;  %v6480_v10 = vadd.f32 %v6449_v55, %v3076_v34  ;;  %v3191_v20 = vmul.f32 0.6931472, %v5175_v27 }
 0x527   : > { %5182 = vlog2.f32 %v3198_v32  ;;  %v3202_v0 = vadd.f32 1.0, %v3201_v31  ;;  %v3204_v5 = vand.u32 2147483647, %v5173_v14  ;;  %v3119_v56 = vmax.f32 %v6476_v2, 0.0 }
 0x528   : > { %v3151_v52 = vsub.f32 0.0, %v3135_v58  ;;  %v3128_v49 = vand.u32 2147483647, %v6480_v10  ;;  %v3197_v25 = vsel %vm6482_vm0, %v3194_v1, %v3191_v20  ;;  %vm6497_vm1 = vcmp.lt.f32.partialorder %v3267_v33, 0.0004427343 }
 0x529   : > { %v3203_v15 = vmul.f32 %v5173_v14, %v3202_v0  ;;  %v3333_v3 = vadd.f32 %v3197_v25, %v3109_v26  ;;  %v3266_v37 = vmul.f32 %v5171_v35, %v3265_v51  ;;  %vm3205_vm2 = vcmp.lt.f32.partialorder %v3204_v5, 0.0004427343 }
 0x52a   : > { %v5177_v12 = vpop.eup %5176  ;;  %v3177_v43 = vmul.f32 1.442695, %v3151_v52  ;;  %v3144_v7 = vsub.f32 0.0, %v3128_v49 }
 0x52b   : > { %v5179_v57 = vpop.eup %5178  ;;  %v3096_v42 = vpop.f32.mrf.mxu2  ;;  %v3270_v19 = vadd.f32 1.0, %v5177_v12  ;;  %v3273_v13 = vmul.f32 -0.5, %v5177_v12  ;;  %v3276_v47 = vand.u32 2147483647, %v5177_v12  ;;  %v4667_v44 = vadd.f32 -0.6931472, %v3333_v3 }
 0x52c   : > { %v5181_v9 = vpop.eup %5180  ;;  %5184 = vpow2.f32 %v3177_v43  ;;  %v3163_v30 = vmul.f32 1.442695, %v3144_v7  ;;  %v6495_v16 = vadd.f32 %v6449_v55, %v3096_v42  ;;  %v3263_v45 = vmul.f32 0.6931472, %v5179_v57 }
 0x52d   : > { %v5183_v61 = vpop.eup %5182  ;;  %v3079_v21 = vpop.f32.mrf.mxu0  ;;  %5186 = vlog2.f32 %v3270_v19  ;;  %v3274_v28 = vadd.f32 1.0, %v3273_v13  ;;  %v3207_v60 = vadd.f32 1.0, %v5181_v9  ;;  %v3210_v53 = vmul.f32 -0.5, %v5181_v9 }
 0x52e   : > { %5188 = vpow2.f32 %v3163_v30  ;;  %v3136_v62 = vand.u32 2147483647, %v6495_v16  ;;  %v6503_v50 = vadd.f32 %v6449_v55, %v3079_v21  ;;  %v3200_v46 = vmul.f32 0.6931472, %v5183_v61 }
 0x52f   : > { %v3269_v24 = vsel %vm6497_vm1, %v3266_v37, %v3263_v45  ;;  %5190 = vlog2.f32 %v3207_v60  ;;  %vm6510_vm3 = vcmp.lt.f32.partialorder %v3276_v47, 0.0004427343  ;;  %v3275_v27 = vmul.f32 %v5177_v12, %v3274_v28 }
 0x530   : > { %v3152_v41 = vsub.f32 0.0, %v3136_v62  ;;  %v3129_v22 = vand.u32 2147483647, %v6503_v50  ;;  %v3341_v8 = vadd.f32 %v3269_v24, %v3117_v29  ;;  %v3206_v35 = vsel %vm3205_vm2, %v3203_v15, %v3200_v46 }
 0x531   : > { %v3334_v48 = vadd.f32 %v3206_v35, %v3110_v40  ;;  %v3211_v32 = vadd.f32 1.0, %v3210_v53  ;;  %v3213_v31 = vand.u32 2147483647, %v5181_v9  ;;  %v3112_v61 = vmax.f32 %v6480_v10, 0.0 }
 0x532   : > { %v6508_v59 = vpop.eup %5184  ;;  %v3179_v39 = vmul.f32 1.442695, %v3152_v41  ;;  %v3145_v36 = vsub.f32 0.0, %v3129_v22  ;;  %v4675_v34 = vadd.f32 -0.6931472, %v3341_v8  ;;  %v3120_v60 = vmax.f32 %v6495_v16, 0.0 }
 0x533   : > { %v5187_v26 = vpop.eup %5186  ;;  %v3099_v6 = vpop.f32.mrf.mxu2  ;;  %v4668_v20 = vadd.f32 -0.6931472, %v3334_v48  ;;  %v3279_v49 = vadd.f32 1.0, %v6508_v59  ;;  %v3282_v51 = vmul.f32 -0.5, %v6508_v59  ;;  %v3212_v25 = vmul.f32 %v5181_v9, %v3211_v32 }
 0x534   : > { %v5189_v63 = vpop.eup %5188  ;;  %5192 = vpow2.f32 %v3179_v39  ;;  %v3165_v58 = vmul.f32 1.442695, %v3145_v36  ;;  %v6515_v1 = vadd.f32 %v6449_v55, %v3099_v6  ;;  %v3272_v0 = vmul.f32 0.6931472, %v5187_v26 }
 0x535   : > { %v3081_v54 = vpop.f32.mrf.mxu0  ;;  %v3216_v29 = vadd.f32 1.0, %v5189_v63  ;;  %v3219_v52 = vmul.f32 -0.5, %v5189_v63  ;;  %v5191_v12 = vpop.eup %5190  ;;  %v3365_v43 = vpack.c.bf16 %v4668_v20, %v4667_v44  ;;  %vm6528_vm4 = vcmp.lt.f32.partialorder %v3213_v31, 0.0004427343 }
 0x536   : > { %5194 = vpow2.f32 %v3165_v58  ;;  %v3137_v33 = vand.u32 2147483647, %v6515_v1  ;;  %v6520_v40 = vadd.f32 %v6449_v55, %v3081_v54  ;;  %v3278_v7 = vsel %vm6510_vm3, %v3275_v27, %v3272_v0 }
 0x537   : > { %5196 = vlog2.f32 %v3216_v29  ;;  %v3342_v42 = vadd.f32 %v3278_v7, %v3118_v18  ;;  %3449 = vmatmul.bf16.vlgmr.msra.gmra.mxu1 %v3365_v43  ;;  %v3209_v19 = vmul.f32 0.6931472, %v5191_v12  ;;  %v3220_v13 = vadd.f32 1.0, %v3219_v52 }
 0x538   : > { %v3153_v5 = vsub.f32 0.0, %v3137_v33  ;;  %v3130_v57 = vand.u32 2147483647, %v6520_v40  ;;  %v3222_v30 = vand.u32 2147483647, %v5189_v63  ;;  %5198 = vlog2.f32 %v3279_v49 }
 0x539   : > { %v4676_v3 = vadd.f32 -0.6931472, %v3342_v42  ;;  %v3215_v11 = vsel %vm6528_vm4, %v3212_v25, %v3209_v19  ;;  %v3283_v18 = vadd.f32 1.0, %v3282_v51  ;;  %v3285_v37 = vand.u32 2147483647, %v6508_v59 }
 0x53a   : > { %v5193_v17 = vpop.eup %5192  ;;  %v3181_v9 = vmul.f32 1.442695, %v3153_v5  ;;  %v3146_v21 = vsub.f32 0.0, %v3130_v57  ;;  %v3221_v22 = vmul.f32 %v5189_v63, %v3220_v13  ;;  %vm6542_vm5 = vcmp.lt.f32.partialorder %v3222_v30, 0.0004427343 }
 0x53b   : > { %v3101_v45 = vpop.f32.mrf.mxu2  ;;  %v3288_v62 = vadd.f32 1.0, %v5193_v17  ;;  %v3369_v28 = vpack.c.bf16 %v4676_v3, %v4675_v34  ;;  %v3335_v53 = vadd.f32 %v3215_v11, %v3111_v4  ;;  %vm6552_vm6 = vcmp.lt.f32.partialorder %v3285_v37, 0.0004427343 }
 0x53c   : > { %v6536_v47 = vpop.eup %5194  ;;  %5200 = vpow2.f32 %v3181_v9  ;;  %v3167_v46 = vmul.f32 1.442695, %v3146_v21  ;;  %v6539_v24 = vadd.f32 %v6449_v55, %v3101_v45  ;;  %v3291_v48 = vmul.f32 -0.5, %v5193_v17 }
 0x53d   : > { %v5197_v10 = vpop.eup %5196  ;;  %v3084_v41 = vpop.f32.mrf.mxu0  ;;  %5202 = vlog2.f32 %v3288_v62  ;;  %3469 = vmatmul.bf16.vlgmr.msra.gmra.mxu3 %v3369_v28  ;;  %v3225_v14 = vadd.f32 1.0, %v6536_v47  ;;  %v3284_v34 = vmul.f32 %v6508_v59, %v3283_v18  ;;  %v3294_v4 = vand.u32 2147483647, %v5193_v17 }
 0x53e   : > { %5204 = vpow2.f32 %v3167_v46  ;;  %v3138_v35 = vand.u32 2147483647, %v6539_v24  ;;  %v6548_v44 = vadd.f32 %v6449_v55, %v3084_v41  ;;  %v5199_v39 = vpop.eup %5198  ;;  %v3218_v36 = vmul.f32 0.6931472, %v5197_v10 }
 0x53f   : > { %v3281_v27 = vmul.f32 0.6931472, %v5199_v39  ;;  %v3292_v38 = vadd.f32 1.0, %v3291_v48  ;;  %5206 = vlog2.f32 %v3225_v14  ;;  %v3113_v29 = vmax.f32 %v6503_v50, 0.0 }
 0x540   : > { %v3154_v26 = vsub.f32 0.0, %v3138_v35  ;;  %v3131_v6 = vand.u32 2147483647, %v6548_v44  ;;  %v3224_v32 = vsel %vm6542_vm5, %v3221_v22, %v3218_v36  ;;  %v4669_v49 = vadd.f32 -0.6931472, %v3335_v53 }
 0x541   : > { %v3336_v20 = vadd.f32 %v3224_v32, %v3112_v61  ;;  %v3287_v54 = vsel %vm6552_vm6, %v3284_v34, %v3281_v27  ;;  %v3228_v33 = vmul.f32 -0.5, %v6536_v47  ;;  %v3293_v25 = vmul.f32 %v5193_v17, %v3292_v38 }
 0x542   : > { %v6561_v31 = vpop.eup %5200  ;;  %v3183_v63 = vmul.f32 1.442695, %v3154_v26  ;;  %v3147_v58 = vsub.f32 0.0, %v3131_v6  ;;  %v3343_v59 = vadd.f32 %v3287_v54, %v3119_v56  ;;  %vm3295_vm7 = vcmp.lt.f32.partialorder %v3294_v4, 0.0004427343 }
 0x543   : > { %v5203_v0 = vpop.eup %5202  ;;  %v3104_v52 = vpop.f32.mrf.mxu2  ;;  %v4670_v7 = vadd.f32 -0.6931472, %v3336_v20  ;;  %v3229_v42 = vadd.f32 1.0, %v3228_v33  ;;  %v3231_v9 = vand.u32 2147483647, %v6536_v47  ;;  %v3297_v28 = vadd.f32 1.0, %v6561_v31 }
 0x544   : > { %v5205_v51 = vpop.eup %5204  ;;  %v3169_v12 = vmul.f32 1.442695, %v3147_v58  ;;  %v6570_v43 = vadd.f32 %v6449_v55, %v3104_v52  ;;  %v3290_v57 = vmul.f32 0.6931472, %v5203_v0  ;;  %5208 = vpow2.f32 %v3183_v63 }
 0x545   : > { %v3086_v5 = vpop.f32.mrf.mxu0  ;;  %v3234_v15 = vadd.f32 1.0, %v5205_v51  ;;  %v4677_v56 = vadd.f32 -0.6931472, %v3343_v59  ;;  %v5207_v19 = vpop.eup %5206  ;;  %v3366_v13 = vpack.c.bf16 %v4670_v7, %v4669_v49  ;;  %v3230_v61 = vmul.f32 %v6536_v47, %v3229_v42 }
 0x546   : > { %v3139_v50 = vand.u32 2147483647, %v6570_v43  ;;  %v6574_v2 = vadd.f32 %v6449_v55, %v3086_v5  ;;  %v3296_v30 = vsel %vm3295_vm7, %v3293_v25, %v3290_v57  ;;  %5210 = vpow2.f32 %v3169_v12 }
 0x547   : > { %v3344_v3 = vadd.f32 %v3296_v30, %v3120_v60  ;;  %3454 = vmatmul.bf16.gmra.mxu1 %v3366_v13  ;;  %v3227_v45 = vmul.f32 0.6931472, %v5207_v19  ;;  %vm6579_vm8 = vcmp.lt.f32.partialorder %v3231_v9, 0.0004427343  ;;  %5212 = vlog2.f32 %v3234_v15 }
 0x548   : > { %v3155_v17 = vsub.f32 0.0, %v3139_v50  ;;  %v3132_v21 = vand.u32 2147483647, %v6574_v2  ;;  %v3237_v18 = vmul.f32 -0.5, %v5205_v51  ;;  %v3240_v22 = vand.u32 2147483647, %v5205_v51 }
 0x549   : > { %v4678_v46 = vadd.f32 -0.6931472, %v3344_v3  ;;  %v3233_v47 = vsel %vm6579_vm8, %v3230_v61, %v3227_v45  ;;  %v3300_v60 = vmul.f32 -0.5, %v6561_v31  ;;  %v3114_v6 = vmax.f32 %v6520_v40, 0.0 }
 0x54a   : > { %v3185_v37 = vmul.f32 1.442695, %v3155_v17  ;;  %v3148_v62 = vsub.f32 0.0, %v3132_v21  ;;  %v3238_v41 = vadd.f32 1.0, %v3237_v18  ;;  %v5209_v8 = vpop.eup %5208  ;;  %v3337_v36 = vadd.f32 %v3233_v47, %v3113_v29 }
 0x54b   : > { %v3106_v10 = vpop.f32.mrf.mxu2  ;;  %v3370_v39 = vpack.c.bf16 %v4678_v46, %v4677_v56  ;;  %v3301_v14 = vadd.f32 1.0, %v3300_v60  ;;  %v3303_v27 = vand.u32 2147483647, %v6561_v31  ;;  %v3306_v34 = vadd.f32 1.0, %v5209_v8 }
 0x54c   : > { %5214 = vpow2.f32 %v3185_v37  ;;  %v3171_v35 = vmul.f32 1.442695, %v3148_v62  ;;  %v6588_v53 = vadd.f32 %v6449_v55, %v3106_v10  ;;  %v5211_v16 = vpop.eup %5210  ;;  %v3309_v32 = vmul.f32 -0.5, %v5209_v8 }
 0x54d   : > { %5216 = vlog2.f32 %v3297_v28  ;;  %3474 = vmatmul.bf16.gmra.mxu3 %v3370_v39  ;;  %v5213_v26 = vpop.eup %5212  ;;  %v3239_v55 = vmul.f32 %v5205_v51, %v3238_v41  ;;  %vm3241_vm9 = vcmp.lt.f32.partialorder %v3240_v22, 0.0004427343  ;;  %v4671_v63 = vadd.f32 -0.6931472, %v3337_v36 }
 0x54e   : > { %5218 = vpow2.f32 %v3171_v35  ;;  %v3140_v48 = vand.u32 2147483647, %v6588_v53  ;;  %v3236_v4 = vmul.f32 0.6931472, %v5213_v26  ;;  %v3302_v58 = vmul.f32 %v6561_v31, %v3301_v14 }
 0x54f   : > { %5220 = vlog2.f32 %v3306_v34  ;;  %v3243_v20 = vadd.f32 1.0, %v5211_v16  ;;  %v3312_v52 = vand.u32 2147483647, %v5209_v8  ;;  %v3246_v49 = vmul.f32 -0.5, %v5211_v16 }
 0x550   : > { %v3156_v38 = vsub.f32 0.0, %v3140_v48  ;;  %v3242_v29 = vsel %vm3241_vm9, %v3239_v55, %v3236_v4  ;;  %vm6596_vm10 = vcmp.lt.f32.partialorder %v3303_v27, 0.0004427343  ;;  %v3310_v12 = vadd.f32 1.0, %v3309_v32 }
 0x551   : > { %v3338_v59 = vadd.f32 %v3242_v29, %v3114_v6  ;;  %5222 = vlog2.f32 %v3243_v20  ;;  %v3247_v31 = vadd.f32 1.0, %v3246_v49  ;;  %v3249_v57 = vand.u32 2147483647, %v5211_v16 }
 0x552   : > { %v6594_v54 = vpop.eup %5214  ;;  %v3187_v0 = vmul.f32 1.442695, %v3156_v38  ;;  %v3121_v19 = vmax.f32 %v6515_v1, 0.0  ;;  %v3311_v61 = vmul.f32 %v5209_v8, %v3310_v12  ;;  %v3122_v21 = vmax.f32 %v6539_v24, 0.0 }
 0x553   : > { %v5217_v40 = vpop.eup %5216  ;;  %v3315_v25 = vadd.f32 1.0, %v6594_v54  ;;  %v4672_v5 = vadd.f32 -0.6931472, %v3338_v59  ;;  %v3248_v9 = vmul.f32 %v5211_v16, %v3247_v31  ;;  %vm3313_vm11 = vcmp.lt.f32.partialorder %v3312_v52, 0.0004427343 }
 0x554   : > { %v5219_v51 = vpop.eup %5218  ;;  %5224 = vpow2.f32 %v3187_v0  ;;  %v3299_v7 = vmul.f32 0.6931472, %v5217_v40  ;;  %vm6605_vm12 = vcmp.lt.f32.partialorder %v3249_v57, 0.0004427343  ;;  %v3318_v1 = vmul.f32 -0.5, %v6594_v54  ;;  %v3491_v57 = vld [vmem:[#allocation2] sm:$0xff] }
 0x555   : > { %v3252_v42 = vadd.f32 1.0, %v5219_v51  ;;  %v3255_v50 = vmul.f32 -0.5, %v5219_v51  ;;  %5226 = vlog2.f32 %v3315_v25  ;;  %v5221_v56 = vpop.eup %5220  ;;  %v3367_v13 = vpack.c.bf16 %v4672_v5, %v4671_v63 }
 0x556   : > { %v3305_v15 = vsel %vm6596_vm10, %v3302_v58, %v3299_v7  ;;  %v3308_v30 = vmul.f32 0.6931472, %v5221_v56  ;;  %v3258_v28 = vand.u32 2147483647, %v5219_v51  ;;  %v3115_v60 = vmax.f32 %v6548_v44, 0.0  ;;  %v3498_v56 = vld [vmem:[#allocation2 + $0x40] sm:$0xff] }
 0x557   : > { %5228 = vlog2.f32 %v3252_v42  ;;  %v5223_v17 = vpop.eup %5222  ;;  %3459 = vmatmul.bf16.gmra.mxu1 %v3367_v13  ;;  %v3345_v3 = vadd.f32 %v3305_v15, %v3121_v19  ;;  %v3256_v62 = vadd.f32 1.0, %v3255_v50  ;;  %v3116_v39 = vmax.f32 %v6574_v2, 0.0  ;;  %v6623_v7 = vld [vmem:[%s822_s15] ss:$0 sm:$0xff] }
 0x558   : > { %v3314_v18 = vsel %vm3313_vm11, %v3311_v61, %v3308_v30  ;;  %v3245_v37 = vmul.f32 0.6931472, %v5223_v17  ;;  %v3319_v48 = vadd.f32 1.0, %v3318_v1  ;;  %vm3259_vm13 = vcmp.lt.f32.partialorder %v3258_v28, 0.0004427343  ;;  %v3492_v61 = vld [vmem:[#allocation2 + $0x58] sm:$0xff] }
 0x559   : > { %v3346_v46 = vadd.f32 %v3314_v18, %v3122_v21  ;;  %v4679_v8 = vadd.f32 -0.6931472, %v3345_v3  ;;  %v3257_v16 = vmul.f32 %v5219_v51, %v3256_v62  ;;  %v3321_v6 = vand.u32 2147483647, %v6594_v54  ;;  %v3499_v3 = vld [vmem:[#allocation2 + $0x20] sm:$0xff]  ;;  %v3500_v28 = vld [vmem:[#allocation2 + $0x10] sm:$0xff] }
 0x55a   : > { %v5225_v11 = vpop.eup %5224  ;;  %v3251_v24 = vsel %vm6605_vm12, %v3248_v9, %v3245_v37  ;;  %v3320_v44 = vmul.f32 %v6594_v54, %v3319_v48  ;;  %v3123_v29 = vmax.f32 %v6570_v43, 0.0  ;;  %v3124_v52 = vmax.f32 %v6588_v53, 0.0  ;;  %v3490_v43 = vld [vmem:[#allocation2 + $0x30] sm:$0xff]  ;;  %v3493_v37 = vld [vmem:[#allocation2 + $0x18] sm:$0xff]  ;;  %v3495_v48 = vld [vmem:[#allocation2 + $0x68] sm:$0xff] }
 0x55b   : > { %v3324_v10 = vadd.f32 1.0, %v5225_v11  ;;  %v5227_v47 = vpop.eup %5226  ;;  %v3327_v41 = vmul.f32 -0.5, %v5225_v11  ;;  %v4680_v35 = vadd.f32 -0.6931472, %v3346_v46  ;;  %v3339_v26 = vadd.f32 %v3251_v24, %v3115_v60 }
 0x55c   : > { %v3317_v34 = vmul.f32 0.6931472, %v5227_v47  ;;  %v3330_v4 = vand.u32 2147483647, %v5225_v11  ;;  %vm3322_vm14 = vcmp.lt.f32.partialorder %v3321_v6, 0.0004427343 }
 0x55d   : > { %v5229_v22 = vpop.eup %5228  ;;  %5230 = vlog2.f32 %v3324_v10  ;;  %v3371_v14 = vpack.c.bf16 %v4680_v35, %v4679_v8  ;;  %v3328_v32 = vadd.f32 1.0, %v3327_v41  ;;  %v4673_v63 = vadd.f32 -0.6931472, %v3339_v26  ;;  %v3494_v41 = vld [vmem:[#allocation2 + $0x50] sm:$0xff]  ;;  %v3501_v35 = vld [vmem:[#allocation2 + $0x38] sm:$0xff] }
 0x55e   : > { %v3254_v36 = vmul.f32 0.6931472, %v5229_v22  ;;  %v3323_v2 = vsel %vm3322_vm14, %v3320_v44, %v3317_v34  ;;  %vm3331_vm15 = vcmp.lt.f32.partialorder %v3330_v4, 0.0004427343 }
 0x55f   : > { %3479 = vmatmul.bf16.gmra.mxu3 %v3371_v14  ;;  %v3329_v0 = vmul.f32 %v5225_v11, %v3328_v32  ;;  %v3347_v59 = vadd.f32 %v3323_v2, %v3123_v29 }
 0x560   : > { %v3260_v27 = vsel %vm3259_vm13, %v3257_v16, %v3254_v36 }
 0x561   : > { %v3340_v38 = vadd.f32 %v3260_v27, %v3116_v39  ;;  %v4681_v54 = vadd.f32 -0.6931472, %v3347_v59  ;;  %v3502_v27 = vld [vmem:[#allocation2 + $0x60] sm:$0xff]  ;;  %v3504_v59 = vld [vmem:[#allocation2 + $0x78] sm:$0xff] }
 0x563   : > { %v5231_v55 = vpop.eup %5230  ;;  %v4674_v58 = vadd.f32 -0.6931472, %v3340_v38  ;;  %v3496_v38 = vld [vmem:[#allocation2 + $0x8] sm:$0xff] }
 0x564   : > { %v3326_v20 = vmul.f32 0.6931472, %v5231_v55 }
 0x565   : > { %v3368_v49 = vpack.c.bf16 %v4674_v58, %v4673_v63  ;;  %v3503_v58 = vld [vmem:[#allocation2 + $0x70] sm:$0xff] }
 0x566   : > { %v3332_v40 = vsel %vm3331_vm15, %v3329_v0, %v3326_v20  ;;  %v3497_v0 = vld [vmem:[#allocation2 + $0x48] sm:$0xff] }
 0x567   : > { %v3348_v33 = vadd.f32 %v3332_v40, %v3124_v52  ;;  %3464 = vmatmul.bf16.gmra.mxu1 %v3368_v49 }
 0x569   : > { %v4682_v12 = vadd.f32 -0.6931472, %v3348_v33 }
 0x56b   : > { %v3372_v51 = vpack.c.bf16 %v4682_v12, %v4681_v54 }
 0x56f   : > { %3484 = vmatmul.bf16.gmra.mxu3 %v3372_v51  ;;  %v3505_v51 = vld [vmem:[#allocation2 + $0x28] sm:$0xff] }
 0x5b4   : > { %v3450_v31 = vpop.f32.mrf.mxu1 }
 0x5b5   : > { %v3451_v53 = vadd.f32 %v6623_v7, %v3450_v31 }
 0x5b7   : > { %v3506_v25 = vadd.f32 %v3490_v43, %v3451_v53 }
 0x5b9   : > { %3522 = vst [vmem:[#allocation2 + $0x30] sm:$0xff] %v3506_v25 }
 0x5bc   : > { %v3452_v5 = vpop.f32.mrf.mxu1 }
 0x5bd   : > { %v3453_v42 = vadd.f32 %v6623_v7, %v3452_v5 }
 0x5bf   : > { %v3507_v15 = vadd.f32 %v3491_v57, %v3453_v42 }
 0x5c0   : > { %v3470_v50 = vpop.f32.mrf.mxu3 }
 0x5c1   : > { %v3471_v19 = vadd.f32 %v6623_v7, %v3470_v50  ;;  %3523 = vst [vmem:[#allocation2] sm:$0xff] %v3507_v15 }
 0x5c3   : > { %v3514_v13 = vadd.f32 %v3498_v56, %v3471_v19 }
 0x5c4   : > { %v3455_v30 = vpop.f32.mrf.mxu1 }
 0x5c5   : > { %3530 = vst [vmem:[#allocation2 + $0x40] sm:$0xff] %v3514_v13  ;;  %v3456_v9 = vadd.f32 %v6623_v7, %v3455_v30 }
 0x5c7   : > { %v3508_v17 = vadd.f32 %v3492_v61, %v3456_v9 }
 0x5c8   : > { %v3472_v21 = vpop.f32.mrf.mxu3 }
 0x5c9   : > { %v3473_v45 = vadd.f32 %v6623_v7, %v3472_v21  ;;  %3524 = vst [vmem:[#allocation2 + $0x58] sm:$0xff] %v3508_v17 }
 0x5cb   : > { %v3515_v11 = vadd.f32 %v3499_v3, %v3473_v45 }
 0x5cc   : > { %v3457_v18 = vpop.f32.mrf.mxu1 }
 0x5cd   : > { %3531 = vst [vmem:[#allocation2 + $0x20] sm:$0xff] %v3515_v11  ;;  %v3458_v62 = vadd.f32 %v6623_v7, %v3457_v18 }
 0x5cf   : > { %v3509_v1 = vadd.f32 %v3493_v37, %v3458_v62 }
 0x5d0   : > { %v3475_v46 = vpop.f32.mrf.mxu3 }
 0x5d1   : > { %v3476_v10 = vadd.f32 %v6623_v7, %v3475_v46  ;;  %3525 = vst [vmem:[#allocation2 + $0x18] sm:$0xff] %v3509_v1 }
 0x5d3   : > { %v3516_v47 = vadd.f32 %v3500_v28, %v3476_v10 }
 0x5d4   : > { %v3460_v24 = vpop.f32.mrf.mxu1 }
 0x5d5   : > { %3532 = vst [vmem:[#allocation2 + $0x10] sm:$0xff] %v3516_v47  ;;  %v3461_v22 = vadd.f32 %v6623_v7, %v3460_v24 }
 0x5d7   : > { %v3510_v60 = vadd.f32 %v3494_v41, %v3461_v22 }
 0x5d8   : > { %v3477_v8 = vpop.f32.mrf.mxu3 }
 0x5d9   : > { %v3478_v39 = vadd.f32 %v6623_v7, %v3477_v8  ;;  %3526 = vst [vmem:[#allocation2 + $0x50] sm:$0xff] %v3510_v60 }
 0x5db   : > { %v3517_v36 = vadd.f32 %v3501_v35, %v3478_v39 }
 0x5dc   : > { %v3462_v16 = vpop.f32.mrf.mxu1 }
 0x5dd   : > { %3533 = vst [vmem:[#allocation2 + $0x38] sm:$0xff] %v3517_v36  ;;  %v3463_v14 = vadd.f32 %v6623_v7, %v3462_v16 }
 0x5df   : > { %v3511_v26 = vadd.f32 %v3495_v48, %v3463_v14 }
 0x5e1   : > { %3527 = vst [vmem:[#allocation2 + $0x68] sm:$0xff] %v3511_v26 }
 0x5e2   : > { %v3480_v6 = vpop.f32.mrf.mxu3 }
 0x5e3   : > { %v3481_v34 = vadd.f32 %v6623_v7, %v3480_v6 }
 0x5e4   : > { %v3465_v32 = vpop.f32.mrf.mxu1 }
 0x5e5   : > { %v3518_v4 = vadd.f32 %v3502_v27, %v3481_v34  ;;  %v3466_v44 = vadd.f32 %v6623_v7, %v3465_v32 }
 0x5e7   : > { %3534 = vst [vmem:[#allocation2 + $0x60] sm:$0xff] %v3518_v4  ;;  %v3512_v55 = vadd.f32 %v3496_v38, %v3466_v44 }
 0x5e9   : > { %3528 = vst [vmem:[#allocation2 + $0x8] sm:$0xff] %v3512_v55 }
 0x5ea   : > { %v3482_v63 = vpop.f32.mrf.mxu3 }
 0x5eb   : > { %v3483_v2 = vadd.f32 %v6623_v7, %v3482_v63 }
 0x5ec   : > { %v3467_v20 = vpop.f32.mrf.mxu1 }
 0x5ed   : > { %v3519_v29 = vadd.f32 %v3503_v58, %v3483_v2  ;;  %v3468_v52 = vadd.f32 %v6623_v7, %v3467_v20 }
 0x5ef   : > { %3535 = vst [vmem:[#allocation2 + $0x70] sm:$0xff] %v3519_v29  ;;  %v3513_v49 = vadd.f32 %v3497_v0, %v3468_v52 }
 0x5f1   : > { %3529 = vst [vmem:[#allocation2 + $0x48] sm:$0xff] %v3513_v49 }
 0x5f2   : > { %v3485_v40 = vpop.f32.mrf.mxu3 }
 0x5f3   : > { %v3486_v33 = vadd.f32 %v6623_v7, %v3485_v40 }
 0x5f5   : > { %v3520_v12 = vadd.f32 %v3504_v59, %v3486_v33 }
 0x5f7   : > { %3536 = vst [vmem:[#allocation2 + $0x78] sm:$0xff] %v3520_v12 }
 0x5fa   : > { %v3487_v54 = vpop.f32.mrf.mxu3 }
 0x5fb   : > { %v3488_v31 = vadd.f32 %v6623_v7, %v3487_v54 }
 0x5fd   : > { %v3521_v43 = vadd.f32 %v3505_v51, %v3488_v31 }
 0x5ff   : > { %3537 = vst [vmem:[#allocation2 + $0x28] sm:$0xff] %v3521_v43 }
 0x600 PF: > { %s6980_s24 = sld [smem:[#allocation6_spill]] }
 0x606   : > { %p3538_p0 = scmp.eq.s32.totalorder %s6980_s24, 2 }
 0x608   : > { %p3539_p1 = pnand %p3538_p0, %p2964_p12 }
 0x609   : > { %s6981_s19 = sld [smem:[#allocation23_spill]] (!%p3539_p1) }
 0x60a   : > { %3542 = sbr.rel (%p3539_p1) target bundleno = 2102 (0x836), region = 112  ;;  %s6982_s22 = sld [smem:[#allocation25_spill]] (!%p3539_p1) }
 0x60b   : > { %s6984_s10 = sld [smem:[#allocation24_spill]] (!%p3539_p1) }
 0x60c   : > { %s7003_s18 = sld [smem:[#allocation16_spill]] (!%p3539_p1) }
 0x60d   : > { %s7004_s5 = sld [smem:[#allocation26_spill]] (!%p3539_p1) }
 0x60f   : > { %v4875_v53 = vld [vmem:[%s6981_s19 + $0x38] sm:$0xff]  ;;  %v4874_v25 = vld [vmem:[%s6981_s19 + $0x30] sm:$0xff]  ;;  %v4873_v7 = vld [vmem:[%s6981_s19 + $0x28] sm:$0xff] }
 0x610   : > { %3635 = vmatpush.bf16.msra.mxu0 %v4875_v53  ;;  %4971 = vmatpush.bf16.msra.mxu3 %v4875_v53  ;;  %v4872_v5 = vld [vmem:[%s6981_s19 + $0x20] sm:$0xff]  ;;  %v4871_v57 = vld [vmem:[%s6981_s19 + $0x18] sm:$0xff]  ;;  %v4870_v42 = vld [vmem:[%s6981_s19 + $0x10] sm:$0xff]  ;;  %s6983_s0 = smov %s6982_s22 }
 0x611   : > { %v4869_v15 = vld [vmem:[%s6981_s19 + $0x8] sm:$0xff]  ;;  %v4868_v50 = vld [vmem:[%s6981_s19] sm:$0xff]  ;;  %v3543_v56 = vld [vmem:[#allocation2 + $0x30] sm:$0xff] }
 0x612   : > { %v3544_v19 = vld [vmem:[#allocation2] sm:$0xff]  ;;  %v3553_v13 = vld [vmem:[#allocation2 + $0x10] sm:$0xff]  ;;  %v3554_v30 = vld [vmem:[#allocation2 + $0x38] sm:$0xff] }
 0x613   : > { %v3559_v61 = vpack.c.bf16 %v3544_v19, %v3543_v56  ;;  %v3564_v9 = vpack.c.bf16 %v3554_v30, %v3553_v13  ;;  %v3545_v17 = vld [vmem:[#allocation2 + $0x58] sm:$0xff]  ;;  %v3555_v3 = vld [vmem:[#allocation2 + $0x60] sm:$0xff]  ;;  %v3556_v45 = vld [vmem:[#allocation2 + $0x70] sm:$0xff] }
 0x614   : > { %3636 = vmatpush.bf16.msra.mxu0 %v4874_v25  ;;  %4972 = vmatpush.bf16.msra.mxu3 %v4874_v25  ;;  %v3546_v21 = vld [vmem:[#allocation2 + $0x18] sm:$0xff]  ;;  %v3565_v18 = vpack.c.bf16 %v3556_v45, %v3555_v3  ;;  %v3547_v37 = vld [vmem:[#allocation2 + $0x50] sm:$0xff]  ;;  %v3548_v62 = vld [vmem:[#allocation2 + $0x68] sm:$0xff] }
 0x615   : > { %v3560_v11 = vpack.c.bf16 %v3546_v21, %v3545_v17  ;;  %v3557_v1 = vld [vmem:[#allocation2 + $0x78] sm:$0xff]  ;;  %v3558_v46 = vld [vmem:[#allocation2 + $0x28] sm:$0xff]  ;;  %v3561_v28 = vpack.c.bf16 %v3548_v62, %v3547_v37  ;;  %v3551_v22 = vld [vmem:[#allocation2 + $0x40] sm:$0xff] }
 0x616   : > { %v3566_v10 = vpack.c.bf16 %v3558_v46, %v3557_v1  ;;  %v3549_v47 = vld [vmem:[#allocation2 + $0x8] sm:$0xff]  ;;  %v3552_v60 = vld [vmem:[#allocation2 + $0x20] sm:$0xff]  ;;  %v4883_v35 = vld [vmem:[%s6982_s22 + $0x38] sm:$0xff] }
 0x617   : > { %v3550_v24 = vld [vmem:[#allocation2 + $0x48] sm:$0xff]  ;;  %v3563_v8 = vpack.c.bf16 %v3552_v60, %v3551_v22  ;;  %4016 = vmatpush.bf16.msra.mxu1 %v4883_v35  ;;  %4979 = vmatpush.bf16.msra.mxu2 %v4883_v35  ;;  %v4882_v39 = vld [vmem:[%s6983_s0 + $0x30] sm:$0xff]  ;;  %v4880_v16 = vld [vmem:[%s6983_s0 + $0x20] sm:$0xff] }
 0x618   : > { %3637 = vmatpush.bf16.msra.mxu0 %v4873_v7  ;;  %4973 = vmatpush.bf16.msra.mxu3 %v4873_v7  ;;  %v3562_v41 = vpack.c.bf16 %v3550_v24, %v3549_v47  ;;  %v4881_v36 = vld [vmem:[%s6983_s0 + $0x28] sm:$0xff]  ;;  %v4879_v48 = vld [vmem:[%s6983_s0 + $0x18] sm:$0xff]  ;;  %v6686_v14 = vld [vmem:[%s6984_s10] ss:$0 sm:$0xff] }
 0x619   : > { %v4878_v26 = vld [vmem:[%s6983_s0 + $0x10] sm:$0xff]  ;;  %v4877_v34 = vld [vmem:[%s6983_s0 + $0x8] sm:$0xff]  ;;  %v4876_v4 = vld [vmem:[%s6983_s0] sm:$0xff] }
 0x61b   : > { %4017 = vmatpush.bf16.msra.mxu1 %v4882_v39  ;;  %4980 = vmatpush.bf16.msra.mxu2 %v4882_v39 }
 0x61c   : > { %3638 = vmatpush.bf16.msra.mxu0 %v4872_v5  ;;  %4974 = vmatpush.bf16.msra.mxu3 %v4872_v5 }
 0x61f   : > { %4018 = vmatpush.bf16.msra.mxu1 %v4881_v36  ;;  %4981 = vmatpush.bf16.msra.mxu2 %v4881_v36 }
 0x620   : > { %3639 = vmatpush.bf16.msra.mxu0 %v4871_v57  ;;  %4975 = vmatpush.bf16.msra.mxu3 %v4871_v57 }
 0x623   : > { %4019 = vmatpush.bf16.msra.mxu1 %v4880_v16  ;;  %4982 = vmatpush.bf16.msra.mxu2 %v4880_v16 }
 0x624   : > { %3640 = vmatpush.bf16.msra.mxu0 %v4870_v42  ;;  %4976 = vmatpush.bf16.msra.mxu3 %v4870_v42 }
 0x627   : > { %4020 = vmatpush.bf16.msra.mxu1 %v4879_v48  ;;  %4983 = vmatpush.bf16.msra.mxu2 %v4879_v48 }
 0x628   : > { %3641 = vmatpush.bf16.msra.mxu0 %v4869_v15  ;;  %4977 = vmatpush.bf16.msra.mxu3 %v4869_v15 }
 0x62b   : > { %4021 = vmatpush.bf16.msra.mxu1 %v4878_v26  ;;  %4984 = vmatpush.bf16.msra.mxu2 %v4878_v26 }
 0x62c   : > { %3642 = vmatpush.bf16.msra.mxu0 %v4868_v50  ;;  %4978 = vmatpush.bf16.msra.mxu3 %v4868_v50 }
 0x62f   : > { %3643 = vmatmul.bf16.vlgmr.msra.gmra.mxu0 %v3559_v61  ;;  %3668 = vmatmul.bf16.vlgmr.msra.gmra.mxu3 %v3564_v9 }
 0x630   : > { %4022 = vmatpush.bf16.msra.mxu1 %v4877_v34  ;;  %4985 = vmatpush.bf16.msra.mxu2 %v4877_v34 }
 0x634   : > { %4023 = vmatpush.bf16.msra.mxu1 %v4876_v4  ;;  %4986 = vmatpush.bf16.msra.mxu2 %v4876_v4 }
 0x63f   : > { %3648 = vmatmul.bf16.gmra.mxu0 %v3560_v11  ;;  %3673 = vmatmul.bf16.gmra.mxu3 %v3565_v18 }
 0x64f   : > { %3653 = vmatmul.bf16.gmra.mxu0 %v3561_v28  ;;  %3678 = vmatmul.bf16.gmra.mxu3 %v3566_v10 }
 0x65f   : > { %3658 = vmatmul.bf16.gmra.mxu0 %v3562_v41 }
 0x66f   : > { %3663 = vmatmul.bf16.gmra.mxu0 %v3563_v8 }
 0x6ac   : > { %v3644_v6 = vpop.f32.mrf.mxu0 }
 0x6ad   : > { %v6692_v27 = vadd.f32 %v6686_v14, %v3644_v6 }
 0x6af   : > { %v3700_v32 = vand.u32 2147483647, %v6692_v27  ;;  %v3684_v17 = vmax.f32 %v6692_v27, 0.0 }
 0x6b1   : > { %v3716_v38 = vsub.f32 0.0, %v3700_v32 }
 0x6b2   : > { %v3669_v44 = vpop.f32.mrf.mxu3 }
 0x6b3   : > { %v3732_v55 = vmul.f32 1.442695, %v3716_v38  ;;  %v6702_v63 = vadd.f32 %v6686_v14, %v3669_v44 }
 0x6b4   : > { %v3646_v58 = vpop.f32.mrf.mxu0 }
 0x6b5   : > { %5235 = vpow2.f32 %v3732_v55  ;;  %v3710_v2 = vand.u32 2147483647, %v6702_v63  ;;  %v6706_v20 = vadd.f32 %v6686_v14, %v3646_v58  ;;  %v3694_v11 = vmax.f32 %v6702_v63, 0.0 }
 0x6b7   : > { %v3726_v0 = vsub.f32 0.0, %v3710_v2  ;;  %v3701_v29 = vand.u32 2147483647, %v6706_v20  ;;  %v3685_v62 = vmax.f32 %v6706_v20, 0.0 }
 0x6b9   : > { %v3752_v52 = vmul.f32 1.442695, %v3726_v0  ;;  %v3717_v49 = vsub.f32 0.0, %v3701_v29 }
 0x6ba   : > { %v3671_v40 = vpop.f32.mrf.mxu3 }
 0x6bb   : > { %v5236_v59 = vpop.eup %5235  ;;  %5237 = vpow2.f32 %v3752_v52  ;;  %v3734_v33 = vmul.f32 1.442695, %v3717_v49  ;;  %v6710_v12 = vadd.f32 %v6686_v14, %v3671_v40 }
 0x6bc   : > { %v3649_v54 = vpop.f32.mrf.mxu0  ;;  %v3764_v51 = vadd.f32 1.0, %v5236_v59  ;;  %v3767_v53 = vmul.f32 -0.5, %v5236_v59  ;;  %v3770_v3 = vand.u32 2147483647, %v5236_v59 }
 0x6bd   : > { %5239 = vpow2.f32 %v3734_v33  ;;  %v3711_v31 = vand.u32 2147483647, %v6710_v12  ;;  %v6714_v43 = vadd.f32 %v6686_v14, %v3649_v54  ;;  %v3695_v41 = vmax.f32 %v6710_v12, 0.0 }
 0x6be   : > { %5241 = vlog2.f32 %v3764_v51  ;;  %v3768_v50 = vadd.f32 1.0, %v3767_v53  ;;  %vm6730_vm0 = vcmp.lt.f32.partialorder %v3770_v3, 0.0004427343 }
 0x6bf   : > { %v3727_v25 = vsub.f32 0.0, %v3711_v31  ;;  %v3702_v7 = vand.u32 2147483647, %v6714_v43  ;;  %v3686_v22 = vmax.f32 %v6714_v43, 0.0 }
 0x6c0   : > { %v3769_v47 = vmul.f32 %v5236_v59, %v3768_v50 }
 0x6c1   : > { %v5238_v5 = vpop.eup %5237  ;;  %v3754_v57 = vmul.f32 1.442695, %v3727_v25  ;;  %v3718_v42 = vsub.f32 0.0, %v3702_v7 }
 0x6c2   : > { %v3674_v15 = vpop.f32.mrf.mxu3  ;;  %v3854_v56 = vadd.f32 1.0, %v5238_v5  ;;  %v3857_v61 = vmul.f32 -0.5, %v5238_v5  ;;  %v3860_v8 = vand.u32 2147483647, %v5238_v5 }
 0x6c3   : > { %v5240_v19 = vpop.eup %5239  ;;  %5243 = vpow2.f32 %v3754_v57  ;;  %v3736_v13 = vmul.f32 1.442695, %v3718_v42  ;;  %v6718_v30 = vadd.f32 %v6686_v14, %v3674_v15 }
 0x6c4   : > { %v5242_v9 = vpop.eup %5241  ;;  %v3651_v21 = vpop.f32.mrf.mxu0  ;;  %v3773_v45 = vadd.f32 1.0, %v5240_v19  ;;  %5245 = vlog2.f32 %v3854_v56  ;;  %v3776_v46 = vmul.f32 -0.5, %v5240_v19  ;;  %v3858_v24 = vadd.f32 1.0, %v3857_v61 }
 0x6c5   : > { %5247 = vpow2.f32 %v3736_v13  ;;  %v3712_v18 = vand.u32 2147483647, %v6718_v30  ;;  %v6724_v37 = vadd.f32 %v6686_v14, %v3651_v21  ;;  %v3766_v1 = vmul.f32 0.6931472, %v5242_v9 }
 0x6c6   : > { %5249 = vlog2.f32 %v3773_v45  ;;  %v3779_v48 = vand.u32 2147483647, %v5240_v19  ;;  %v3696_v6 = vmax.f32 %v6718_v30, 0.0  ;;  %v3777_v34 = vadd.f32 1.0, %v3776_v46 }
 0x6c7   : > { %v3728_v28 = vsub.f32 0.0, %v3712_v18  ;;  %v3703_v10 = vand.u32 2147483647, %v6724_v37  ;;  %v3772_v16 = vsel %vm6730_vm0, %v3769_v47, %v3766_v1  ;;  %v3859_v63 = vmul.f32 %v5238_v5, %v3858_v24 }
 0x6c8   : > { %v3908_v20 = vadd.f32 %v3772_v16, %v3684_v17  ;;  %vm6742_vm1 = vcmp.lt.f32.partialorder %v3860_v8, 0.0004427343  ;;  %v3778_v33 = vmul.f32 %v5240_v19, %v3777_v34  ;;  %vm3780_vm2 = vcmp.lt.f32.partialorder %v3779_v48, 0.0004427343 }
 0x6c9   : > { %v5244_v35 = vpop.eup %5243  ;;  %v3756_v39 = vmul.f32 1.442695, %v3728_v28  ;;  %v3719_v36 = vsub.f32 0.0, %v3703_v10  ;;  %v3687_v29 = vmax.f32 %v6724_v37, 0.0 }
 0x6ca   : > { %v5246_v26 = vpop.eup %5245  ;;  %v3676_v27 = vpop.f32.mrf.mxu3  ;;  %v3863_v32 = vadd.f32 1.0, %v5244_v35  ;;  %v3866_v38 = vmul.f32 -0.5, %v5244_v35  ;;  %v3869_v40 = vand.u32 2147483647, %v5244_v35  ;;  %v4747_v5 = vadd.f32 -0.6931472, %v3908_v20 }
 0x6cb   : > { %v6737_v4 = vpop.eup %5247  ;;  %5251 = vpow2.f32 %v3756_v39  ;;  %v3738_v44 = vmul.f32 1.442695, %v3719_v36  ;;  %v6740_v55 = vadd.f32 %v6686_v14, %v3676_v27  ;;  %v3856_v0 = vmul.f32 0.6931472, %v5246_v26 }
 0x6cc   : > { %v5250_v58 = vpop.eup %5249  ;;  %v3654_v2 = vpop.f32.mrf.mxu0  ;;  %5253 = vlog2.f32 %v3863_v32  ;;  %v3867_v54 = vadd.f32 1.0, %v3866_v38  ;;  %v3782_v51 = vadd.f32 1.0, %v6737_v4  ;;  %v3785_v57 = vmul.f32 -0.5, %v6737_v4 }
 0x6cd   : > { %5255 = vpow2.f32 %v3738_v44  ;;  %v3713_v52 = vand.u32 2147483647, %v6740_v55  ;;  %v6748_v49 = vadd.f32 %v6686_v14, %v3654_v2  ;;  %v3775_v59 = vmul.f32 0.6931472, %v5250_v58 }
 0x6ce   : > { %v3862_v25 = vsel %vm6742_vm1, %v3859_v63, %v3856_v0  ;;  %5257 = vlog2.f32 %v3782_v51  ;;  %vm6757_vm3 = vcmp.lt.f32.partialorder %v3869_v40, 0.0004427343  ;;  %v3868_v9 = vmul.f32 %v5244_v35, %v3867_v54 }
 0x6cf   : > { %v3729_v31 = vsub.f32 0.0, %v3713_v52  ;;  %v3704_v53 = vand.u32 2147483647, %v6748_v49  ;;  %v3781_v7 = vsel %vm3780_vm2, %v3778_v33, %v3775_v59  ;;  %v3918_v17 = vadd.f32 %v3862_v25, %v3694_v11 }
 0x6d0   : > { %v3909_v56 = vadd.f32 %v3781_v7, %v3685_v62  ;;  %v3786_v21 = vadd.f32 1.0, %v3785_v57  ;;  %v3788_v3 = vand.u32 2147483647, %v6737_v4  ;;  %vm4090_vm1 = vcmask 1024  }
 0x6d1   : > { %v6755_v42 = vpop.eup %5251  ;;  %v3758_v15 = vmul.f32 1.442695, %v3729_v31  ;;  %v3720_v50 = vsub.f32 0.0, %v3704_v53  ;;  %v4757_v16 = vadd.f32 -0.6931472, %v3918_v17 }
 0x6d2   : > { %v5254_v13 = vpop.eup %5253  ;;  %v3679_v61 = vpop.f32.mrf.mxu3  ;;  %v4748_v46 = vadd.f32 -0.6931472, %v3909_v56  ;;  %v3872_v24 = vadd.f32 1.0, %v6755_v42  ;;  %v3875_v8 = vmul.f32 -0.5, %v6755_v42  ;;  %v3787_v34 = vmul.f32 %v6737_v4, %v3786_v21 }
 0x6d3   : > { %v5256_v45 = vpop.eup %5255  ;;  %5259 = vpow2.f32 %v3758_v15  ;;  %v3740_v18 = vmul.f32 1.442695, %v3720_v50  ;;  %v6763_v1 = vadd.f32 %v6686_v14, %v3679_v61  ;;  %v3865_v62 = vmul.f32 0.6931472, %v5254_v13 }
 0x6d4   : > { %v3656_v28 = vpop.f32.mrf.mxu0  ;;  %v3791_v10 = vadd.f32 1.0, %v5256_v45  ;;  %v3794_v47 = vmul.f32 -0.5, %v5256_v45  ;;  %v5258_v35 = vpop.eup %5257  ;;  %v3940_v39 = vpack.c.bf16 %v4748_v46, %v4747_v5  ;;  %v3797_v44 = vand.u32 2147483647, %v5256_v45 }
 0x6d5   : > { %5261 = vpow2.f32 %v3740_v18  ;;  %v3714_v60 = vand.u32 2147483647, %v6763_v1  ;;  %v6768_v11 = vadd.f32 %v6686_v14, %v3656_v28  ;;  %v3871_v36 = vsel %vm6757_vm3, %v3868_v9, %v3865_v62 }
 0x6d6   : > { %5263 = vlog2.f32 %v3791_v10  ;;  %v3919_v27 = vadd.f32 %v3871_v36, %v3695_v41  ;;  %4024 = vmatmul.bf16.vlgmr.msra.gmra.mxu1 %v3940_v39  ;;  %v3784_v32 = vmul.f32 0.6931472, %v5258_v35  ;;  %v3795_v38 = vadd.f32 1.0, %v3794_v47 }
 0x6d7   : > { %v3730_v48 = vsub.f32 0.0, %v3714_v60  ;;  %v3705_v26 = vand.u32 2147483647, %v6768_v11  ;;  %5265 = vlog2.f32 %v3872_v24  ;;  %vm6777_vm4 = vcmp.lt.f32.partialorder %v3788_v3, 0.0004427343 }
 0x6d8   : > { %v4758_v2 = vadd.f32 -0.6931472, %v3919_v27  ;;  %v3876_v0 = vadd.f32 1.0, %v3875_v8  ;;  %v3790_v12 = vsel %vm6777_vm4, %v3787_v34, %v3784_v32  ;;  %v3878_v41 = vand.u32 2147483647, %v6755_v42 }
 0x6d9   : > { %v5260_v63 = vpop.eup %5259  ;;  %v3721_v58 = vsub.f32 0.0, %v3705_v26  ;;  %v3760_v59 = vmul.f32 1.442695, %v3730_v48  ;;  %v3796_v25 = vmul.f32 %v5256_v45, %v3795_v38  ;;  %vm6790_vm5 = vcmp.lt.f32.partialorder %v3797_v44, 0.0004427343 }
 0x6da   : > { %v3681_v52 = vpop.f32.mrf.mxu3  ;;  %v3881_v4 = vadd.f32 1.0, %v5260_v63  ;;  %v3945_v51 = vpack.c.bf16 %v4758_v2, %v4757_v16  ;;  %v3910_v7 = vadd.f32 %v3790_v12, %v3686_v22  ;;  %v3877_v15 = vmul.f32 %v6755_v42, %v3876_v0 }
 0x6db   : > { %v6785_v40 = vpop.eup %5261  ;;  %v3742_v33 = vmul.f32 1.442695, %v3721_v58  ;;  %v6788_v54 = vadd.f32 %v6686_v14, %v3681_v52  ;;  %vm6801_vm6 = vcmp.lt.f32.partialorder %v3878_v41, 0.0004427343  ;;  %v3884_v13 = vmul.f32 -0.5, %v5260_v63 }
 0x6dc   : > { %v5264_v31 = vpop.eup %5263  ;;  %v3659_v53 = vpop.f32.mrf.mxu0  ;;  %5267 = vlog2.f32 %v3881_v4  ;;  %4049 = vmatmul.bf16.vlgmr.msra.gmra.mxu2 %v3945_v51  ;;  %v3800_v43 = vadd.f32 1.0, %v6785_v40  ;;  %v3887_v3 = vand.u32 2147483647, %v5260_v63  ;;  %v3697_v62 = vmax.f32 %v6740_v55, 0.0 }
 0x6dd   : > { %5269 = vpow2.f32 %v3742_v33  ;;  %v3715_v5 = vand.u32 2147483647, %v6788_v54  ;;  %v6798_v57 = vadd.f32 %v6686_v14, %v3659_v53  ;;  %v5266_v50 = vpop.eup %5265  ;;  %v3793_v56 = vmul.f32 0.6931472, %v5264_v31 }
 0x6de   : > { %5271 = vpow2.f32 %v3760_v59  ;;  %v3874_v9 = vmul.f32 0.6931472, %v5266_v50  ;;  %v3885_v21 = vadd.f32 1.0, %v3884_v13  ;;  %v4749_v10 = vadd.f32 -0.6931472, %v3910_v7 }
 0x6df   : > { %v3731_v22 = vsub.f32 0.0, %v3715_v5  ;;  %v3706_v61 = vand.u32 2147483647, %v6798_v57  ;;  %v3799_v17 = vsel %vm6790_vm5, %v3796_v25, %v3793_v56  ;;  %5273 = vlog2.f32 %v3800_v43 }
 0x6e0   : > { %v3911_v18 = vadd.f32 %v3799_v17, %v3687_v29  ;;  %v3880_v46 = vsel %vm6801_vm6, %v3877_v15, %v3874_v9  ;;  %v3886_v47 = vmul.f32 %v5260_v63, %v3885_v21  ;;  %v3803_v24 = vmul.f32 -0.5, %v6785_v40 }
 0x6e1   : > { %v3762_v42 = vmul.f32 1.442695, %v3731_v22  ;;  %v3722_v45 = vsub.f32 0.0, %v3706_v61  ;;  %vm3888_vm7 = vcmp.lt.f32.partialorder %v3887_v3, 0.0004427343  ;;  %v3920_v16 = vadd.f32 %v3880_v46, %v3696_v6 }
 0x6e2   : > { %v5268_v28 = vpop.eup %5267  ;;  %v4750_v35 = vadd.f32 -0.6931472, %v3911_v18  ;;  %v3804_v48 = vadd.f32 1.0, %v3803_v24  ;;  %v3806_v63 = vand.u32 2147483647, %v6785_v40  ;;  %v3688_v53 = vmax.f32 %v6748_v49, 0.0 }
 0x6e3   : > { %v5270_v60 = vpop.eup %5269  ;;  %5275 = vpow2.f32 %v3762_v42  ;;  %v3744_v8 = vmul.f32 1.442695, %v3722_v45  ;;  %v3883_v39 = vmul.f32 0.6931472, %v5268_v28  ;;  %v4759_v30 = vadd.f32 -0.6931472, %v3920_v16 }
 0x6e4   : > { %v3661_v36 = vpop.f32.mrf.mxu0  ;;  %v3809_v26 = vadd.f32 1.0, %v5270_v60  ;;  %v5272_v27 = vpop.eup %5271  ;;  %v3941_v34 = vpack.c.bf16 %v4750_v35, %v4749_v10  ;;  %v3812_v20 = vmul.f32 -0.5, %v5270_v60  ;;  %v3805_v41 = vmul.f32 %v6785_v40, %v3804_v48 }
 0x6e5   : > { %5277 = vpow2.f32 %v3744_v8  ;;  %v6816_v55 = vadd.f32 %v6686_v14, %v3661_v36  ;;  %v3889_v32 = vsel %vm3888_vm7, %v3886_v47, %v3883_v39  ;;  %v5274_v38 = vpop.eup %5273  ;;  %v3890_v0 = vadd.f32 1.0, %v5272_v27 }
 0x6e6   : > { %v3921_v44 = vadd.f32 %v3889_v32, %v3697_v62  ;;  %5279 = vlog2.f32 %v3809_v26  ;;  %v3802_v2 = vmul.f32 0.6931472, %v5274_v38  ;;  %4029 = vmatmul.bf16.gmra.mxu1 %v3941_v34  ;;  %v3893_v29 = vmul.f32 -0.5, %v5272_v27 }
 0x6e7   : > { %v3707_v58 = vand.u32 2147483647, %v6816_v55  ;;  %v3813_v4 = vadd.f32 1.0, %v3812_v20  ;;  %vm6821_vm8 = vcmp.lt.f32.partialorder %v3806_v63, 0.0004427343  ;;  %5281 = vlog2.f32 %v3890_v0 }
 0x6e8   : > { %v4760_v6 = vadd.f32 -0.6931472, %v3921_v44  ;;  %v3815_v51 = vand.u32 2147483647, %v5270_v60  ;;  %v3808_v37 = vsel %vm6821_vm8, %v3805_v41, %v3802_v2  ;;  %v3894_v7 = vadd.f32 1.0, %v3893_v29 }
 0x6e9   : > { %v5276_v52 = vpop.eup %5275  ;;  %v3723_v12 = vsub.f32 0.0, %v3707_v58  ;;  %v3689_v15 = vmax.f32 %v6768_v11, 0.0  ;;  %v3896_v50 = vand.u32 2147483647, %v5272_v27  ;;  %v3814_v22 = vmul.f32 %v5270_v60, %v3813_v4 }
 0x6ea   : > { %v3946_v59 = vpack.c.bf16 %v4760_v6, %v4759_v30  ;;  %v3899_v56 = vadd.f32 1.0, %v5276_v52  ;;  %v3902_v19 = vmul.f32 -0.5, %v5276_v52  ;;  %vm3816_vm9 = vcmp.lt.f32.partialorder %v3815_v51, 0.0004427343 }
 0x6eb   : > { %v5278_v31 = vpop.eup %5277  ;;  %v3746_v25 = vmul.f32 1.442695, %v3723_v12  ;;  %v3912_v49 = vadd.f32 %v3808_v37, %v3688_v53  ;;  %v3895_v21 = vmul.f32 %v5272_v27, %v3894_v7  ;;  %vm6833_vm10 = vcmp.lt.f32.partialorder %v3896_v50, 0.0004427343 }
 0x6ec   : > { %v5280_v5 = vpop.eup %5279  ;;  %v3664_v40 = vpop.f32.mrf.mxu0  ;;  %4054 = vmatmul.bf16.gmra.mxu2 %v3946_v59  ;;  %v3818_v61 = vadd.f32 1.0, %v5278_v31  ;;  %v3903_v11 = vadd.f32 1.0, %v3902_v19  ;;  %v3821_v18 = vmul.f32 -0.5, %v5278_v31  ;;  %v3905_v47 = vand.u32 2147483647, %v5276_v52 }
 0x6ed   : > { %5283 = vpow2.f32 %v3746_v25  ;;  %v6830_v13 = vadd.f32 %v6686_v14, %v3664_v40  ;;  %v3811_v43 = vmul.f32 0.6931472, %v5280_v5  ;;  %v5282_v3 = vpop.eup %5281  ;;  %v4751_v62 = vadd.f32 -0.6931472, %v3912_v49 }
 0x6ee   : > { %5285 = vlog2.f32 %v3899_v56  ;;  %v3892_v28 = vmul.f32 0.6931472, %v5282_v3  ;;  %v3698_v60 = vmax.f32 %v6763_v1, 0.0  ;;  %v3904_v39 = vmul.f32 %v5276_v52, %v3903_v11 }
 0x6ef   : > { %v3708_v9 = vand.u32 2147483647, %v6830_v13  ;;  %v3817_v17 = vsel %vm3816_vm9, %v3814_v22, %v3811_v43  ;;  %5287 = vlog2.f32 %v3818_v61  ;;  %v3822_v26 = vadd.f32 1.0, %v3821_v18 }
 0x6f0   : > { %v3913_v42 = vadd.f32 %v3817_v17, %v3689_v15  ;;  %v3898_v35 = vsel %vm6833_vm10, %v3895_v21, %v3892_v28  ;;  %v3824_v27 = vand.u32 2147483647, %v5278_v31  ;;  %v3699_v1 = vmax.f32 %v6788_v54, 0.0 }
 0x6f1   : > { %v3724_v46 = vsub.f32 0.0, %v3708_v9  ;;  %vm3906_vm11 = vcmp.lt.f32.partialorder %v3905_v47, 0.0004427343  ;;  %v3922_v58 = vadd.f32 %v3898_v35, %v3698_v60  ;;  %v3823_v29 = vmul.f32 %v5278_v31, %v3822_v26 }
 0x6f2   : > { %v4752_v10 = vadd.f32 -0.6931472, %v3913_v42  ;;  %vm6845_vm12 = vcmp.lt.f32.partialorder %v3824_v27, 0.0004427343  ;;  %v3690_v53 = vmax.f32 %v6798_v57, 0.0  ;;  %v3691_v5 = vmax.f32 %v6816_v55, 0.0 }
 0x6f3   : > { %v5284_v24 = vpop.eup %5283  ;;  %v3748_v8 = vmul.f32 1.442695, %v3724_v46  ;;  %v4761_v12 = vadd.f32 -0.6931472, %v3922_v58  ;;  %v3692_v46 = vmax.f32 %v6830_v13, 0.0 }
 0x6f4   : > { %v5286_v36 = vpop.eup %5285  ;;  %v3666_v16 = vpop.f32.mrf.mxu0  ;;  %v3942_v48 = vpack.c.bf16 %v4752_v10, %v4751_v62  ;;  %v3827_v34 = vadd.f32 1.0, %v5284_v24  ;;  %v3830_v44 = vmul.f32 -0.5, %v5284_v24  ;;  %v3833_v4 = vand.u32 2147483647, %v5284_v24  ;;  %v5233_v58 = vld [vmem:[#allocation5] ss:$0 sm:$0xff] }
 0x6f5   : > { %5289 = vpow2.f32 %v3748_v8  ;;  %v6841_v32 = vadd.f32 %v6686_v14, %v3666_v16  ;;  %v3901_v38 = vmul.f32 0.6931472, %v5286_v36  ;;  %v5288_v63 = vpop.eup %5287 }
 0x6f6   : > { %5291 = vlog2.f32 %v3827_v34  ;;  %v3820_v30 = vmul.f32 0.6931472, %v5288_v63  ;;  %4034 = vmatmul.bf16.gmra.mxu1 %v3942_v48  ;;  %v3831_v14 = vadd.f32 1.0, %v3830_v44  ;;  %vm3834_vm13 = vcmp.lt.f32.partialorder %v3833_v4, 0.0004427343 }
 0x6f7   : > { %v3709_v2 = vand.u32 2147483647, %v6841_v32  ;;  %v3907_v20 = vsel %vm3906_vm11, %v3904_v39, %v3901_v38  ;;  %v3693_v10 = vmax.f32 %v6841_v32, 0.0 }
 0x6f8   : > { %v3923_v6 = vadd.f32 %v3907_v20, %v3699_v1  ;;  %v3826_v33 = vsel %vm6845_vm12, %v3823_v29, %v3820_v30  ;;  %v3832_v7 = vmul.f32 %v5284_v24, %v3831_v14 }
 0x6f9   : > { %v3725_v0 = vsub.f32 0.0, %v3709_v2  ;;  %v3914_v15 = vadd.f32 %v3826_v33, %v3690_v53 }
 0x6fa   : > { %v4762_v41 = vadd.f32 -0.6931472, %v3923_v6 }
 0x6fb   : > { %v5290_v54 = vpop.eup %5289  ;;  %v3750_v59 = vmul.f32 1.442695, %v3725_v0  ;;  %v4753_v19 = vadd.f32 -0.6931472, %v3914_v15  ;;  %v5342_v15 = vmov 1.0  }
 0x6fc   : > { %v5292_v51 = vpop.eup %5291  ;;  %v3947_v25 = vpack.c.bf16 %v4762_v41, %v4761_v12  ;;  %v3836_v37 = vadd.f32 1.0, %v5290_v54  ;;  %v3839_v56 = vmul.f32 -0.5, %v5290_v54  ;;  %v3842_v21 = vand.u32 2147483647, %v5290_v54 }
 0x6fd   : > { %5293 = vpow2.f32 %v3750_v59  ;;  %v3829_v31 = vmul.f32 0.6931472, %v5292_v51 }
 0x6fe   : > { %4059 = vmatmul.bf16.gmra.mxu2 %v3947_v25  ;;  %5295 = vlog2.f32 %v3836_v37  ;;  %v3840_v9 = vadd.f32 1.0, %v3839_v56  ;;  %vm3843_vm14 = vcmp.lt.f32.partialorder %v3842_v21, 0.0004427343 }
 0x6ff   : > { %v3835_v40 = vsel %vm3834_vm13, %v3832_v7, %v3829_v31  ;;  %v5234_v31 = vld [vmem:[%s7003_s18] ss:$0 sm:$0xff] }
 0x700   : > { %v3915_v50 = vadd.f32 %v3835_v40, %v3691_v5  ;;  %v3841_v55 = vmul.f32 %v5290_v54, %v3840_v9  ;;  %vm4067_vm0 = vcmp.eq.s32.totalorder %v5234_v31, %v6218_v23 }
 0x702   : > { %v4754_v43 = vadd.f32 -0.6931472, %v3915_v50 }
 0x703   : > { %v5294_v22 = vpop.eup %5293 }
 0x704   : > { %v5296_v49 = vpop.eup %5295  ;;  %v3943_v61 = vpack.c.bf16 %v4754_v43, %v4753_v19  ;;  %v3845_v57 = vadd.f32 1.0, %v5294_v22  ;;  %v3848_v17 = vmul.f32 -0.5, %v5294_v22  ;;  %v3851_v42 = vand.u32 2147483647, %v5294_v22 }
 0x705   : > { %v3838_v11 = vmul.f32 0.6931472, %v5296_v49 }
 0x706   : > { %5297 = vlog2.f32 %v3845_v57  ;;  %4039 = vmatmul.bf16.gmra.mxu1 %v3943_v61  ;;  %v3849_v3 = vadd.f32 1.0, %v3848_v17  ;;  %vm3852_vm15 = vcmp.lt.f32.partialorder %v3851_v42, 0.0004427343 }
 0x707   : > { %v3844_v45 = vsel %vm3843_vm14, %v3841_v55, %v3838_v11 }
 0x708   : > { %v3850_v62 = vmul.f32 %v5294_v22, %v3849_v3  ;;  %v3916_v47 = vadd.f32 %v3844_v45, %v3692_v46 }
 0x70a   : > { %v4755_v8 = vadd.f32 -0.6931472, %v3916_v47 }
 0x70c   : > { %v5298_v18 = vpop.eup %5297 }
 0x70d   : > { %v3847_v28 = vmul.f32 0.6931472, %v5298_v18 }
 0x70f   : > { %v3853_v24 = vsel %vm3852_vm15, %v3850_v62, %v3847_v28 }
 0x710   : > { %v3917_v60 = vadd.f32 %v3853_v24, %v3693_v10 }
 0x712   : > { %v4756_v35 = vadd.f32 -0.6931472, %v3917_v60 }
 0x714   : > { %v3944_v39 = vpack.c.bf16 %v4756_v35, %v4755_v8 }
 0x716   : > { %4044 = vmatmul.bf16.gmra.mxu1 %v3944_v39 }
 0x753   : > { %v4025_v36 = vpop.f32.mrf.mxu1 }
 0x754   : > { %v4026_v5 = vadd.f32 %v5233_v58, %v4025_v36 }
 0x75b   : > { %v4027_v16 = vpop.f32.mrf.mxu1 }
 0x75c   : > { %v4028_v7 = vadd.f32 %v5233_v58, %v4027_v16 }
 0x75f   : > { %v4050_v48 = vpop.f32.mrf.mxu2 }
 0x760   : > { %v4051_v14 = vadd.f32 %v5233_v58, %v4050_v48 }
 0x763   : > { %v4030_v26 = vpop.f32.mrf.mxu1 }
 0x764   : > { %v4031_v37 = vadd.f32 %v5233_v58, %v4030_v26 }
 0x767   : > { %v4052_v27 = vpop.f32.mrf.mxu2 }
 0x768   : > { %v4053_v52 = vadd.f32 %v5233_v58, %v4052_v27 }
 0x76b   : > { %v4032_v34 = vpop.f32.mrf.mxu1 }
 0x76c   : > { %v4033_v25 = vadd.f32 %v5233_v58, %v4032_v34 }
 0x76f   : > { %v4055_v38 = vpop.f32.mrf.mxu2 }
 0x770   : > { %v4056_v29 = vadd.f32 %v5233_v58, %v4055_v38 }
 0x773   : > { %v4035_v13 = vpop.f32.mrf.mxu1 }
 0x774   : > { %v4036_v53 = vadd.f32 %v5233_v58, %v4035_v13 }
 0x777   : > { %v4057_v44 = vpop.f32.mrf.mxu2 }
 0x778   : > { %v4058_v0 = vadd.f32 %v5233_v58, %v4057_v44 }
 0x77b   : > { %v4037_v63 = vpop.f32.mrf.mxu1 }
 0x77c   : > { %v4038_v51 = vadd.f32 %v5233_v58, %v4037_v63 }
 0x781   : > { %v4060_v1 = vpop.f32.mrf.mxu2 }
 0x782   : > { %v4061_v30 = vadd.f32 %v5233_v58, %v4060_v1 }
 0x783   : > { %v4040_v32 = vpop.f32.mrf.mxu1 }
 0x784   : > { %v4041_v33 = vadd.f32 %v5233_v58, %v4040_v32 }
 0x789   : > { %v4062_v2 = vpop.f32.mrf.mxu2 }
 0x78a   : > { %v4063_v20 = vadd.f32 %v5233_v58, %v4062_v2 }
 0x78b   : > { %v4042_v6 = vpop.f32.mrf.mxu1 }
 0x78c   : > { %4070 = vmatpush.msrb.mxu2 %v4063_v20  ;;  %v4043_v59 = vadd.f32 %v5233_v58, %v4042_v6 }
 0x78e   : > { %4071 = vmatpush.msrb.mxu2 %v4061_v30 }
 0x790   : > { %4072 = vmatpush.msrb.mxu2 %v4058_v0 }
 0x792   : > { %4073 = vmatpush.msrb.mxu2 %v4056_v29 }
 0x793   : > { %v4045_v12 = vpop.f32.mrf.mxu1 }
 0x794   : > { %4074 = vmatpush.msrb.mxu2 %v4053_v52  ;;  %v4046_v54 = vadd.f32 %v5233_v58, %v4045_v12 }
 0x796   : > { %4075 = vmatpush.msrb.mxu2 %v4051_v14 }
 0x79b   : > { %v4047_v41 = vpop.f32.mrf.mxu1 }
 0x79c   : > { %v4048_v4 = vadd.f32 %v5233_v58, %v4047_v41 }
 0x79e   : > { %4076 = vmatpush.msrb.mxu2 %v4048_v4 }
 0x7a0   : > { %4077 = vmatpush.msrb.mxu2 %v4046_v54 }
 0x7a2   : > { %4078 = vmatpush.msrb.mxu2 %v4043_v59 }
 0x7a4   : > { %4079 = vmatpush.msrb.mxu2 %v4041_v33 }
 0x7a6   : > { %4080 = vmatpush.msrb.mxu2 %v4038_v51 }
 0x7a8   : > { %4081 = vmatpush.msrb.mxu2 %v4036_v53 }
 0x7aa   : > { %4082 = vmatpush.msrb.mxu2 %v4033_v25 }
 0x7ac   : > { %4083 = vmatpush.msrb.mxu2 %v4031_v37 }
 0x7ae   : > { %4084 = vmatpush.msrb.mxu2 %v4028_v7 }
 0x7b0   : > { %4085 = vmatpush.msrb.mxu2 %v4026_v5 }
 0x7b1   : > { %4796 = vmatmul.msk.f32.vlgmr.msrb.gmra.mxu2 %vm4067_vm0, %v5342_v15 }
 0x834   : > { %v4087_v40 = vpop.f32.mrf.mxu2 }
 0x835   : > { %4091 = vst.msk [vmem:[%s7004_s5] sm:$0x3] %vm4090_vm1, %v4087_v40 }
 0x836 PF: > { %s7005_s22 = sld [smem:[#allocation9_spill]] }
 0x837   : > { %s7006_s20 = sld [smem:[#allocation7_spill]] }
 0x838   : > { %s7007_s21 = sld [smem:[#allocation8_spill]] }
 0x839   : > { %s7008_s1 = sld [smem:[#allocation10_spill]] }
 0x83c   : > { %s31_s2 = sadd.s32 1, %s7005_s22   ;;  %s7009_s22 = sld [smem:[#allocation11_spill]] }
 0x83d   : > { %p28_p2 = scmp.ge.s32.totalorder %s31_s2, 11  }
 0x83f   :  { %30 = sbr.rel (!%p28_p2) target bundleno = 16 (0x10), region = 174 }

</bundles_post_ra>
